<compile_context>
chip_gen: v6e
topology: v6e:2x2x1
jax: 0.10.0
libtpu: 0.0.40
codegen_flags: <defaults>
</compile_context>

<pallas_src>
import functools

import jax
import jax.numpy as jnp
from jax.experimental import pallas as pl
from jax.experimental.pallas import tpu as pltpu

C_IN = 256 + 768          # 1024, fixed by the module
INTERM = 512              # interm_channels default
C_OUT = 1


def _round_up(x, m):
    return ((x + m - 1) // m) * m


def _mlp_kernel(x_ref, w0_ref, b0_ref, w1_ref, b1_ref, w2_ref, b2_ref, o_ref):
    # x_ref: (1, C_IN, TL) bf16 slab; weights are full bf16 slabs, biases f32.
    x = x_ref[0]                                                  # (C_IN, TL)
    h = jnp.dot(w0_ref[...], x, preferred_element_type=jnp.float32)   # (512, TL) f32
    h = jnp.maximum(h + b0_ref[...], 0.0).astype(jnp.bfloat16)        # ReLU(c0)
    h = jnp.dot(w1_ref[...], h, preferred_element_type=jnp.float32)   # (512, TL) f32
    h = jnp.maximum(h + b1_ref[...], 0.0).astype(jnp.bfloat16)        # ReLU(c1)
    # Final 1-row contraction: tiny vs. the two big dots; output is lane-dense.
    y = jnp.dot(w2_ref[...], h, preferred_element_type=jnp.float32)   # (1, TL)
    o_ref[0] = (y + b2_ref[...]).astype(o_ref.dtype)                   # c2 (no act)


@functools.partial(jax.jit, static_argnames=("tile_l",))
def local_discriminator_pallas(x, params, tile_l=512):
    """x: (N, 1024, L) float32, NCL like PyTorch Conv1d.  Returns (N, 1, L)."""
    w0, b0, w1, b1, w2, b2 = params
    N, C, L = x.shape
    assert C == C_IN

    # Pick a lane tile: multiple of 128, no bigger than needed for small L.
    tl = min(tile_l, _round_up(L, 128))
    tl = _round_up(tl, 128)
    L_pad = _round_up(L, tl)

    xb = x.astype(jnp.bfloat16)
    if L_pad != L:
        xb = jnp.pad(xb, ((0, 0), (0, 0), (0, L_pad - L)))

    # bf16 MXU operands, f32 biases shaped to broadcast over the lane axis.
    w0b = w0.astype(jnp.bfloat16)                       # (512, 1024)
    w1b = w1.astype(jnp.bfloat16)                       # (512, 512)
    w2b = w2.astype(jnp.bfloat16)                       # (1, 512)
    b0c = b0.reshape(INTERM, 1).astype(jnp.float32)
    b1c = b1.reshape(INTERM, 1).astype(jnp.float32)
    b2c = b2.reshape(1, 1).astype(jnp.float32)

    grid = (N, L_pad // tl)
    out = pl.pallas_call(
        _mlp_kernel,
        out_shape=jax.ShapeDtypeStruct((N, C_OUT, L_pad), jnp.float32),
        grid_spec=pltpu.PrefetchScalarGridSpec(
            num_scalar_prefetch=0,
            grid=grid,
            in_specs=[
                pl.BlockSpec((1, C_IN, tl), lambda n, l: (n, 0, l)),     # x slab
                pl.BlockSpec((INTERM, C_IN), lambda n, l: (0, 0)),       # W0
                pl.BlockSpec((INTERM, 1), lambda n, l: (0, 0)),          # b0
                pl.BlockSpec((INTERM, INTERM), lambda n, l: (0, 0)),     # W1
                pl.BlockSpec((INTERM, 1), lambda n, l: (0, 0)),          # b1
                pl.BlockSpec((C_OUT, INTERM), lambda n, l: (0, 0)),      # W2
                pl.BlockSpec((C_OUT, 1), lambda n, l: (0, 0)),           # b2
            ],
            out_specs=pl.BlockSpec((1, C_OUT, tl), lambda n, l: (n, 0, l)),
        ),
        compiler_params=pltpu.CompilerParams(
            dimension_semantics=("parallel", "parallel")),
    )(xb, w0b, b0c, w1b, b1c, w2b, b2c)

    return out[:, :, :L]                               # drop L padding


def init_params(key):
    """Deterministic init mimicking PyTorch Conv1d default (U(-1/sqrt(fan_in)))."""
    ks = jax.random.split(key, 6)

    def u(k, shape, fan_in):
        bound = 1.0 / jnp.sqrt(float(fan_in))
        return jax.random.uniform(k, shape, jnp.float32, -bound, bound)

    # PyTorch-like shapes: weight (C_out, C_in), bias (C_out,).
    w0 = u(ks[0], (INTERM, C_IN), C_IN)
    b0 = u(ks[1], (INTERM,), C_IN)
    w1 = u(ks[2], (INTERM, INTERM), INTERM)
    b1 = u(ks[3], (INTERM,), INTERM)
    w2 = u(ks[4], (C_OUT, INTERM), INTERM)
    b2 = u(ks[5], (C_OUT,), INTERM)
    return (w0, b0, w1, b1, w2, b2)


def reference_jax(x, params):
    """Pure-JAX f32 reference of the PyTorch forward (1x1 conv == pointwise MLP)."""
    w0, b0, w1, b1, w2, b2 = params
    h = jax.nn.relu(jnp.einsum("oc,ncl->nol", w0, x) + b0[None, :, None])
    h = jax.nn.relu(jnp.einsum("oc,ncl->nol", w1, h) + b1[None, :, None])
    y = jnp.einsum("oc,ncl->nol", w2, h) + b2[None, :, None]
    return y                                            # (N, 1, L)


if __name__ == "__main__":
    key = jax.random.PRNGKey(0)
    kx, kp = jax.random.split(key)

    N, L = 2, 16
    x = jax.random.normal(kx, (N, C_IN, L), jnp.float32)   # NCL, like PyTorch
    params = init_params(kp)

    out = local_discriminator_pallas(x, params)
    out = jax.block_until_ready(out)

    ref = reference_jax(x, params)
    assert out.shape == (N, C_OUT, L), out.shape
    # bf16 operands (f32 accumulation) -> loosen tolerance vs the f32 reference.
    assert jnp.allclose(out, ref, atol=2e-2, rtol=2e-2), (
        float(jnp.max(jnp.abs(out - ref))))

    print("KERNEL_OK")
</pallas_src>

<mosaic_0001>
module attributes {stable_mosaic.version = 11 : i64} {
  func.func @_mlp_kernel(%arg0: i32, %arg1: i32, %arg2: memref<1x1024x128xbf16, #tpu.memory_space<vmem>>, %arg3: memref<512x1024xbf16, #tpu.memory_space<vmem>>, %arg4: memref<512x1xf32, #tpu.memory_space<vmem>>, %arg5: memref<512x512xbf16, #tpu.memory_space<vmem>>, %arg6: memref<512x1xf32, #tpu.memory_space<vmem>>, %arg7: memref<1x512xbf16, #tpu.memory_space<vmem>>, %arg8: memref<1x1xf32, #tpu.memory_space<vmem>>, %arg9: memref<1x1x128xf32, #tpu.memory_space<vmem>>) attributes {dimension_semantics = [#tpu.dimension_semantics<parallel>, #tpu.dimension_semantics<parallel>], iteration_bounds = array<i64: 2, 1>, scalar_prefetch = 0 : i64, scratch_operands = 0 : i64, tpu.core_type = #tpu.core_type<tc>, window_params = [{transform_indices = @transform_0, window_bounds = array<i64: 1, 1024, 128>}, {pipeline_mode = #tpu.pipeline_mode<synchronous>, transform_indices = @transform_1, window_bounds = array<i64: 512, 1024>}, {pipeline_mode = #tpu.pipeline_mode<synchronous>, transform_indices = @transform_2, window_bounds = array<i64: 512, 1>}, {pipeline_mode = #tpu.pipeline_mode<synchronous>, transform_indices = @transform_3, window_bounds = array<i64: 512, 512>}, {pipeline_mode = #tpu.pipeline_mode<synchronous>, transform_indices = @transform_4, window_bounds = array<i64: 512, 1>}, {pipeline_mode = #tpu.pipeline_mode<synchronous>, transform_indices = @transform_5, window_bounds = array<i64: 1, 512>}, {pipeline_mode = #tpu.pipeline_mode<synchronous>, transform_indices = @transform_6, window_bounds = array<i64: 1, 1>}, {transform_indices = @transform_7, window_bounds = array<i64: 1, 1, 128>}]} {
    %c0 = arith.constant 0 : index
    %c0_0 = arith.constant 0 : index
    %c0_1 = arith.constant 0 : index
    %0 = vector.load %arg2[%c0, %c0_0, %c0_1] : memref<1x1024x128xbf16, #tpu.memory_space<vmem>>, vector<1x1024x128xbf16>
    %1 = vector.shape_cast %0 : vector<1x1024x128xbf16> to vector<1024x128xbf16>
    %c0_2 = arith.constant 0 : index
    %c0_3 = arith.constant 0 : index
    %2 = vector.load %arg3[%c0_2, %c0_3] : memref<512x1024xbf16, #tpu.memory_space<vmem>>, vector<512x1024xbf16>
    %cst = arith.constant dense<0.000000e+00> : vector<512x128xf32>
    %3 = tpu.matmul %2, %1, %cst {dimension_numbers = #tpu.dot_dimension_numbers<[1], [0], [0], [1], [0, 0, 1, 1], [], []>} : vector<512x1024xbf16>, vector<1024x128xbf16>, vector<512x128xf32> -> vector<512x128xf32>
    %c0_4 = arith.constant 0 : index
    %c0_5 = arith.constant 0 : index
    %4 = vector.load %arg4[%c0_4, %c0_5] : memref<512x1xf32, #tpu.memory_space<vmem>>, vector<512x1xf32>
    %5 = vector.broadcast %4 : vector<512x1xf32> to vector<512x128xf32>
    %6 = arith.addf %3, %5 : vector<512x128xf32>
    %cst_6 = arith.constant 0.000000e+00 : f32
    %7 = vector.broadcast %cst_6 : f32 to vector<512x128xf32>
    %8 = arith.maximumf %6, %7 : vector<512x128xf32>
    %9 = arith.truncf %8 : vector<512x128xf32> to vector<512x128xbf16>
    %c0_7 = arith.constant 0 : index
    %c0_8 = arith.constant 0 : index
    %10 = vector.load %arg5[%c0_7, %c0_8] : memref<512x512xbf16, #tpu.memory_space<vmem>>, vector<512x512xbf16>
    %cst_9 = arith.constant dense<0.000000e+00> : vector<512x128xf32>
    %11 = tpu.matmul %10, %9, %cst_9 {dimension_numbers = #tpu.dot_dimension_numbers<[1], [0], [0], [1], [0, 0, 1, 1], [], []>} : vector<512x512xbf16>, vector<512x128xbf16>, vector<512x128xf32> -> vector<512x128xf32>
    %c0_10 = arith.constant 0 : index
    %c0_11 = arith.constant 0 : index
    %12 = vector.load %arg6[%c0_10, %c0_11] : memref<512x1xf32, #tpu.memory_space<vmem>>, vector<512x1xf32>
    %13 = vector.broadcast %12 : vector<512x1xf32> to vector<512x128xf32>
    %14 = arith.addf %11, %13 : vector<512x128xf32>
    %cst_12 = arith.constant 0.000000e+00 : f32
    %15 = vector.broadcast %cst_12 : f32 to vector<512x128xf32>
    %16 = arith.maximumf %14, %15 : vector<512x128xf32>
    %17 = arith.truncf %16 : vector<512x128xf32> to vector<512x128xbf16>
    %c0_13 = arith.constant 0 : index
    %c0_14 = arith.constant 0 : index
    %18 = vector.load %arg7[%c0_13, %c0_14] : memref<1x512xbf16, #tpu.memory_space<vmem>>, vector<1x512xbf16>
    %cst_15 = arith.constant dense<0.000000e+00> : vector<1x128xf32>
    %19 = tpu.matmul %18, %17, %cst_15 {dimension_numbers = #tpu.dot_dimension_numbers<[1], [0], [0], [1], [0, 0, 1, 1], [], []>} : vector<1x512xbf16>, vector<512x128xbf16>, vector<1x128xf32> -> vector<1x128xf32>
    %c0_16 = arith.constant 0 : index
    %c0_17 = arith.constant 0 : index
    %20 = vector.load %arg8[%c0_16, %c0_17] : memref<1x1xf32, #tpu.memory_space<vmem>>, vector<1x1xf32>
    %21 = vector.broadcast %20 : vector<1x1xf32> to vector<1x128xf32>
    %22 = arith.addf %19, %21 : vector<1x128xf32>
    %c0_18 = arith.constant 0 : index
    %c0_19 = arith.constant 0 : index
    %c0_20 = arith.constant 0 : index
    %23 = vector.load %arg9[%c0_18, %c0_19, %c0_20] : memref<1x1x128xf32, #tpu.memory_space<vmem>>, vector<1x1x128xf32>
    %24 = vector.shape_cast %23 : vector<1x1x128xf32> to vector<1x128xf32>
    %25 = vector.shape_cast %22 : vector<1x128xf32> to vector<1x1x128xf32>
    tpu.vector_store %arg9[%c0_18, %c0_19, %c0_20], %25 {strides = array<i32>} : memref<1x1x128xf32, #tpu.memory_space<vmem>>, vector<1x1x128xf32>,
    return
  }
  func.func @transform_0(%arg0: i32, %arg1: i32) -> (i32, i32, i32) {
    %c0_i32 = arith.constant 0 : i32
    %c0_i32_0 = arith.constant 0 : i32
    return %arg0, %c0_i32, %arg1 : i32, i32, i32
  }
  func.func @transform_1(%arg0: i32, %arg1: i32) -> (i32, i32) {
    %c0_i32 = arith.constant 0 : i32
    %c0_i32_0 = arith.constant 0 : i32
    %c0_i32_1 = arith.constant 0 : i32
    return %c0_i32, %c0_i32_0 : i32, i32
  }
  func.func @transform_2(%arg0: i32, %arg1: i32) -> (i32, i32) {
    %c0_i32 = arith.constant 0 : i32
    %c0_i32_0 = arith.constant 0 : i32
    %c0_i32_1 = arith.constant 0 : i32
    return %c0_i32, %c0_i32_0 : i32, i32
  }
  func.func @transform_3(%arg0: i32, %arg1: i32) -> (i32, i32) {
    %c0_i32 = arith.constant 0 : i32
    %c0_i32_0 = arith.constant 0 : i32
    %c0_i32_1 = arith.constant 0 : i32
    return %c0_i32, %c0_i32_0 : i32, i32
  }
  func.func @transform_4(%arg0: i32, %arg1: i32) -> (i32, i32) {
    %c0_i32 = arith.constant 0 : i32
    %c0_i32_0 = arith.constant 0 : i32
    %c0_i32_1 = arith.constant 0 : i32
    return %c0_i32, %c0_i32_0 : i32, i32
  }
  func.func @transform_5(%arg0: i32, %arg1: i32) -> (i32, i32) {
    %c0_i32 = arith.constant 0 : i32
    %c0_i32_0 = arith.constant 0 : i32
    %c0_i32_1 = arith.constant 0 : i32
    return %c0_i32, %c0_i32_0 : i32, i32
  }
  func.func @transform_6(%arg0: i32, %arg1: i32) -> (i32, i32) {
    %c0_i32 = arith.constant 0 : i32
    %c0_i32_0 = arith.constant 0 : i32
    %c0_i32_1 = arith.constant 0 : i32
    return %c0_i32, %c0_i32_0 : i32, i32
  }
  func.func @transform_7(%arg0: i32, %arg1: i32) -> (i32, i32, i32) {
    %c0_i32 = arith.constant 0 : i32
    %c0_i32_0 = arith.constant 0 : i32
    return %arg0, %c0_i32, %arg1 : i32, i32, i32
  }
}

</mosaic_0001>

<bundles_post_ra>
// kernel: local_discriminator_pallas.1
= control target key start
LH: loop header
LB: loop body
LE: loop exit
PB: predicated region body
PF: predicated region fallthrough
CT: control target
= control target key end

     0   :  { %s9676_s0 = inlined_call_operand.vmem [shape: bf16[2,1024,128], index: 0, kind: input, shape index: {}]   ;;  %s9677_s1 = inlined_call_operand.vmem [shape: bf16[512,1024], index: 1, kind: input, shape index: {}]   ;;  %s9678_s2 = inlined_call_operand.vmem [shape: f32[512,1], index: 2, kind: input, shape index: {}]   ;;  %s9679_s3 = inlined_call_operand.vmem [shape: bf16[512,512], index: 3, kind: input, shape index: {}]   ;;  %s9680_s4 = inlined_call_operand.vmem [shape: f32[512,1], index: 4, kind: input, shape index: {}]   ;;  %s9681_s5 = inlined_call_operand.vmem [shape: bf16[1,512], index: 5, kind: input, shape index: {}]   ;;  %s9682_s6 = inlined_call_operand.<no memory space> [shape: f32[1,1], index: 6, kind: input, shape index: {}]   ;;  %s9683_s7 = inlined_call_operand.hbm [shape: f32[2,1,128], index: 7, kind: output, shape index: {}]  }
   0x1   :  { %v12_v0 = vstv %s9682_s6 }
   0x2   :  { %13 = vst [vmem:[#allocation2] sm:$0x1] %v12_v0 }
   0x3   :  { %14 = vsyncpa [#allocation4], 0 }
   0x4   :  { %16 = vsyncpa [#allocation4 + $0x1], 0  ;;  %s6962_s26 = smov 0   ;;  %s6964_s27 = smov 0  }
   0x5   :  { %s6966_s28 = smov 0   ;;  %s6968_s29 = smov 0  }
   0x6   :  { %s6970_s30 = smov 0   ;;  %s6972_s8 = smov 0  }
   0x7 LB: > { %s6019_s6 = sadd.s32 4294967295, %s6914_s8   ;;  %s6020_s9 = sadd.s32 4294967294, %s6914_s8   ;;  %s6914_s8 = sphi %s6972_s8, %s22_s8   ;;  %s6910_s30 = sphi %s6970_s30, %s9864_s30   ;;  %s6906_s29 = sphi %s6968_s29, %s9863_s29   ;;  %s6902_s28 = sphi %s6966_s28, %s9862_s28   ;;  %s6898_s27 = sphi %s6964_s27, %s9861_s27   ;;  %s6894_s26 = sphi %s6962_s26, %s9860_s26  }
   0x8   : > { %s34_s10 = sadd.s32 1, %s6910_s30  ;;  %s197_s11 = sadd.s32 1, %s6902_s28 }
   0x9   : > { %p36_p0 = scmp.ge.s32.totalorder %s34_s10, 2  ;;  %p207_p1 = scmp.ne.s32.totalorder %s6902_s28, %s6898_s27 }
   0xa   : > { %p208_p2 = scmp.eq.s32.totalorder %s6019_s6, 1  ;;  %p213_p3 = scmp.ne.s32.totalorder %s6898_s27, %s6894_s26 }
   0xb   : > { %s9866_s10 = smov (%p36_p0, %s34_s10), 0  ;;  %p214_p5 = scmp.eq.s32.totalorder %s6020_s9, 1 }
   0xc   : > { %p7002_p4 = por %p208_p2, %p207_p1  ;;  %s192_s13 = ssub.s32 %s6910_s30, %s9866_s10 }
   0xd   : > { %p6023_p6 = scmp.ge.s32.totalorder %s6914_s8, 1  ;;  %p195_p7 = scmp.eq.s32.totalorder %s192_s13, 0 }
   0xe   : > { %p7009_p8 = por %p214_p5, %p213_p3  ;;  %p261_p9 = scmp.lt.s32.totalorder %s6914_s8, 3 }
   0xf   : > { %s7015_s15 = scalar_select %p195_p7, %s6902_s28, %s197_s11  }
  0x10   : > { %p262_p10 = pnand %p6023_p6, %p261_p9 }
  0x12   : > { %265 = sbr.rel (%p262_p10) target bundleno = 1528 (0x5f8), region = 48 }
  0x17   : > { %p295_p11 = scmp.lt.s32.totalorder %s6906_s29, 1  ;;  %v7021_v1 = vld [vmem:[%s9677_s1] sm:$0xff]  ;;  %v7031_v3 = vld [vmem:[%s9677_s1 + $0x8] sm:$0xff]  ;;  %v9684_v4 = vmov 0   ;;  %v702_v10 = vld [vmem:[%s9678_s2 + $0x70] sm:$0xff]  ;;  %s293_s16 = sand.u32 1, %s6898_s27  }
  0x18   : > { %v7026_v2 = vld [vmem:[%s9677_s1 + $0x20] sm:$0xff]  ;;  %2736 = vmatprep.subr.bf16.mxu0 %v9684_v4  ;;  %3025 = vmatprep.subr.bf16.mxu1 %v9684_v4  ;;  %v7042_v7 = vld [vmem:[%s9677_s1 + $0x28] sm:$0xff]  ;;  %v734_v11 = vld [vmem:[%s9678_s2 + $0x170] sm:$0xff]  ;;  %s6475_s17 = sshll.u32 %s6906_s29, 4  ;;  %s294_s18 = scalar_lea.vmem [#allocation3], %s293_s16 }
  0x19   : > { %v6026_v5 = vcombine.low %v7021_v1, %v7026_v2  ;;  %v6027_v6 = vcombine.high %v7021_v1, %v7026_v2  ;;  %s296_s24 = scalar_select %p295_p11, %s6906_s29, 1  ;;  %v6028_v8 = vcombine.low %v7031_v3, %v7042_v7  ;;  %v6029_v9 = vcombine.high %v7031_v3, %v7042_v7  ;;  %6580 = vset.pattern.permute.xlu0 %v9684_v4  ;;  %v703_v12 = vld [vmem:[%s9678_s2 + $0x78] sm:$0xff]  ;;  %v700_v15 = vld [vmem:[%s9678_s2 + $0x60] sm:$0xff]  ;;  %v701_v33 = vld [vmem:[%s9678_s2 + $0x68] sm:$0xff] }
  0x1a   : > { %824 = vperm.xlu0 %6580, %v702_v10   ;;  %6581 = vset.pattern.permute.xlu1 %v9684_v4  ;;  %v735_v13 = vld [vmem:[%s9678_s2 + $0x178] sm:$0xff]  ;;  %v732_v34 = vld [vmem:[%s9678_s2 + $0x160] sm:$0xff]  ;;  %v733_v37 = vld [vmem:[%s9678_s2 + $0x168] sm:$0xff]  ;;  %s9636_s22 = scalar_lea.hbm %s9683_s7, %s6475_s17  ;;  %s5936_s23 = scalar_lea.sflag [#allocation4], %s293_s16 }
  0x1b   : > { %2768 = vmatprep.mubr.bf16.mxu0 %v6027_v6  ;;  %s6478_s9 = sshll.u32 %s296_s24, 9  ;;  %3057 = vmatprep.mubr.bf16.mxu1 %v6029_v9  ;;  %v698_v38 = vld [vmem:[%s9678_s2 + $0x50] sm:$0xff]  ;;  %v699_v41 = vld [vmem:[%s9678_s2 + $0x58] sm:$0xff]  ;;  %v696_v46 = vld [vmem:[%s9678_s2 + $0x40] sm:$0xff]  ;;  %s6918_s29 = smov [#allocation3]  }
  0x1c   : > { %s7063_s20 = scalar_lea.vmem %s9676_s0, %s6478_s9  ;;  %984 = vperm.xlu1 %6581, %v734_v11   ;;  %v730_v42 = vld [vmem:[%s9678_s2 + $0x150] sm:$0xff]  ;;  %v731_v45 = vld [vmem:[%s9678_s2 + $0x158] sm:$0xff]  ;;  %v697_v49 = vld [vmem:[%s9678_s2 + $0x48] sm:$0xff]  ;;  %s6842_s25 = sshll.u32 %s6918_s29, 4  ;;  %s6843_s25 = int_to_ptr.vmem [resolvable:$false] %s6842_s25 }
  0x1d   : > { %v6582_v14 = vld [vmem:[%s7063_s20 + $0x38] sm:$0xff]   ;;  %v6584_v17 = vld [vmem:[%s7063_s20 + $0x30] sm:$0xff]   ;;  %v6586_v19 = vld [vmem:[%s7063_s20 + $0x28] sm:$0xff]   ;;  %s6844_s6 = scalar_lea.vmem %s6843_s25, 32 }
  0x1e   : > { %v6583_v16 = vld [vmem:[%s7063_s20 + $0xb8] sm:$0xff]   ;;  %829 = vperm.xlu0 %6580, %v703_v12   ;;  %2737 = vmatpush1.bf16.msra.mxu0 %v6582_v14  ;;  %v6585_v18 = vld [vmem:[%s7063_s20 + $0xb0] sm:$0xff]   ;;  %v6587_v20 = vld [vmem:[%s7063_s20 + $0xa8] sm:$0xff]  }
  0x1f   : > { %3026 = vmatpush1.bf16.msra.mxu1 %v6583_v16  ;;  %2738 = vmatprep.subr.bf16.mxu0 %v9684_v4  ;;  %v6588_v21 = vld [vmem:[%s7063_s20 + $0x20] sm:$0xff]   ;;  %v6590_v23 = vld [vmem:[%s7063_s20 + $0x18] sm:$0xff]   ;;  %v6592_v25 = vld [vmem:[%s7063_s20 + $0x10] sm:$0xff]  }
  0x20   : > { %3027 = vmatprep.subr.bf16.mxu1 %v9684_v4  ;;  %989 = vperm.xlu1 %6581, %v735_v13   ;;  %v6589_v22 = vld [vmem:[%s7063_s20 + $0xa0] sm:$0xff]   ;;  %v6591_v24 = vld [vmem:[%s7063_s20 + $0x98] sm:$0xff]   ;;  %v6593_v26 = vld [vmem:[%s7063_s20 + $0x90] sm:$0xff]  }
  0x21   : > { %v6594_v27 = vld [vmem:[%s7063_s20 + $0x8] sm:$0xff]   ;;  %v6596_v29 = vld [vmem:[%s7063_s20] sm:$0xff]   ;;  %v6598_v31 = vld [vmem:[%s7063_s20 + $0x78] sm:$0xff]  }
  0x22   : > { %814 = vperm.xlu0 %6580, %v700_v15   ;;  %2739 = vmatpush1.bf16.msra.mxu0 %v6584_v17  ;;  %v6595_v28 = vld [vmem:[%s7063_s20 + $0x88] sm:$0xff]   ;;  %v6597_v30 = vld [vmem:[%s7063_s20 + $0x80] sm:$0xff]   ;;  %v6599_v32 = vld [vmem:[%s7063_s20 + $0xf8] sm:$0xff]  }
  0x23   : > { %3028 = vmatpush1.bf16.msra.mxu1 %v6585_v18  ;;  %2740 = vmatprep.subr.bf16.mxu0 %v9684_v4  ;;  %v6600_v35 = vld [vmem:[%s7063_s20 + $0x70] sm:$0xff]   ;;  %v6602_v39 = vld [vmem:[%s7063_s20 + $0x68] sm:$0xff]   ;;  %v6604_v43 = vld [vmem:[%s7063_s20 + $0x60] sm:$0xff]  }
  0x24   : > { %3029 = vmatprep.subr.bf16.mxu1 %v9684_v4  ;;  %819 = vperm.xlu1 %6581, %v701_v33   ;;  %v6601_v36 = vld [vmem:[%s7063_s20 + $0xf0] sm:$0xff]   ;;  %v6603_v40 = vld [vmem:[%s7063_s20 + $0xe8] sm:$0xff]   ;;  %v6605_v44 = vld [vmem:[%s7063_s20 + $0xe0] sm:$0xff]  }
  0x25   : > { %v6606_v47 = vld [vmem:[%s7063_s20 + $0x58] sm:$0xff]   ;;  %v728_v50 = vld [vmem:[%s9678_s2 + $0x140] sm:$0xff]  ;;  %v6608_v51 = vld [vmem:[%s7063_s20 + $0x50] sm:$0xff]  }
  0x26   : > { %2741 = vmatpush1.bf16.msra.mxu0 %v6586_v19  ;;  %974 = vperm.xlu0 %6580, %v732_v34   ;;  %v6607_v48 = vld [vmem:[%s7063_s20 + $0xd8] sm:$0xff]   ;;  %v6609_v52 = vld [vmem:[%s7063_s20 + $0xd0] sm:$0xff]   ;;  %v729_v53 = vld [vmem:[%s9678_s2 + $0x148] sm:$0xff] }
  0x27   : > { %3030 = vmatpush1.bf16.msra.mxu1 %v6587_v20  ;;  %2742 = vmatprep.subr.bf16.mxu0 %v9684_v4  ;;  %v694_v54 = vld [vmem:[%s9678_s2 + $0x30] sm:$0xff]  ;;  %v6610_v55 = vld [vmem:[%s7063_s20 + $0x48] sm:$0xff]   ;;  %v695_v57 = vld [vmem:[%s9678_s2 + $0x38] sm:$0xff] }
  0x28   : > { %3031 = vmatprep.subr.bf16.mxu1 %v9684_v4  ;;  %979 = vperm.xlu1 %6581, %v733_v37   ;;  %v6611_v56 = vld [vmem:[%s7063_s20 + $0xc8] sm:$0xff]   ;;  %v726_v58 = vld [vmem:[%s9678_s2 + $0x130] sm:$0xff]  ;;  %v6612_v59 = vld [vmem:[%s7063_s20 + $0x40] sm:$0xff]  }
  0x29   : > { %v440_v60 = vld [vmem:[%s9677_s1 + $0x40] sm:$0xff]  ;;  %v727_v63 = vld [vmem:[%s9678_s2 + $0x138] sm:$0xff]  ;;  %v441_v0 = vld [vmem:[%s9677_s1 + $0x48] sm:$0xff] }
  0x2a   : > { %2743 = vmatpush1.bf16.msra.mxu0 %v6588_v21  ;;  %804 = vperm.xlu0 %6580, %v698_v38   ;;  %v6613_v61 = vld [vmem:[%s7063_s20 + $0xc0] sm:$0xff]   ;;  %v445_v6 = vld [vmem:[%s9677_s1 + $0x68] sm:$0xff]  ;;  %v690_v7 = vld [vmem:[%s9678_s2 + $0x10] sm:$0xff] }
  0x2b   : > { %3032 = vmatpush1.bf16.msra.mxu1 %v6589_v22  ;;  %2744 = vmatprep.subr.bf16.mxu0 %v9684_v4  ;;  %v444_v62 = vld [vmem:[%s9677_s1 + $0x60] sm:$0xff]  ;;  %v6037_v11 = vcombine.high %v441_v0, %v445_v6  ;;  %v693_v12 = vld [vmem:[%s9678_s2 + $0x28] sm:$0xff]  ;;  %v691_v17 = vld [vmem:[%s9678_s2 + $0x18] sm:$0xff] }
  0x2c   : > { %3033 = vmatprep.subr.bf16.mxu1 %v9684_v4  ;;  %809 = vperm.xlu1 %6581, %v699_v41   ;;  %v692_v9 = vld [vmem:[%s9678_s2 + $0x20] sm:$0xff]  ;;  %v6035_v10 = vcombine.high %v440_v60, %v444_v62  ;;  %v449_v1 = vld [vmem:[%s9677_s1 + $0x88] sm:$0xff]  ;;  %v722_v19 = vld [vmem:[%s9678_s2 + $0x110] sm:$0xff] }
  0x2d   : > { %v724_v13 = vld [vmem:[%s9678_s2 + $0x120] sm:$0xff]  ;;  %v453_v2 = vld [vmem:[%s9677_s1 + $0xa8] sm:$0xff]  ;;  %v718_v37 = vld [vmem:[%s9678_s2 + $0xf0] sm:$0xff] }
  0x2e   : > { %2745 = vmatpush1.bf16.msra.mxu0 %v6590_v23  ;;  %964 = vperm.xlu0 %6580, %v730_v42   ;;  %v448_v14 = vld [vmem:[%s9677_s1 + $0x80] sm:$0xff]  ;;  %v725_v3 = vld [vmem:[%s9678_s2 + $0x128] sm:$0xff]  ;;  %v6045_v18 = vcombine.high %v449_v1, %v453_v2  ;;  %v719_v41 = vld [vmem:[%s9678_s2 + $0xf8] sm:$0xff] }
  0x2f   : > { %3034 = vmatpush1.bf16.msra.mxu1 %v6591_v24  ;;  %2746 = vmatprep.subr.bf16.mxu0 %v9684_v4  ;;  %v452_v15 = vld [vmem:[%s9677_s1 + $0xa0] sm:$0xff]  ;;  %v457_v22 = vld [vmem:[%s9677_s1 + $0xc8] sm:$0xff]  ;;  %v723_v24 = vld [vmem:[%s9678_s2 + $0x118] sm:$0xff] }
  0x30   : > { %3035 = vmatprep.subr.bf16.mxu1 %v9684_v4  ;;  %969 = vperm.xlu1 %6581, %v731_v45   ;;  %v6043_v16 = vcombine.high %v448_v14, %v452_v15  ;;  %v456_v20 = vld [vmem:[%s9677_s1 + $0xc0] sm:$0xff]  ;;  %v461_v23 = vld [vmem:[%s9677_s1 + $0xe8] sm:$0xff] }
  0x31   : > { %v460_v21 = vld [vmem:[%s9677_s1 + $0xe0] sm:$0xff]  ;;  %v465_v34 = vld [vmem:[%s9677_s1 + $0x108] sm:$0xff] }
  0x32   : > { %2747 = vmatpush1.bf16.msra.mxu0 %v6592_v25  ;;  %794 = vperm.xlu0 %6580, %v696_v46   ;;  %v688_v25 = vld [vmem:[%s9678_s2] sm:$0xff]  ;;  %v6050_v38 = vcombine.low %v456_v20, %v460_v21  ;;  %v473_v46 = vld [vmem:[%s9677_s1 + $0x148] sm:$0xff] }
  0x33   : > { %3036 = vmatpush1.bf16.msra.mxu1 %v6593_v26  ;;  %2748 = vmatprep.subr.bf16.mxu0 %v9684_v4  ;;  %v6042_v26 = vcombine.low %v448_v14, %v452_v15  ;;  %v468_v33 = vld [vmem:[%s9677_s1 + $0x120] sm:$0xff]  ;;  %v493_v14 = vld [vmem:[%s9677_s1 + $0x1e8] sm:$0xff]  ;;  %v747_v15 = vld [vmem:[%s9678_s2 + $0x1d8] sm:$0xff] }
  0x34   : > { %3037 = vmatprep.subr.bf16.mxu1 %v9684_v4  ;;  %799 = vperm.xlu1 %6581, %v697_v49   ;;  %v476_v45 = vld [vmem:[%s9677_s1 + $0x160] sm:$0xff] }
  0x35   : > { %v716_v49 = vld [vmem:[%s9678_s2 + $0xe0] sm:$0xff] }
  0x36   : > { %2749 = vmatpush1.bf16.msra.mxu0 %v6594_v27  ;;  %954 = vperm.xlu0 %6580, %v728_v50   ;;  %v6044_v27 = vcombine.low %v449_v1, %v453_v2  ;;  %v712_v1 = vld [vmem:[%s9678_s2 + $0xc0] sm:$0xff] }
  0x37   : > { %3038 = vmatpush1.bf16.msra.mxu1 %v6595_v28  ;;  %2750 = vmatprep.subr.bf16.mxu0 %v9684_v4  ;;  %v6051_v28 = vcombine.high %v456_v20, %v460_v21  ;;  %v501_v20 = vld [vmem:[%s9677_s1 + $0x228] sm:$0xff] }
  0x38   : > { %3039 = vmatprep.subr.bf16.mxu1 %v9684_v4  ;;  %959 = vperm.xlu1 %6581, %v729_v53   ;;  %v717_v53 = vld [vmem:[%s9678_s2 + $0xe8] sm:$0xff] }
  0x39   : > { %v745_v21 = vld [vmem:[%s9678_s2 + $0x1c8] sm:$0xff] }
  0x3a   : > { %2751 = vmatpush1.bf16.msra.mxu0 %v6596_v29  ;;  %784 = vperm.xlu0 %6580, %v694_v54   ;;  %v689_v29 = vld [vmem:[%s9678_s2 + $0x8] sm:$0xff] }
  0x3b   : > { %3040 = vmatpush1.bf16.msra.mxu1 %v6597_v30  ;;  %2752 = vmatprep.subr.bf16.mxu0 %v9684_v4  ;;  %v6053_v30 = vcombine.high %v457_v22, %v461_v23 }
  0x3c   : > { %3041 = vmatprep.subr.bf16.mxu1 %v9684_v4  ;;  %789 = vperm.xlu1 %6581, %v695_v57   ;;  %v484_v57 = vld [vmem:[%s9677_s1 + $0x1a0] sm:$0xff] }
  0x3e   : > { %2753 = vmatpush2.bf16.msra.mxu0 %v6598_v31  ;;  %944 = vperm.xlu0 %6580, %v726_v58   ;;  %v720_v31 = vld [vmem:[%s9678_s2 + $0x100] sm:$0xff]  ;;  %v481_v58 = vld [vmem:[%s9677_s1 + $0x188] sm:$0xff] }
  0x3f   : > { %3042 = vmatpush2.bf16.msra.mxu1 %v6599_v32  ;;  %2754 = vmatprep.subr.bf16.mxu0 %v9684_v4  ;;  %v464_v32 = vld [vmem:[%s9677_s1 + $0x100] sm:$0xff] }
  0x40   : > { %3043 = vmatprep.subr.bf16.mxu1 %v9684_v4  ;;  %949 = vperm.xlu1 %6581, %v727_v63   ;;  %v6058_v50 = vcombine.low %v464_v32, %v468_v33 }
  0x42   : > { %2755 = vmatpush2.bf16.msra.mxu0 %v6600_v35  ;;  %774 = vperm.xlu0 %6580, %v692_v9   ;;  %v469_v35 = vld [vmem:[%s9677_s1 + $0x128] sm:$0xff] }
  0x43   : > { %3044 = vmatpush2.bf16.msra.mxu1 %v6601_v36  ;;  %2756 = vmatprep.subr.bf16.mxu0 %v9684_v4  ;;  %v721_v36 = vld [vmem:[%s9678_s2 + $0x108] sm:$0xff]  ;;  %v6061_v42 = vcombine.high %v465_v34, %v469_v35 }
  0x44   : > { %3045 = vmatprep.subr.bf16.mxu1 %v9684_v4  ;;  %779 = vperm.xlu1 %6581, %v693_v12   ;;  %v492_v12 = vld [vmem:[%s9677_s1 + $0x1e0] sm:$0xff] }
  0x46   : > { %2757 = vmatpush2.bf16.msra.mxu0 %v6602_v39  ;;  %934 = vperm.xlu0 %6580, %v724_v13   ;;  %v6052_v39 = vcombine.low %v457_v22, %v461_v23  ;;  %v489_v13 = vld [vmem:[%s9677_s1 + $0x1c8] sm:$0xff]  ;;  %v710_v22 = vld [vmem:[%s9678_s2 + $0xb0] sm:$0xff] }
  0x47   : > { %3046 = vmatpush2.bf16.msra.mxu1 %v6603_v40  ;;  %2758 = vmatprep.subr.bf16.mxu0 %v9684_v4  ;;  %v6059_v40 = vcombine.high %v464_v32, %v468_v33  ;;  %v509_v32 = vld [vmem:[%s9677_s1 + $0x268] sm:$0xff]  ;;  %v743_v33 = vld [vmem:[%s9678_s2 + $0x1b8] sm:$0xff] }
  0x48   : > { %3047 = vmatprep.subr.bf16.mxu1 %v9684_v4  ;;  %939 = vperm.xlu1 %6581, %v725_v3  }
  0x4a   : > { %2759 = vmatpush2.bf16.msra.mxu0 %v6604_v43  ;;  %764 = vperm.xlu0 %6580, %v690_v7   ;;  %v750_v43 = vld [vmem:[%s9678_s2 + $0x1f0] sm:$0xff]  ;;  %v713_v7 = vld [vmem:[%s9678_s2 + $0xc8] sm:$0xff] }
  0x4b   : > { %3048 = vmatpush2.bf16.msra.mxu1 %v6605_v44  ;;  %2760 = vmatprep.subr.bf16.mxu0 %v9684_v4  ;;  %v472_v44 = vld [vmem:[%s9677_s1 + $0x140] sm:$0xff] }
  0x4c   : > { %3049 = vmatprep.subr.bf16.mxu1 %v9684_v4  ;;  %769 = vperm.xlu1 %6581, %v691_v17   ;;  %v496_v17 = vld [vmem:[%s9677_s1 + $0x200] sm:$0xff] }
  0x4e   : > { %2761 = vmatpush2.bf16.msra.mxu0 %v6606_v47  ;;  %924 = vperm.xlu0 %6580, %v722_v19   ;;  %v477_v47 = vld [vmem:[%s9677_s1 + $0x168] sm:$0xff] }
  0x4f   : > { %3050 = vmatpush2.bf16.msra.mxu1 %v6607_v48  ;;  %2762 = vmatprep.subr.bf16.mxu0 %v9684_v4  ;;  %v751_v48 = vld [vmem:[%s9678_s2 + $0x1f8] sm:$0xff]  ;;  %v6069_v54 = vcombine.high %v473_v46, %v477_v47  ;;  %v6068_v63 = vcombine.low %v473_v46, %v477_v47  ;;  %v497_v19 = vld [vmem:[%s9677_s1 + $0x208] sm:$0xff] }
  0x50   : > { %3051 = vmatprep.subr.bf16.mxu1 %v9684_v4  ;;  %929 = vperm.xlu1 %6581, %v723_v24   ;;  %v6084_v24 = vcombine.low %v489_v13, %v493_v14  ;;  %v517_v46 = vld [vmem:[%s9677_s1 + $0x2a8] sm:$0xff] }
  0x51   : > { %v741_v47 = vld [vmem:[%s9678_s2 + $0x1a8] sm:$0xff] }
  0x52   : > { %2763 = vmatpush2.bf16.msra.mxu0 %v6608_v51  ;;  %754 = vperm.xlu0 %6580, %v688_v25   ;;  %v6060_v51 = vcombine.low %v465_v34, %v469_v35  ;;  %v708_v34 = vld [vmem:[%s9678_s2 + $0xa0] sm:$0xff] }
  0x53   : > { %3052 = vmatpush2.bf16.msra.mxu1 %v6609_v52  ;;  %2764 = vmatprep.subr.bf16.mxu0 %v9684_v4  ;;  %v6067_v52 = vcombine.high %v472_v44, %v476_v45 }
  0x54   : > { %3053 = vmatprep.subr.bf16.mxu1 %v9684_v4  ;;  %759 = vperm.xlu1 %6581, %v689_v29   ;;  %v504_v29 = vld [vmem:[%s9677_s1 + $0x240] sm:$0xff] }
  0x56   : > { %2765 = vmatpush2.bf16.msra.mxu0 %v6610_v55  ;;  %914 = vperm.xlu0 %6580, %v720_v31   ;;  %v748_v55 = vld [vmem:[%s9678_s2 + $0x1e0] sm:$0xff]  ;;  %v505_v31 = vld [vmem:[%s9677_s1 + $0x248] sm:$0xff] }
  0x57   : > { %3054 = vmatpush2.bf16.msra.mxu1 %v6611_v56  ;;  %2766 = vmatprep.subr.bf16.mxu0 %v9684_v4  ;;  %v480_v56 = vld [vmem:[%s9677_s1 + $0x180] sm:$0xff] }
  0x58   : > { %3055 = vmatprep.subr.bf16.mxu1 %v9684_v4  ;;  %919 = vperm.xlu1 %6581, %v721_v36   ;;  %v6074_v2 = vcombine.low %v480_v56, %v484_v57  ;;  %v6092_v36 = vcombine.low %v497_v19, %v501_v20 }
  0x5a   : > { %2767 = vmatpush2.bf16.msra.mxu0 %v6612_v59  ;;  %904 = vperm.xlu0 %6580, %v718_v37   ;;  %v485_v59 = vld [vmem:[%s9677_s1 + $0x1a8] sm:$0xff] }
  0x5b   : > { %3056 = vmatpush2.bf16.msra.mxu1 %v6613_v61  ;;  %3314 = vmatprep.subr.bf16.mxu0 %v9684_v4  ;;  %v714_v61 = vld [vmem:[%s9678_s2 + $0xd0] sm:$0xff]  ;;  %v6077_v9 = vcombine.high %v481_v58, %v485_v59  ;;  %v6076_v3 = vcombine.low %v481_v58, %v485_v59  ;;  %v524_v58 = vld [vmem:[%s9677_s1 + $0x2e0] sm:$0xff]  ;;  %v6618_v59 = vld [vmem:[%s7063_s20 + $0x128] sm:$0xff]  }
  0x5c   : > { %3603 = vmatprep.subr.bf16.mxu1 %v9684_v4  ;;  %909 = vperm.xlu1 %6581, %v719_v41   ;;  %v512_v41 = vld [vmem:[%s9677_s1 + $0x280] sm:$0xff] }
  0x5d   : > { %2769 = vmatmul.mubr.bf16.vlgmr.msra.gmra.mxu0 %v6026_v5  ;;  %v6034_v5 = vcombine.low %v440_v60, %v444_v62  ;;  %v749_v60 = vld [vmem:[%s9678_s2 + $0x1e8] sm:$0xff]  ;;  %v6066_v62 = vcombine.low %v472_v44, %v476_v45  ;;  %v6615_v44 = vld [vmem:[%s7063_s20 + $0x1b8] sm:$0xff]  }
  0x5e   : > { %3058 = vmatmul.mubr.bf16.vlgmr.msra.gmra.mxu1 %v6028_v8  ;;  %2776 = vmatprep.mubr.bf16.mxu0 %v6035_v10  ;;  %v6036_v8 = vcombine.low %v441_v0, %v445_v6  ;;  %v6075_v0 = vcombine.high %v480_v56, %v484_v57  ;;  %v715_v6 = vld [vmem:[%s9678_s2 + $0xd8] sm:$0xff]  ;;  %v746_v10 = vld [vmem:[%s9678_s2 + $0x1d0] sm:$0xff]  ;;  %v513_v45 = vld [vmem:[%s9677_s1 + $0x288] sm:$0xff] }
  0x5f   : > { %3065 = vmatprep.mubr.bf16.mxu1 %v6037_v11  ;;  %1064 = vperm.xlu0 %6580, %v750_v43   ;;  %v488_v11 = vld [vmem:[%s9677_s1 + $0x1c0] sm:$0xff]  ;;  %v6614_v43 = vld [vmem:[%s7063_s20 + $0x138] sm:$0xff]   ;;  %v738_v56 = vld [vmem:[%s9678_s2 + $0x190] sm:$0xff] }
  0x60   : > { %1069 = vperm.xlu1 %6581, %v751_v48   ;;  %v6082_v23 = vcombine.low %v488_v11, %v492_v12  ;;  %v706_v48 = vld [vmem:[%s9678_s2 + $0x90] sm:$0xff]  ;;  %3315 = vmatpush1.bf16.msra.mxu0 %v6614_v43  ;;  %v520_v57 = vld [vmem:[%s9677_s1 + $0x2c0] sm:$0xff]  ;;  %v545_v43 = vld [vmem:[%s9677_s1 + $0x388] sm:$0xff] }
  0x61   : > { %3604 = vmatpush1.bf16.msra.mxu1 %v6615_v44  ;;  %3316 = vmatprep.subr.bf16.mxu0 %v9684_v4 }
  0x62   : > { %3605 = vmatprep.subr.bf16.mxu1 %v9684_v4 }
  0x63   : > { %894 = vperm.xlu0 %6580, %v716_v49  }
  0x64   : > { %899 = vperm.xlu1 %6581, %v717_v53  }
  0x65   : > { %2777 = vmatmul.mubr.bf16.gmra.mxu0 %v6034_v5  ;;  %v6083_v5 = vcombine.high %v488_v11, %v492_v12  ;;  %v6115_v11 = vcombine.high %v520_v57, %v524_v58  ;;  %v705_v12 = vld [vmem:[%s9678_s2 + $0x88] sm:$0xff] }
  0x66   : > { %3066 = vmatmul.mubr.bf16.gmra.mxu1 %v6036_v8  ;;  %2784 = vmatprep.mubr.bf16.mxu0 %v6043_v16  ;;  %v6085_v8 = vcombine.high %v489_v13, %v493_v14  ;;  %v744_v16 = vld [vmem:[%s9678_s2 + $0x1c0] sm:$0xff] }
  0x67   : > { %3073 = vmatprep.mubr.bf16.mxu1 %v6045_v18  ;;  %1054 = vperm.xlu0 %6580, %v748_v55   ;;  %v500_v18 = vld [vmem:[%s9677_s1 + $0x220] sm:$0xff]  ;;  %v6109_v55 = vcombine.high %v513_v45, %v517_v46 }
  0x68   : > { %1059 = vperm.xlu1 %6581, %v749_v60   ;;  %v6091_v25 = vcombine.high %v496_v17, %v500_v18  ;;  %v6090_v35 = vcombine.low %v496_v17, %v500_v18  ;;  %v6619_v60 = vld [vmem:[%s7063_s20 + $0x1a8] sm:$0xff]   ;;  %v6620_v13 = vld [vmem:[%s7063_s20 + $0x120] sm:$0xff]   ;;  %v6114_v18 = vcombine.low %v520_v57, %v524_v58 }
  0x69   : > { %v556_v57 = vld [vmem:[%s9677_s1 + $0x3e0] sm:$0xff]  ;;  %v553_v58 = vld [vmem:[%s9677_s1 + $0x3c8] sm:$0xff] }
  0x6b   : > { %884 = vperm.xlu0 %6580, %v714_v61   ;;  %v521_v61 = vld [vmem:[%s9677_s1 + $0x2c8] sm:$0xff] }
  0x6c   : > { %889 = vperm.xlu1 %6581, %v715_v6   ;;  %v704_v6 = vld [vmem:[%s9678_s2 + $0x80] sm:$0xff] }
  0x6d   : > { %2785 = vmatmul.mubr.bf16.gmra.mxu0 %v6042_v26  ;;  %v711_v26 = vld [vmem:[%s9678_s2 + $0xb8] sm:$0xff] }
  0x6e   : > { %3074 = vmatmul.mubr.bf16.gmra.mxu1 %v6044_v27  ;;  %2792 = vmatprep.mubr.bf16.mxu0 %v6051_v28  ;;  %v6093_v27 = vcombine.high %v497_v19, %v501_v20  ;;  %v742_v28 = vld [vmem:[%s9678_s2 + $0x1b0] sm:$0xff] }
  0x6f   : > { %3081 = vmatprep.mubr.bf16.mxu1 %v6053_v30  ;;  %1044 = vperm.xlu0 %6580, %v746_v10   ;;  %v508_v30 = vld [vmem:[%s9677_s1 + $0x260] sm:$0xff]  ;;  %v6108_v10 = vcombine.low %v513_v45, %v517_v46  ;;  %v549_v45 = vld [vmem:[%s9677_s1 + $0x3a8] sm:$0xff]  ;;  %v6630_v46 = vld [vmem:[%s7063_s20 + $0x178] sm:$0xff]  }
  0x70   : > { %1049 = vperm.xlu1 %6581, %v747_v15   ;;  %v6099_v37 = vcombine.high %v504_v29, %v508_v30  ;;  %v6098_v49 = vcombine.low %v504_v29, %v508_v30  ;;  %v6621_v15 = vld [vmem:[%s7063_s20 + $0x1a0] sm:$0xff]   ;;  %v541_v29 = vld [vmem:[%s9677_s1 + $0x368] sm:$0xff] }
  0x71   : > { %v6626_v30 = vld [vmem:[%s7063_s20 + $0x108] sm:$0xff]  }
  0x73   : > { %874 = vperm.xlu0 %6580, %v712_v1   ;;  %v528_v1 = vld [vmem:[%s9677_s1 + $0x300] sm:$0xff] }
  0x74   : > { %879 = vperm.xlu1 %6581, %v713_v7   ;;  %v533_v7 = vld [vmem:[%s9677_s1 + $0x328] sm:$0xff] }
  0x75   : > { %2793 = vmatmul.mubr.bf16.gmra.mxu0 %v6050_v38  ;;  %v709_v38 = vld [vmem:[%s9678_s2 + $0xa8] sm:$0xff] }
  0x76   : > { %3082 = vmatmul.mubr.bf16.gmra.mxu1 %v6052_v39  ;;  %2800 = vmatprep.mubr.bf16.mxu0 %v6059_v40  ;;  %v6101_v39 = vcombine.high %v505_v31, %v509_v32  ;;  %v740_v40 = vld [vmem:[%s9678_s2 + $0x1a0] sm:$0xff] }
  0x77   : > { %3089 = vmatprep.mubr.bf16.mxu1 %v6061_v42  ;;  %1034 = vperm.xlu0 %6580, %v744_v16   ;;  %v516_v42 = vld [vmem:[%s9677_s1 + $0x2a0] sm:$0xff]  ;;  %v6623_v16 = vld [vmem:[%s7063_s20 + $0x198] sm:$0xff]  }
  0x78   : > { %1039 = vperm.xlu1 %6581, %v745_v21   ;;  %v6107_v53 = vcombine.high %v512_v41, %v516_v42 }
  0x7b   : > { %864 = vperm.xlu0 %6580, %v710_v22  }
  0x7c   : > { %869 = vperm.xlu1 %6581, %v711_v26   ;;  %v536_v26 = vld [vmem:[%s9677_s1 + $0x340] sm:$0xff] }
  0x7d   : > { %2801 = vmatmul.mubr.bf16.gmra.mxu0 %v6058_v50  ;;  %v6616_v50 = vld [vmem:[%s7063_s20 + $0x130] sm:$0xff]  }
  0x7e   : > { %3090 = vmatmul.mubr.bf16.gmra.mxu1 %v6060_v51  ;;  %2808 = vmatprep.mubr.bf16.mxu0 %v6067_v52  ;;  %v6617_v51 = vld [vmem:[%s7063_s20 + $0x1b0] sm:$0xff]   ;;  %v6100_v52 = vcombine.low %v505_v31, %v509_v32  ;;  %v6627_v31 = vld [vmem:[%s7063_s20 + $0x188] sm:$0xff]  }
  0x7f   : > { %3097 = vmatprep.mubr.bf16.mxu1 %v6069_v54  ;;  %1024 = vperm.xlu0 %6580, %v742_v28   ;;  %v707_v54 = vld [vmem:[%s9678_s2 + $0x98] sm:$0xff]  ;;  %v537_v28 = vld [vmem:[%s9677_s1 + $0x348] sm:$0xff] }
  0x80   : > { %1029 = vperm.xlu1 %6581, %v743_v33   ;;  %3317 = vmatpush1.bf16.msra.mxu0 %v6616_v50 }
  0x81   : > { %3606 = vmatpush1.bf16.msra.mxu1 %v6617_v51  ;;  %3318 = vmatprep.subr.bf16.mxu0 %v9684_v4  ;;  %v6141_v51 = vcombine.high %v545_v43, %v549_v45 }
  0x82   : > { %3607 = vmatprep.subr.bf16.mxu1 %v9684_v4 }
  0x83   : > { %854 = vperm.xlu0 %6580, %v708_v34  }
  0x84   : > { %859 = vperm.xlu1 %6581, %v709_v38   ;;  %3319 = vmatpush1.bf16.msra.mxu0 %v6618_v59  ;;  %v6628_v38 = vld [vmem:[%s7063_s20 + $0x100] sm:$0xff]   ;;  %v557_v59 = vld [vmem:[%s9677_s1 + $0x3e8] sm:$0xff] }
  0x85   : > { %2809 = vmatmul.mubr.bf16.gmra.mxu0 %v6066_v62  ;;  %v525_v62 = vld [vmem:[%s9677_s1 + $0x2e8] sm:$0xff]  ;;  %3608 = vmatpush1.bf16.msra.mxu1 %v6619_v60 }
  0x86   : > { %3098 = vmatmul.mubr.bf16.gmra.mxu1 %v6068_v63  ;;  %2816 = vmatprep.mubr.bf16.mxu0 %v6075_v0  ;;  %v739_v63 = vld [vmem:[%s9678_s2 + $0x198] sm:$0xff]  ;;  %v6106_v0 = vcombine.low %v512_v41, %v516_v42  ;;  %v6117_v14 = vcombine.high %v521_v61, %v525_v62  ;;  %v6116_v19 = vcombine.low %v521_v61, %v525_v62  ;;  %v544_v41 = vld [vmem:[%s9677_s1 + $0x380] sm:$0xff]  ;;  %v6634_v60 = vld [vmem:[%s7063_s20 + $0x168] sm:$0xff]  }
  0x87   : > { %3105 = vmatprep.mubr.bf16.mxu1 %v6077_v9  ;;  %1014 = vperm.xlu0 %6580, %v740_v40   ;;  %v548_v42 = vld [vmem:[%s9677_s1 + $0x3a0] sm:$0xff]  ;;  %v6635_v61 = vld [vmem:[%s7063_s20 + $0x1e8] sm:$0xff]  }
  0x88   : > { %1019 = vperm.xlu1 %6581, %v741_v47   ;;  %3320 = vmatprep.subr.bf16.mxu0 %v9684_v4  ;;  %v6631_v47 = vld [vmem:[%s7063_s20 + $0x1f8] sm:$0xff]   ;;  %v6139_v50 = vcombine.high %v544_v41, %v548_v42  ;;  %v6138_v62 = vcombine.low %v544_v41, %v548_v42  ;;  %v6644_v42 = vld [vmem:[%s7063_s20 + $0x140] sm:$0xff]  }
  0x89   : > { %3609 = vmatprep.subr.bf16.mxu1 %v9684_v4  ;;  %3321 = vmatpush1.bf16.msra.mxu0 %v6620_v13  ;;  %v6637_v13 = vld [vmem:[%s7063_s20 + $0x1e0] sm:$0xff]  }
  0x8a   : > { %3610 = vmatpush1.bf16.msra.mxu1 %v6621_v15  ;;  %3322 = vmatprep.subr.bf16.mxu0 %v9684_v4  ;;  %v564_v15 = vld [vmem:[%s9677_s1 + $0x420] sm:$0xff] }
  0x8b   : > { %844 = vperm.xlu0 %6580, %v706_v48   ;;  %3611 = vmatprep.subr.bf16.mxu1 %v9684_v4 }
  0x8c   : > { %849 = vperm.xlu1 %6581, %v707_v54   ;;  %v6633_v54 = vld [vmem:[%s7063_s20 + $0x1f0] sm:$0xff]  }
  0x8d   : > { %2817 = vmatmul.mubr.bf16.gmra.mxu0 %v6074_v2  ;;  %v532_v2 = vld [vmem:[%s9677_s1 + $0x320] sm:$0xff] }
  0x8e   : > { %3106 = vmatmul.mubr.bf16.gmra.mxu1 %v6076_v3  ;;  %2824 = vmatprep.mubr.bf16.mxu0 %v6083_v5  ;;  %v529_v5 = vld [vmem:[%s9677_s1 + $0x308] sm:$0xff]  ;;  %v6123_v20 = vcombine.high %v528_v1, %v532_v2  ;;  %v6122_v32 = vcombine.low %v528_v1, %v532_v2 }
  0x8f   : > { %3113 = vmatprep.mubr.bf16.mxu1 %v6085_v8  ;;  %1004 = vperm.xlu0 %6580, %v738_v56   ;;  %v6622_v8 = vld [vmem:[%s7063_s20 + $0x118] sm:$0xff]   ;;  %v6125_v21 = vcombine.high %v529_v5, %v533_v7  ;;  %v6124_v34 = vcombine.low %v529_v5, %v533_v7  ;;  %v552_v56 = vld [vmem:[%s9677_s1 + $0x3c0] sm:$0xff]  ;;  %v561_v1 = vld [vmem:[%s9677_s1 + $0x408] sm:$0xff] }
  0x90   : > { %1009 = vperm.xlu1 %6581, %v739_v63   ;;  %3323 = vmatpush1.bf16.msra.mxu0 %v6622_v8  ;;  %v565_v5 = vld [vmem:[%s9677_s1 + $0x428] sm:$0xff]  ;;  %v6638_v7 = vld [vmem:[%s7063_s20 + $0x158] sm:$0xff]  }
  0x91   : > { %3612 = vmatpush1.bf16.msra.mxu1 %v6623_v16  ;;  %3324 = vmatprep.subr.bf16.mxu0 %v9684_v4  ;;  %v6639_v8 = vld [vmem:[%s7063_s20 + $0x1d8] sm:$0xff]   ;;  %v6146_v16 = vcombine.low %v552_v56, %v556_v57 }
  0x92   : > { %3613 = vmatprep.subr.bf16.mxu1 %v9684_v4 }
  0x93   : > { %834 = vperm.xlu0 %6580, %v704_v6   ;;  %v6147_v6 = vcombine.high %v552_v56, %v556_v57  ;;  %v736_v56 = vld [vmem:[%s9678_s2 + $0x180] sm:$0xff] }
  0x94   : > { %839 = vperm.xlu1 %6581, %v705_v12   ;;  %v6636_v12 = vld [vmem:[%s7063_s20 + $0x160] sm:$0xff]  }
  0x95   : > { %2825 = vmatmul.mubr.bf16.gmra.mxu0 %v6082_v23  ;;  %v7450_v9 = vpop.permute.xlu0 %824  ;;  %v6624_v23 = vld [vmem:[%s7063_s20 + $0x110] sm:$0xff]  }
  0x96   : > { %3114 = vmatmul.mubr.bf16.gmra.mxu1 %v6084_v24  ;;  %2832 = vmatprep.mubr.bf16.mxu0 %v6091_v25  ;;  %v6625_v24 = vld [vmem:[%s7063_s20 + $0x190] sm:$0xff]  }
  0x97   : > { %3121 = vmatprep.mubr.bf16.mxu1 %v6093_v27  ;;  %v7466_v3 = vpop.permute.xlu1 %984  ;;  %v540_v27 = vld [vmem:[%s9677_s1 + $0x360] sm:$0xff]  ;;  %3325 = vmatpush1.bf16.msra.mxu0 %v6624_v23  ;;  %v6640_v23 = vld [vmem:[%s7063_s20 + $0x150] sm:$0xff]  }
  0x98   : > { %3614 = vmatpush1.bf16.msra.mxu1 %v6625_v24  ;;  %3326 = vmatprep.subr.bf16.mxu0 %v9684_v4  ;;  %v6130_v48 = vcombine.low %v536_v26, %v540_v27  ;;  %v6641_v24 = vld [vmem:[%s7063_s20 + $0x1d0] sm:$0xff]  }
  0x99   : > { %v7476_v17 = vpop.permute.xlu0 %829  ;;  %3615 = vmatprep.subr.bf16.mxu1 %v9684_v4  ;;  %994 = vperm.xlu0 %6580, %v736_v56  }
  0x9b   : > { %v7480_v22 = vpop.permute.xlu1 %989  ;;  %3327 = vmatpush1.bf16.msra.mxu0 %v6626_v30 }
  0x9c   : > { %3616 = vmatpush1.bf16.msra.mxu1 %v6627_v31  ;;  %3328 = vmatprep.subr.bf16.mxu0 %v9684_v4  ;;  %v573_v31 = vld [vmem:[%s9677_s1 + $0x468] sm:$0xff] }
  0x9d   : > { %2833 = vmatmul.mubr.bf16.gmra.mxu0 %v6090_v35  ;;  %v7484_v25 = vpop.permute.xlu0 %814  ;;  %v6131_v35 = vcombine.high %v536_v26, %v540_v27  ;;  %3617 = vmatprep.subr.bf16.mxu1 %v9684_v4  ;;  %v568_v27 = vld [vmem:[%s9677_s1 + $0x440] sm:$0xff] }
  0x9e   : > { %3122 = vmatmul.mubr.bf16.gmra.mxu1 %v6092_v36  ;;  %2840 = vmatprep.mubr.bf16.mxu0 %v6099_v37  ;;  %v6133_v36 = vcombine.high %v537_v28, %v541_v29 }
  0x9f   : > { %3129 = vmatprep.mubr.bf16.mxu1 %v6101_v39  ;;  %v7502_v33 = vpop.permute.xlu1 %819  ;;  %v6629_v39 = vld [vmem:[%s7063_s20 + $0x180] sm:$0xff]   ;;  %3329 = vmatpush1.bf16.msra.mxu0 %v6628_v38 }
  0xa0   : > { %3618 = vmatpush1.bf16.msra.mxu1 %v6629_v39  ;;  %3330 = vmatprep.subr.bf16.mxu0 %v9684_v4 }
  0xa1   : > { %v7506_v37 = vpop.permute.xlu0 %974  ;;  %3619 = vmatprep.subr.bf16.mxu1 %v9684_v4 }
  0xa3   : > { %v7510_v40 = vpop.permute.xlu1 %979  ;;  %3331 = vmatpush2.bf16.msra.mxu0 %v6630_v46  ;;  %v576_v46 = vld [vmem:[%s9677_s1 + $0x480] sm:$0xff] }
  0xa4   : > { %3620 = vmatpush2.bf16.msra.mxu1 %v6631_v47  ;;  %3332 = vmatprep.subr.bf16.mxu0 %v9684_v4  ;;  %v580_v47 = vld [vmem:[%s9677_s1 + $0x4a0] sm:$0xff] }
  0xa5   : > { %2841 = vmatmul.mubr.bf16.gmra.mxu0 %v6098_v49  ;;  %v7522_v44 = vpop.permute.xlu0 %804  ;;  %v6132_v49 = vcombine.low %v537_v28, %v541_v29  ;;  %3621 = vmatprep.subr.bf16.mxu1 %v9684_v4  ;;  %v572_v28 = vld [vmem:[%s9677_s1 + $0x460] sm:$0xff]  ;;  %v569_v29 = vld [vmem:[%s9677_s1 + $0x448] sm:$0xff] }
  0xa6   : > { %3130 = vmatmul.mubr.bf16.gmra.mxu1 %v6100_v52  ;;  %2848 = vmatprep.mubr.bf16.mxu0 %v6107_v53  ;;  %v6632_v53 = vld [vmem:[%s7063_s20 + $0x170] sm:$0xff]   ;;  %v6163_v38 = vcombine.high %v568_v27, %v572_v28  ;;  %v6165_v39 = vcombine.high %v569_v29, %v573_v31 }
  0xa7   : > { %3137 = vmatprep.mubr.bf16.mxu1 %v6109_v55  ;;  %v7532_v52 = vpop.permute.xlu1 %809  ;;  %3333 = vmatpush2.bf16.msra.mxu0 %v6632_v53  ;;  %v6164_v53 = vcombine.low %v569_v29, %v573_v31  ;;  %v600_v29 = vld [vmem:[%s9677_s1 + $0x540] sm:$0xff] }
  0xa8   : > { %3622 = vmatpush2.bf16.msra.mxu1 %v6633_v54  ;;  %3334 = vmatprep.subr.bf16.mxu0 %v9684_v4  ;;  %v6171_v54 = vcombine.high %v576_v46, %v580_v47  ;;  %v604_v31 = vld [vmem:[%s9677_s1 + $0x560] sm:$0xff] }
  0xa9   : > { %v7536_v55 = vpop.permute.xlu0 %964  ;;  %3623 = vmatprep.subr.bf16.mxu1 %v9684_v4 }
  0xab   : > { %v7554_v63 = vpop.permute.xlu1 %969  ;;  %3335 = vmatpush2.bf16.msra.mxu0 %v6634_v60  ;;  %v584_v60 = vld [vmem:[%s9677_s1 + $0x4c0] sm:$0xff] }
  0xac   : > { %3624 = vmatpush2.bf16.msra.mxu1 %v6635_v61  ;;  %3336 = vmatprep.subr.bf16.mxu0 %v9684_v4  ;;  %v588_v61 = vld [vmem:[%s9677_s1 + $0x4e0] sm:$0xff] }
  0xad   : > { %2849 = vmatmul.mubr.bf16.gmra.mxu0 %v6106_v0  ;;  %v6140_v0 = vcombine.low %v545_v43, %v549_v45  ;;  %3625 = vmatprep.subr.bf16.mxu1 %v9684_v4  ;;  %v6645_v43 = vld [vmem:[%s7063_s20 + $0x1c0] sm:$0xff]  }
  0xae   : > { %3138 = vmatmul.mubr.bf16.gmra.mxu1 %v6108_v10  ;;  %2856 = vmatprep.mubr.bf16.mxu0 %v6115_v11  ;;  %v6149_v10 = vcombine.high %v553_v58, %v557_v59  ;;  %v7558_v11 = vpop.permute.xlu0 %794 }
  0xaf   : > { %3145 = vmatprep.mubr.bf16.mxu1 %v6117_v14  ;;  %v560_v14 = vld [vmem:[%s9677_s1 + $0x400] sm:$0xff]  ;;  %v7572_v2 = vpop.permute.xlu1 %799  ;;  %3337 = vmatpush2.bf16.msra.mxu0 %v6636_v12 }
  0xb0   : > { %3626 = vmatpush2.bf16.msra.mxu1 %v6637_v13  ;;  %3338 = vmatprep.subr.bf16.mxu0 %v9684_v4 }
  0xb1   : > { %3627 = vmatprep.subr.bf16.mxu1 %v9684_v4 }
  0xb3   : > { %3339 = vmatpush2.bf16.msra.mxu0 %v6638_v7  ;;  %v7586_v26 = vpop.permute.xlu1 %959  ;;  %v596_v7 = vld [vmem:[%s9677_s1 + $0x520] sm:$0xff] }
  0xb4   : > { %3628 = vmatpush2.bf16.msra.mxu1 %v6639_v8  ;;  %3340 = vmatprep.subr.bf16.mxu0 %v9684_v4 }
  0xb5   : > { %2857 = vmatmul.mubr.bf16.gmra.mxu0 %v6114_v18  ;;  %v7580_v18 = vpop.permute.xlu0 %954  ;;  %3629 = vmatprep.subr.bf16.mxu1 %v9684_v4 }
  0xb6   : > { %3146 = vmatmul.mubr.bf16.gmra.mxu1 %v6116_v19  ;;  %2864 = vmatprep.mubr.bf16.mxu0 %v6123_v20  ;;  %v6148_v19 = vcombine.low %v553_v58, %v557_v59  ;;  %v6155_v20 = vcombine.high %v560_v14, %v564_v15  ;;  %v737_v59 = vld [vmem:[%s9678_s2 + $0x188] sm:$0xff] }
  0xb7   : > { %3153 = vmatprep.mubr.bf16.mxu1 %v6125_v21  ;;  %v6157_v21 = vcombine.high %v561_v1, %v565_v5  ;;  %3341 = vmatpush2.bf16.msra.mxu0 %v6640_v23  ;;  %v7608_v41 = vpop.permute.xlu1 %789 }
  0xb8   : > { %3630 = vmatpush2.bf16.msra.mxu1 %v6641_v24  ;;  %3342 = vmatprep.subr.bf16.mxu0 %v9684_v4 }
  0xb9   : > { %v7598_v30 = vpop.permute.xlu0 %784  ;;  %3631 = vmatprep.subr.bf16.mxu1 %v9684_v4  ;;  %999 = vperm.xlu1 %6581, %v737_v59  }
  0xbd   : > { %2865 = vmatmul.mubr.bf16.gmra.mxu0 %v6122_v32  ;;  %v6642_v32 = vld [vmem:[%s7063_s20 + $0x148] sm:$0xff]   ;;  %v7612_v45 = vpop.permute.xlu0 %944 }
  0xbe   : > { %3154 = vmatmul.mubr.bf16.gmra.mxu1 %v6124_v34  ;;  %2872 = vmatprep.mubr.bf16.mxu0 %v6131_v35  ;;  %v6643_v34 = vld [vmem:[%s7063_s20 + $0x1c8] sm:$0xff]   ;;  %v6154_v35 = vcombine.low %v560_v14, %v564_v15  ;;  %v6179_v14 = vcombine.high %v584_v60, %v588_v61  ;;  %s5949_s20 = sshll.u32 %s294_s18, 4  ;;  %s5950_s20 = int_to_ptr.vmem [resolvable:$true] %s5949_s20 }
  0xbf   : > { %3161 = vmatprep.mubr.bf16.mxu1 %v6133_v36  ;;  %v6156_v36 = vcombine.low %v561_v1, %v565_v5  ;;  %3343 = vmatpush2.bf16.msra.mxu0 %v6642_v32  ;;  %v592_v5 = vld [vmem:[%s9677_s1 + $0x500] sm:$0xff]  ;;  %v601_v32 = vld [vmem:[%s9677_s1 + $0x548] sm:$0xff]  ;;  %s6838_s24 = scalar_lea.vmem %s5950_s20, 16  ;;  %p6845_p1 = scmp.lt.s32.totalorder %s5950_s20, %s6843_s25 }
  0xc0   : > { %3632 = vmatpush2.bf16.msra.mxu1 %v6643_v34  ;;  %3344 = vmatprep.subr.bf16.mxu0 %v9684_v4  ;;  %v6187_v23 = vcombine.high %v592_v5, %v596_v7  ;;  %v605_v34 = vld [vmem:[%s9677_s1 + $0x568] sm:$0xff]  ;;  %p6839_p12 = scmp.ne.s32.totalorder %s5950_s20, %s6838_s24  ;;  %p6846_p2 = scmp.lt.s32.totalorder %s6844_s6, %s6838_s24 }
  0xc1   : > { %3633 = vmatprep.subr.bf16.mxu1 %v9684_v4  ;;  %v7635_v58 = vpop.permute.xlu0 %774  ;;  %v6196_v56 = vcombine.low %v601_v32, %v605_v34 }
  0xc2   : > { %p6840_p13 = pnand %p6839_p12, %p7002_p4  ;;  %p6847_p3 = por %p6846_p2, %p6845_p1 }
  0xc3   : > { %3345 = vmatpush2.bf16.msra.mxu0 %v6644_v42  ;;  %v6197_v42 = vcombine.high %v601_v32, %v605_v34 }
  0xc4   : > { %3634 = vmatpush2.bf16.msra.mxu1 %v6645_v43  ;;  %5140 = vmatprep.subr.bf16.mxu0 %v9684_v4  ;;  %p6841_p0 = pneg %p6840_p13 }
  0xc5   : > { %2873 = vmatmul.mubr.bf16.gmra.mxu0 %v6130_v48  ;;  %v577_v48 = vld [vmem:[%s9677_s1 + $0x488] sm:$0xff]  ;;  %5429 = vmatprep.subr.bf16.mxu1 %v9684_v4  ;;  %v7654_v12 = vpop.permute.xlu0 %934 }
  0xc6   : > { %3162 = vmatmul.mubr.bf16.gmra.mxu1 %v6132_v49  ;;  %2880 = vmatprep.mubr.bf16.mxu0 %v6139_v50  ;;  %v581_v49 = vld [vmem:[%s9677_s1 + $0x4a8] sm:$0xff]  ;;  %v6162_v50 = vcombine.low %v568_v27, %v572_v28  ;;  %p6848_p5 = pnand %p6847_p3, %p6841_p0 }
  0xc7   : > { %3169 = vmatprep.mubr.bf16.mxu1 %v6141_v51  ;;  %v7628_v51 = vpop.permute.xlu1 %949  ;;  %v6173_v57 = vcombine.high %v577_v48, %v581_v49  ;;  %v6172_v13 = vcombine.low %v577_v48, %v581_v49  ;;  %v609_v49 = vld [vmem:[%s9677_s1 + $0x588] sm:$0xff] }
  0xc9   : > { %v7664_v8 = vpop.permute.xlu0 %764 }
  0xcd   : > { %2881 = vmatmul.mubr.bf16.gmra.mxu0 %v6138_v62  ;;  %v7646_v62 = vpop.permute.xlu1 %779  ;;  %v7674_v28 = vpop.permute.xlu0 %924 }
  0xce   : > { %3170 = vmatmul.mubr.bf16.gmra.mxu1 %v6140_v0  ;;  %2888 = vmatprep.mubr.bf16.mxu0 %v6147_v6  ;;  %v585_v0 = vld [vmem:[%s9677_s1 + $0x4c8] sm:$0xff] }
  0xcf   : > { %3177 = vmatprep.mubr.bf16.mxu1 %v6149_v10  ;;  %v589_v6 = vld [vmem:[%s9677_s1 + $0x4e8] sm:$0xff]  ;;  %v6170_v10 = vcombine.low %v576_v46, %v580_v47  ;;  %v608_v46 = vld [vmem:[%s9677_s1 + $0x580] sm:$0xff] }
  0xd0   : > { %v6181_v15 = vcombine.high %v585_v0, %v589_v6  ;;  %v612_v47 = vld [vmem:[%s9677_s1 + $0x5a0] sm:$0xff] }
  0xd1   : > { %v7656_v1 = vpop.permute.xlu1 %939  ;;  %v755_v43 = vpop.permute.xlu0 %754 }
  0xd5   : > { %2889 = vmatmul.mubr.bf16.gmra.mxu0 %v6146_v16  ;;  %v593_v16 = vld [vmem:[%s9677_s1 + $0x508] sm:$0xff]  ;;  %v7672_v27 = vpop.permute.xlu1 %769 }
  0xd6   : > { %3178 = vmatmul.mubr.bf16.gmra.mxu1 %v6148_v19  ;;  %2896 = vmatprep.mubr.bf16.mxu0 %v6155_v20  ;;  %v597_v19 = vld [vmem:[%s9677_s1 + $0x528] sm:$0xff]  ;;  %v6178_v20 = vcombine.low %v584_v60, %v588_v61  ;;  %v616_v61 = vld [vmem:[%s9677_s1 + $0x5c0] sm:$0xff] }
  0xd7   : > { %3185 = vmatprep.mubr.bf16.mxu1 %v6157_v21  ;;  %v6180_v21 = vcombine.low %v585_v0, %v589_v6  ;;  %v6189_v24 = vcombine.high %v593_v16, %v597_v19  ;;  %v620_v0 = vld [vmem:[%s9677_s1 + $0x5e0] sm:$0xff] }
  0xdd   : > { %2897 = vmatmul.mubr.bf16.gmra.mxu0 %v6154_v35  ;;  %v6186_v35 = vcombine.low %v592_v5, %v596_v7  ;;  %v6211_v5 = vcombine.high %v616_v61, %v620_v0 }
  0xde   : > { %3186 = vmatmul.mubr.bf16.gmra.mxu1 %v6156_v36  ;;  %2904 = vmatprep.mubr.bf16.mxu0 %v6163_v38  ;;  %v7688_v36 = vpop.permute.xlu1 %929  ;;  %v6188_v38 = vcombine.low %v593_v16, %v597_v19 }
  0xdf   : > { %3193 = vmatprep.mubr.bf16.mxu1 %v6165_v39  ;;  %v6195_v39 = vcombine.high %v600_v29, %v604_v31 }
  0xe2   : > { %v7696_v48 = vpop.permute.xlu1 %759 }
  0xe5   : > { %2905 = vmatmul.mubr.bf16.gmra.mxu0 %v6162_v50  ;;  %v613_v50 = vld [vmem:[%s9677_s1 + $0x5a8] sm:$0xff] }
  0xe6   : > { %3194 = vmatmul.mubr.bf16.gmra.mxu1 %v6164_v53  ;;  %2912 = vmatprep.mubr.bf16.mxu0 %v6171_v54  ;;  %v6194_v53 = vcombine.low %v600_v29, %v604_v31  ;;  %v7704_v54 = vpop.permute.xlu0 %914  ;;  %v6205_v59 = vcombine.high %v609_v49, %v613_v50  ;;  %v7706_v60 = vpop.permute.xlu1 %919  ;;  %v6210_v29 = vcombine.low %v616_v61, %v620_v0 }
  0xe7   : > { %3201 = vmatprep.mubr.bf16.mxu1 %v6173_v57  ;;  %v6203_v57 = vcombine.high %v608_v46, %v612_v47 }
  0xea   : > { %v7714_v6 = vpop.permute.xlu0 %904  ;;  %v7722_v16 = vpop.permute.xlu1 %909 }
  0xed   : > { %2913 = vmatmul.mubr.bf16.gmra.mxu0 %v6170_v10  ;;  %v617_v10 = vld [vmem:[%s9677_s1 + $0x5c8] sm:$0xff] }
  0xee   : > { %3202 = vmatmul.mubr.bf16.gmra.mxu1 %v6172_v13  ;;  %2920 = vmatprep.mubr.bf16.mxu0 %v6179_v14  ;;  %v621_v13 = vld [vmem:[%s9677_s1 + $0x5e8] sm:$0xff]  ;;  %v6202_v14 = vcombine.low %v608_v46, %v612_v47  ;;  %v7724_v19 = vpop.permute.xlu0 %1064  ;;  %v7738_v31 = vpop.permute.xlu1 %1069 }
  0xef   : > { %3209 = vmatprep.mubr.bf16.mxu1 %v6181_v15  ;;  %v6204_v15 = vcombine.low %v609_v49, %v613_v50  ;;  %v6213_v7 = vcombine.high %v617_v10, %v621_v13  ;;  %9689 = vst [vmem:[#allocation6_spill] sm:$0xff] %v7738_v31  ;;  %v6212_v32 = vcombine.low %v617_v10, %v621_v13  ;;  %v633_v47 = vld [vmem:[%s9677_s1 + $0x648] sm:$0xff] }
  0xf0   : > { %v637_v49 = vld [vmem:[%s9677_s1 + $0x668] sm:$0xff] }
  0xf2   : > { %v7748_v46 = vpop.permute.xlu1 %899 }
  0xf5   : > { %2921 = vmatmul.mubr.bf16.gmra.mxu0 %v6178_v20  ;;  %v624_v20 = vld [vmem:[%s9677_s1 + $0x600] sm:$0xff] }
  0xf6   : > { %3210 = vmatmul.mubr.bf16.gmra.mxu1 %v6180_v21  ;;  %2928 = vmatprep.mubr.bf16.mxu0 %v6187_v23  ;;  %v628_v21 = vld [vmem:[%s9677_s1 + $0x620] sm:$0xff]  ;;  %v625_v23 = vld [vmem:[%s9677_s1 + $0x608] sm:$0xff]  ;;  %v7758_v0 = vpop.permute.xlu1 %1059 }
  0xf7   : > { %3217 = vmatprep.mubr.bf16.mxu1 %v6189_v24  ;;  %v629_v24 = vld [vmem:[%s9677_s1 + $0x628] sm:$0xff]  ;;  %v6219_v34 = vcombine.high %v624_v20, %v628_v21  ;;  %v6218_v50 = vcombine.low %v624_v20, %v628_v21 }
  0xfd   : > { %2929 = vmatmul.mubr.bf16.gmra.mxu0 %v6186_v35  ;;  %v6221_v35 = vcombine.high %v625_v23, %v629_v24 }
  0xfe   : > { %3218 = vmatmul.mubr.bf16.gmra.mxu1 %v6188_v38  ;;  %2936 = vmatprep.mubr.bf16.mxu0 %v6195_v39  ;;  %v7740_v38 = vpop.permute.xlu0 %894  ;;  %v632_v39 = vld [vmem:[%s9677_s1 + $0x640] sm:$0xff] }
  0xff   : > { %3225 = vmatprep.mubr.bf16.mxu1 %v6197_v42  ;;  %v636_v42 = vld [vmem:[%s9677_s1 + $0x660] sm:$0xff] }
 0x105   : > { %2937 = vmatmul.mubr.bf16.gmra.mxu0 %v6194_v53  ;;  %v7756_v53 = vpop.permute.xlu0 %1054 }
 0x106   : > { %3226 = vmatmul.mubr.bf16.gmra.mxu1 %v6196_v56  ;;  %2944 = vmatprep.mubr.bf16.mxu0 %v6203_v57  ;;  %v6220_v56 = vcombine.low %v625_v23, %v629_v24  ;;  %v6227_v57 = vcombine.high %v632_v39, %v636_v42  ;;  %v645_v23 = vld [vmem:[%s9677_s1 + $0x6a8] sm:$0xff] }
 0x107   : > { %3233 = vmatprep.mubr.bf16.mxu1 %v6205_v59  ;;  %v6229_v59 = vcombine.high %v633_v47, %v637_v49 }
 0x10d   : > { %2945 = vmatmul.mubr.bf16.gmra.mxu0 %v6202_v14 }
 0x10e   : > { %3234 = vmatmul.mubr.bf16.gmra.mxu1 %v6204_v15  ;;  %2952 = vmatprep.mubr.bf16.mxu0 %v6211_v5  ;;  %v640_v15 = vld [vmem:[%s9677_s1 + $0x680] sm:$0xff] }
 0x10f   : > { %3241 = vmatprep.mubr.bf16.mxu1 %v6213_v7  ;;  %v644_v5 = vld [vmem:[%s9677_s1 + $0x6a0] sm:$0xff]  ;;  %v7766_v7 = vpop.permute.xlu0 %884 }
 0x115   : > { %2953 = vmatmul.mubr.bf16.gmra.mxu0 %v6210_v29  ;;  %v6226_v29 = vcombine.low %v632_v39, %v636_v42  ;;  %v648_v39 = vld [vmem:[%s9677_s1 + $0x6c0] sm:$0xff] }
 0x116   : > { %3242 = vmatmul.mubr.bf16.gmra.mxu1 %v6212_v32  ;;  %2960 = vmatprep.mubr.bf16.mxu0 %v6219_v34  ;;  %v652_v42 = vld [vmem:[%s9677_s1 + $0x6e0] sm:$0xff] }
 0x117   : > { %3249 = vmatprep.mubr.bf16.mxu1 %v6221_v35  ;;  %v6228_v35 = vcombine.low %v633_v47, %v637_v49 }
 0x11d   : > { %v2770_v61 = vpop.f32.mrf.mxu0  ;;  %2961 = vmatmul.mubr.bf16.gmra.mxu0 %v6218_v50  ;;  %v6235_v50 = vcombine.high %v640_v15, %v644_v5 }
 0x11e   : > { %v2771_v10 = vadd.f32 %v2770_v61, %v755_v43  ;;  %v3059_v13 = vpop.f32.mrf.mxu1  ;;  %3250 = vmatmul.mubr.bf16.gmra.mxu1 %v6220_v56  ;;  %2968 = vmatprep.mubr.bf16.mxu0 %v6227_v57  ;;  %v641_v43 = vld [vmem:[%s9677_s1 + $0x688] sm:$0xff] }
 0x11f   : > { %v2772_v14 = vpop.f32.mrf.mxu0  ;;  %3257 = vmatprep.mubr.bf16.mxu1 %v6229_v59  ;;  %v6237_v57 = vcombine.high %v641_v43, %v645_v23  ;;  %v7777_v59 = vpop.permute.xlu1 %889 }
 0x120   : > { %v7768_v20 = vadd.f32 %v3059_v13, %v2771_v10  ;;  %v3061_v21 = vpop.f32.mrf.mxu1  ;;  %v7781_v14 = vpop.permute.xlu0 %1044 }
 0x121   : > { %v2773_v24 = vpop.f32.mrf.mxu0 }
 0x122   : > { %9690 = vst [vmem:[#allocation7_spill] sm:$0xff] %v7768_v20  ;;  %v2774_v32 = vadd.f32 %v2773_v24, %v7696_v48  ;;  %v3062_v34 = vpop.f32.mrf.mxu1  ;;  %v653_v24 = vld [vmem:[%s9677_s1 + $0x6e8] sm:$0xff] }
 0x123   : > { %v2775_v56 = vpop.f32.mrf.mxu0 }
 0x124   : > { %v7779_v61 = vadd.f32 %v3062_v34, %v2774_v32  ;;  %v3064_v10 = vpop.f32.mrf.mxu1  ;;  %v6234_v32 = vcombine.low %v640_v15, %v644_v5  ;;  %v7798_v34 = vpop.permute.xlu1 %1049  ;;  %v6236_v56 = vcombine.low %v641_v43, %v645_v23  ;;  %v660_v5 = vld [vmem:[%s9677_s1 + $0x720] sm:$0xff] }
 0x125   : > { %v2778_v13 = vpop.f32.mrf.mxu0  ;;  %2969 = vmatmul.mubr.bf16.gmra.mxu0 %v6226_v29 }
 0x126   : > { %9691 = vst [vmem:[#allocation8_spill] sm:$0xff] %v7779_v61  ;;  %v2779_v21 = vadd.f32 %v2778_v13, %v7664_v8  ;;  %v3067_v4 = vpop.f32.mrf.mxu1  ;;  %3258 = vmatmul.mubr.bf16.gmra.mxu1 %v6228_v35  ;;  %2976 = vmatprep.mubr.bf16.mxu0 %v6235_v50  ;;  %v649_v8 = vld [vmem:[%s9677_s1 + $0x6c8] sm:$0xff]  ;;  %v7801_v13 = vpop.permute.xlu0 %874 }
 0x127   : > { %v2780_v48 = vpop.f32.mrf.mxu0  ;;  %3265 = vmatprep.mubr.bf16.mxu1 %v6237_v57  ;;  %v6243_v57 = vcombine.high %v648_v39, %v652_v42  ;;  %v6245_v10 = vcombine.high %v649_v8, %v653_v24 }
 0x128   : > { %v7790_v47 = vadd.f32 %v3067_v4, %v2779_v21  ;;  %v3069_v49 = vpop.f32.mrf.mxu1  ;;  %v7812_v43 = vpop.permute.xlu1 %879 }
 0x129   : > { %v2781_v29 = vpop.f32.mrf.mxu0 }
 0x12a   : > { %9692 = vst [vmem:[#allocation9_spill] sm:$0xff] %v7790_v47  ;;  %v2782_v35 = vadd.f32 %v2781_v29, %v7672_v27  ;;  %v3070_v50 = vpop.f32.mrf.mxu1  ;;  %v656_v27 = vld [vmem:[%s9677_s1 + $0x700] sm:$0xff] }
 0x12b   : > { %v2783_v4 = vpop.f32.mrf.mxu0 }
 0x12c   : > { %v7803_v21 = vadd.f32 %v3070_v50, %v2782_v35  ;;  %v3072_v48 = vpop.f32.mrf.mxu1  ;;  %v6242_v50 = vcombine.low %v648_v39, %v652_v42  ;;  %v668_v42 = vld [vmem:[%s9677_s1 + $0x760] sm:$0xff] }
 0x12d   : > { %v2786_v49 = vpop.f32.mrf.mxu0  ;;  %2977 = vmatmul.mubr.bf16.gmra.mxu0 %v6234_v32  ;;  %v661_v32 = vld [vmem:[%s9677_s1 + $0x728] sm:$0xff]  ;;  %v6251_v48 = vcombine.high %v656_v27, %v660_v5 }
 0x12e   : > { %9693 = vst [vmem:[#allocation10_spill] sm:$0xff] %v7803_v21  ;;  %v2787_v47 = vadd.f32 %v2786_v49, %v7635_v58  ;;  %v3075_v61 = vpop.f32.mrf.mxu1  ;;  %3266 = vmatmul.mubr.bf16.gmra.mxu1 %v6236_v56  ;;  %2984 = vmatprep.mubr.bf16.mxu0 %v6243_v57  ;;  %v657_v58 = vld [vmem:[%s9677_s1 + $0x708] sm:$0xff]  ;;  %v7822_v56 = vpop.permute.xlu0 %1034 }
 0x12f   : > { %v2788_v15 = vpop.f32.mrf.mxu0  ;;  %3273 = vmatprep.mubr.bf16.mxu1 %v6245_v10  ;;  %v6244_v10 = vcombine.low %v649_v8, %v653_v24 }
 0x130   : > { %v7814_v23 = vadd.f32 %v3075_v61, %v2787_v47  ;;  %v3077_v29 = vpop.f32.mrf.mxu1  ;;  %v6253_v47 = vcombine.high %v657_v58, %v661_v32 }
 0x131   : > { %v2789_v35 = vpop.f32.mrf.mxu0 }
 0x132   : > { %9694 = vst [vmem:[#allocation11_spill] sm:$0xff] %v7814_v23  ;;  %v2790_v57 = vadd.f32 %v2789_v35, %v7646_v62  ;;  %v3078_v4 = vpop.f32.mrf.mxu1  ;;  %v7827_v23 = vpop.permute.xlu1 %1039  ;;  %v664_v62 = vld [vmem:[%s9677_s1 + $0x740] sm:$0xff] }
 0x133   : > { %v2791_v61 = vpop.f32.mrf.mxu0  ;;  %v7836_v8 = vpop.permute.xlu0 %864 }
 0x134   : > { %v7825_v49 = vadd.f32 %v3078_v4, %v2790_v57  ;;  %v3080_v15 = vpop.f32.mrf.mxu1  ;;  %v6250_v4 = vcombine.low %v656_v27, %v660_v5  ;;  %v6252_v61 = vcombine.low %v657_v58, %v661_v32  ;;  %v4147_v58 = vld [vmem:[%s9680_s4 + $0xf8] sm:$0xff]  ;;  %v4130_v32 = vld [vmem:[%s9680_s4 + $0x70] sm:$0xff] }
 0x135   : > { %v2794_v29 = vpop.f32.mrf.mxu0  ;;  %2985 = vmatmul.mubr.bf16.gmra.mxu0 %v6242_v50  ;;  %v669_v50 = vld [vmem:[%s9677_s1 + $0x768] sm:$0xff]  ;;  %4337 = vperm.xlu1 %6581, %v4147_v58  }
 0x136   : > { %9695 = vst [vmem:[#allocation12_spill] sm:$0xff] %v7825_v49  ;;  %v2795_v21 = vadd.f32 %v2794_v29, %v7598_v30  ;;  %v3083_v20 = vpop.f32.mrf.mxu1  ;;  %3274 = vmatmul.mubr.bf16.gmra.mxu1 %v6244_v10  ;;  %2992 = vmatprep.mubr.bf16.mxu0 %v6251_v48  ;;  %v665_v30 = vld [vmem:[%s9677_s1 + $0x748] sm:$0xff]  ;;  %v7850_v29 = vpop.permute.xlu1 %869 }
 0x137   : > { %v2796_v39 = vpop.f32.mrf.mxu0  ;;  %3281 = vmatprep.mubr.bf16.mxu1 %v6253_v47  ;;  %v6259_v47 = vcombine.high %v664_v62, %v668_v42  ;;  %v6261_v15 = vcombine.high %v665_v30, %v669_v50  ;;  %v7854_v27 = vpop.permute.xlu0 %1024  ;;  %v6260_v58 = vcombine.low %v665_v30, %v669_v50 }
 0x138   : > { %v7838_v24 = vadd.f32 %v3083_v20, %v2795_v21  ;;  %v3085_v35 = vpop.f32.mrf.mxu1  ;;  %v4146_v20 = vld [vmem:[%s9680_s4 + $0xf0] sm:$0xff] }
 0x139   : > { %v2797_v57 = vpop.f32.mrf.mxu0  ;;  %4332 = vperm.xlu0 %6580, %v4146_v20   ;;  %v6258_v20 = vcombine.low %v664_v62, %v668_v42 }
 0x13a   : > { %9696 = vst [vmem:[#allocation13_spill] sm:$0xff] %v7838_v24  ;;  %v2798_v10 = vadd.f32 %v2797_v57, %v7608_v41  ;;  %v3086_v48 = vpop.f32.mrf.mxu1 }
 0x13b   : > { %v2799_v21 = vpop.f32.mrf.mxu0 }
 0x13c   : > { %v7852_v39 = vadd.f32 %v3086_v48, %v2798_v10  ;;  %v3088_v35 = vpop.f32.mrf.mxu1  ;;  %v673_v48 = vld [vmem:[%s9677_s1 + $0x788] sm:$0xff]  ;;  %v7877_v21 = vpop.permute.xlu1 %1029 }
 0x13d   : > { %v2802_v24 = vpop.f32.mrf.mxu0  ;;  %2993 = vmatmul.mubr.bf16.gmra.mxu0 %v6250_v4  ;;  %v672_v4 = vld [vmem:[%s9677_s1 + $0x780] sm:$0xff]  ;;  %4252 = vperm.xlu0 %6580, %v4130_v32   ;;  %v7886_v32 = vpop.permute.xlu0 %854 }
 0x13e   : > { %9697 = vst [vmem:[#allocation14_spill] sm:$0xff] %v7852_v39  ;;  %v2803_v41 = vadd.f32 %v2802_v24, %v7558_v11  ;;  %v3091_v5 = vpop.f32.mrf.mxu1  ;;  %3282 = vmatmul.mubr.bf16.gmra.mxu1 %v6252_v61  ;;  %3000 = vmatprep.mubr.bf16.mxu0 %v6259_v47  ;;  %v676_v11 = vld [vmem:[%s9677_s1 + $0x7a0] sm:$0xff]  ;;  %v677_v61 = vld [vmem:[%s9677_s1 + $0x7a8] sm:$0xff] }
 0x13f   : > { %v2804_v57 = vpop.f32.mrf.mxu0  ;;  %3289 = vmatprep.mubr.bf16.mxu1 %v6261_v15 }
 0x140   : > { %v7869_v24 = vadd.f32 %v3091_v5, %v2803_v41  ;;  %v3093_v10 = vpop.f32.mrf.mxu1  ;;  %v6267_v41 = vcombine.high %v672_v4, %v676_v11  ;;  %v4131_v5 = vld [vmem:[%s9680_s4 + $0x78] sm:$0xff]  ;;  %v4178_v57 = vld [vmem:[%s9680_s4 + $0x1f0] sm:$0xff] }
 0x141   : > { %v2805_v47 = vpop.f32.mrf.mxu0  ;;  %4257 = vperm.xlu1 %6581, %v4131_v5   ;;  %4492 = vperm.xlu0 %6580, %v4178_v57  }
 0x142   : > { %9698 = vst [vmem:[#allocation15_spill] sm:$0xff] %v7869_v24  ;;  %v2806_v15 = vadd.f32 %v2805_v47, %v7572_v2  ;;  %v3094_v35 = vpop.f32.mrf.mxu1  ;;  %v6269_v24 = vcombine.high %v673_v48, %v677_v61  ;;  %v4179_v47 = vld [vmem:[%s9680_s4 + $0x1f8] sm:$0xff] }
 0x143   : > { %v2807_v10 = vpop.f32.mrf.mxu0 }
 0x144   : > { %v7888_v62 = vadd.f32 %v3094_v35, %v2806_v15  ;;  %v3096_v42 = vpop.f32.mrf.mxu1  ;;  %v4162_v10 = vld [vmem:[%s9680_s4 + $0x170] sm:$0xff]  ;;  %v7897_v15 = vpop.permute.xlu1 %859 }
 0x145   : > { %v2810_v2 = vpop.f32.mrf.mxu0  ;;  %3001 = vmatmul.mubr.bf16.gmra.mxu0 %v6258_v20  ;;  %v680_v20 = vld [vmem:[%s9677_s1 + $0x7c0] sm:$0xff]  ;;  %4497 = vperm.xlu1 %6581, %v4179_v47   ;;  %v6266_v42 = vcombine.low %v672_v4, %v676_v11  ;;  %v6268_v47 = vcombine.low %v673_v48, %v677_v61 }
 0x146   : > { %9699 = vst [vmem:[#allocation16_spill] sm:$0xff] %v7888_v62  ;;  %v2811_v30 = vadd.f32 %v2810_v2, %v7522_v44  ;;  %v3099_v50 = vpop.f32.mrf.mxu1  ;;  %3290 = vmatmul.mubr.bf16.gmra.mxu1 %v6260_v58  ;;  %3008 = vmatprep.mubr.bf16.mxu0 %v6267_v41  ;;  %v684_v44 = vld [vmem:[%s9677_s1 + $0x7e0] sm:$0xff]  ;;  %v681_v41 = vld [vmem:[%s9677_s1 + $0x7c8] sm:$0xff]  ;;  %v7913_v2 = vpop.permute.xlu0 %1014 }
 0x147   : > { %v2812_v5 = vpop.f32.mrf.mxu0  ;;  %3297 = vmatprep.mubr.bf16.mxu1 %v6269_v24  ;;  %v685_v24 = vld [vmem:[%s9677_s1 + $0x7e8] sm:$0xff]  ;;  %4412 = vperm.xlu0 %6580, %v4162_v10  }
 0x148   : > { %v7905_v35 = vadd.f32 %v3099_v50, %v2811_v30  ;;  %v3101_v58 = vpop.f32.mrf.mxu1  ;;  %v6275_v30 = vcombine.high %v680_v20, %v684_v44  ;;  %v4163_v50 = vld [vmem:[%s9680_s4 + $0x178] sm:$0xff]  ;;  %v6277_v39 = vcombine.high %v681_v41, %v685_v24 }
 0x149   : > { %v2813_v57 = vpop.f32.mrf.mxu0  ;;  %v4144_v58 = vld [vmem:[%s9680_s4 + $0xe0] sm:$0xff]  ;;  %4417 = vperm.xlu1 %6581, %v4163_v50   ;;  %v435_v50 = vld [vmem:[%s9677_s1 + $0x18] sm:$0xff] }
 0x14a   : > { %9700 = vst [vmem:[#allocation17_spill] sm:$0xff] %v7905_v35  ;;  %v2814_v5 = vadd.f32 %v2813_v57, %v7532_v52  ;;  %v3102_v62 = vpop.f32.mrf.mxu1  ;;  %v7924_v52 = vpop.permute.xlu1 %1019  ;;  %v4145_v57 = vld [vmem:[%s9680_s4 + $0xe8] sm:$0xff] }
 0x14b   : > { %v2815_v35 = vpop.f32.mrf.mxu0  ;;  %4322 = vperm.xlu0 %6580, %v4144_v58  }
 0x14c   : > { %v7922_v10 = vadd.f32 %v3102_v62, %v2814_v5  ;;  %v3104_v4 = vpop.f32.mrf.mxu1  ;;  %v4128_v62 = vld [vmem:[%s9680_s4 + $0x60] sm:$0xff]  ;;  %v7933_v5 = vpop.permute.xlu0 %844 }
 0x14d   : > { %v2818_v11 = vpop.f32.mrf.mxu0  ;;  %3009 = vmatmul.mubr.bf16.gmra.mxu0 %v6266_v42  ;;  %v434_v42 = vld [vmem:[%s9677_s1 + $0x10] sm:$0xff]  ;;  %4327 = vperm.xlu1 %6581, %v4145_v57   ;;  %v6274_v4 = vcombine.low %v680_v20, %v684_v44 }
 0x14e   : > { %9701 = vst [vmem:[#allocation18_spill] sm:$0xff] %v7922_v10  ;;  %v2819_v48 = vadd.f32 %v2818_v11, %v7484_v25  ;;  %v3107_v61 = vpop.f32.mrf.mxu1  ;;  %3298 = vmatmul.mubr.bf16.gmra.mxu1 %v6268_v47  ;;  %3016 = vmatprep.mubr.bf16.mxu0 %v6275_v30  ;;  %v438_v25 = vld [vmem:[%s9677_s1 + $0x30] sm:$0xff]  ;;  %v6276_v10 = vcombine.low %v681_v41, %v685_v24 }
 0x14f   : > { %v2820_v35 = vpop.f32.mrf.mxu0  ;;  %3305 = vmatprep.mubr.bf16.mxu1 %v6277_v39  ;;  %v439_v39 = vld [vmem:[%s9677_s1 + $0x38] sm:$0xff]  ;;  %4242 = vperm.xlu0 %6580, %v4128_v62   ;;  %v6031_v49 = vcombine.high %v434_v42, %v438_v25 }
 0x150   : > { %v7941_v47 = vadd.f32 %v3107_v61, %v2819_v48  ;;  %v3109_v30 = vpop.f32.mrf.mxu1  ;;  %v4129_v48 = vld [vmem:[%s9680_s4 + $0x68] sm:$0xff]  ;;  %v4176_v61 = vld [vmem:[%s9680_s4 + $0x1e0] sm:$0xff]  ;;  %v7960_v44 = vpop.permute.xlu0 %1004 }
 0x151   : > { %v2821_v58 = vpop.f32.mrf.mxu0  ;;  %v7956_v30 = vpop.permute.xlu1 %849  ;;  %4247 = vperm.xlu1 %6581, %v4129_v48   ;;  %v443_v48 = vld [vmem:[%s9677_s1 + $0x58] sm:$0xff] }
 0x152   : > { %9702 = vst [vmem:[#allocation19_spill] sm:$0xff] %v7941_v47  ;;  %v2822_v11 = vadd.f32 %v2821_v58, %v7502_v33  ;;  %v3110_v35 = vpop.f32.mrf.mxu1  ;;  %v6033_v47 = vcombine.high %v435_v50, %v439_v39  ;;  %v4177_v58 = vld [vmem:[%s9680_s4 + $0x1e8] sm:$0xff] }
 0x153   : > { %v2823_v57 = vpop.f32.mrf.mxu0  ;;  %4482 = vperm.xlu0 %6580, %v4176_v61  }
 0x154   : > { %v7958_v62 = vadd.f32 %v3110_v35, %v2822_v11  ;;  %v3112_v20 = vpop.f32.mrf.mxu1  ;;  %v4160_v11 = vld [vmem:[%s9680_s4 + $0x160] sm:$0xff]  ;;  %v6030_v57 = vcombine.low %v434_v42, %v438_v25 }
 0x155   : > { %v2826_v33 = vpop.f32.mrf.mxu0  ;;  %3017 = vmatmul.mubr.bf16.gmra.mxu0 %v6274_v4  ;;  %v442_v4 = vld [vmem:[%s9677_s1 + $0x50] sm:$0xff]  ;;  %4487 = vperm.xlu1 %6581, %v4177_v58   ;;  %v7983_v20 = vpop.permute.xlu1 %1009  ;;  %v6032_v58 = vcombine.low %v435_v50, %v439_v39 }
 0x156   : > { %9703 = vst [vmem:[#allocation20_spill] sm:$0xff] %v7958_v62  ;;  %v2827_v41 = vadd.f32 %v2826_v33, %v7450_v9  ;;  %v3115_v24 = vpop.f32.mrf.mxu1  ;;  %3306 = vmatmul.mubr.bf16.gmra.mxu1 %v6276_v10  ;;  %3346 = vmatprep.mubr.bf16.mxu0 %v6031_v49  ;;  %v446_v9 = vld [vmem:[%s9677_s1 + $0x70] sm:$0xff]  ;;  %v835_v62 = vpop.permute.xlu0 %834 }
 0x157   : > { %v2828_v35 = vpop.f32.mrf.mxu0  ;;  %3635 = vmatprep.mubr.bf16.mxu1 %v6033_v47  ;;  %v447_v47 = vld [vmem:[%s9677_s1 + $0x78] sm:$0xff]  ;;  %4402 = vperm.xlu0 %6580, %v4160_v11  }
 0x158   : > { %v7975_v49 = vadd.f32 %v3115_v24, %v2827_v41  ;;  %v3117_v10 = vpop.f32.mrf.mxu1  ;;  %v6039_v41 = vcombine.high %v442_v4, %v446_v9  ;;  %v4161_v24 = vld [vmem:[%s9680_s4 + $0x168] sm:$0xff]  ;;  %v6041_v11 = vcombine.high %v443_v48, %v447_v47 }
 0x159   : > { %v2829_v61 = vpop.f32.mrf.mxu0  ;;  %v4142_v10 = vld [vmem:[%s9680_s4 + $0xd0] sm:$0xff]  ;;  %4407 = vperm.xlu1 %6581, %v4161_v24   ;;  %v840_v24 = vpop.permute.xlu1 %839 }
 0x15a   : > { %9704 = vst [vmem:[#allocation21_spill] sm:$0xff] %v7975_v49  ;;  %v2830_v33 = vadd.f32 %v2829_v61, %v7476_v17  ;;  %v3118_v35 = vpop.f32.mrf.mxu1  ;;  %v4143_v61 = vld [vmem:[%s9680_s4 + $0xd8] sm:$0xff] }
 0x15b   : > { %v2831_v49 = vpop.f32.mrf.mxu0  ;;  %4312 = vperm.xlu0 %6580, %v4142_v10   ;;  %v6038_v10 = vcombine.low %v442_v4, %v446_v9 }
 0x15c   : > { %v7992_v42 = vadd.f32 %v3118_v35, %v2830_v33  ;;  %v3120_v25 = vpop.f32.mrf.mxu1  ;;  %v4126_v49 = vld [vmem:[%s9680_s4 + $0x50] sm:$0xff] }
 0x15d   : > { %v2834_v17 = vpop.f32.mrf.mxu0  ;;  %3347 = vmatmul.mubr.bf16.vlgmr.msra.gmra.mxu0 %v6030_v57  ;;  %v450_v33 = vld [vmem:[%s9677_s1 + $0x90] sm:$0xff]  ;;  %4317 = vperm.xlu1 %6581, %v4143_v61  }
 0x15e   : > { %9705 = vst [vmem:[#allocation22_spill] sm:$0xff] %v7992_v42  ;;  %v2835_v50 = vadd.f32 %v2834_v17, %v835_v62  ;;  %v3123_v39 = vpop.f32.mrf.mxu1  ;;  %3636 = vmatmul.mubr.bf16.vlgmr.msra.gmra.mxu1 %v6032_v58  ;;  %3354 = vmatprep.mubr.bf16.mxu0 %v6039_v41  ;;  %v454_v62 = vld [vmem:[%s9677_s1 + $0xb0] sm:$0xff]  ;;  %v451_v58 = vld [vmem:[%s9677_s1 + $0x98] sm:$0xff]  ;;  %v6040_v17 = vcombine.low %v443_v48, %v447_v47 }
 0x15f   : > { %v2836_v31 = vpop.f32.mrf.mxu0  ;;  %3643 = vmatprep.mubr.bf16.mxu1 %v6041_v11  ;;  %4232 = vperm.xlu0 %6580, %v4126_v49   ;;  %v6047_v42 = vcombine.high %v450_v33, %v454_v62  ;;  %v4175_v47 = vld [vmem:[%s9680_s4 + $0x1d8] sm:$0xff] }
 0x160   : > { %v8006_v57 = vadd.f32 %v3123_v39, %v2835_v50  ;;  %v3125_v35 = vpop.f32.mrf.mxu1  ;;  %v455_v31 = vld [vmem:[%s9677_s1 + $0xb8] sm:$0xff]  ;;  %v4174_v39 = vld [vmem:[%s9680_s4 + $0x1d0] sm:$0xff] }
 0x161   : > { %v2837_v41 = vpop.f32.mrf.mxu0  ;;  %v4127_v50 = vld [vmem:[%s9680_s4 + $0x58] sm:$0xff]  ;;  %v6049_v35 = vcombine.high %v451_v58, %v455_v31 }
 0x162   : > { %9706 = vst [vmem:[#allocation23_spill] sm:$0xff] %v8006_v57  ;;  %v2838_v11 = vadd.f32 %v2837_v41, %v840_v24  ;;  %v3126_v25 = vpop.f32.mrf.mxu1  ;;  %4237 = vperm.xlu1 %6581, %v4127_v50   ;;  %v4158_v24 = vld [vmem:[%s9680_s4 + $0x150] sm:$0xff] }
 0x163   : > { %v2839_v61 = vpop.f32.mrf.mxu0  ;;  %4472 = vperm.xlu0 %6580, %v4174_v39   ;;  %v6046_v39 = vcombine.low %v450_v33, %v454_v62 }
 0x164   : > { %v8020_v57 = vadd.f32 %v3126_v25, %v2838_v11  ;;  %v3128_v49 = vpop.f32.mrf.mxu1  ;;  %v458_v11 = vld [vmem:[%s9677_s1 + $0xd0] sm:$0xff]  ;;  %v459_v25 = vld [vmem:[%s9677_s1 + $0xd8] sm:$0xff] }
 0x165   : > { %v2842_v4 = vpop.f32.mrf.mxu0  ;;  %3355 = vmatmul.mubr.bf16.gmra.mxu0 %v6038_v10  ;;  %v6048_v49 = vcombine.low %v451_v58, %v455_v31  ;;  %v4141_v58 = vld [vmem:[%s9680_s4 + $0xc8] sm:$0xff]  ;;  %v4124_v31 = vld [vmem:[%s9680_s4 + $0x40] sm:$0xff] }
 0x166   : > { %v2843_v9 = vadd.f32 %v2842_v4, %v7933_v5  ;;  %v3131_v48 = vpop.f32.mrf.mxu1  ;;  %3644 = vmatmul.mubr.bf16.gmra.mxu1 %v6040_v17  ;;  %3362 = vmatprep.mubr.bf16.mxu0 %v6047_v42  ;;  %v462_v5 = vld [vmem:[%s9677_s1 + $0xf0] sm:$0xff]  ;;  %v463_v17 = vld [vmem:[%s9677_s1 + $0xf8] sm:$0xff] }
 0x167   : > { %v2844_v41 = vpop.f32.mrf.mxu0  ;;  %3651 = vmatprep.mubr.bf16.mxu1 %v6049_v35  ;;  %4477 = vperm.xlu1 %6581, %v4175_v47   ;;  %v6055_v4 = vcombine.high %v458_v11, %v462_v5 }
 0x168   : > { %v8035_v42 = vadd.f32 %v3131_v48, %v2843_v9  ;;  %v3133_v10 = vpop.f32.mrf.mxu1  ;;  %4392 = vperm.xlu0 %6580, %v4158_v24   ;;  %v4159_v9 = vld [vmem:[%s9680_s4 + $0x158] sm:$0xff]  ;;  %v4140_v48 = vld [vmem:[%s9680_s4 + $0xc0] sm:$0xff]  ;;  %v6057_v41 = vcombine.high %v459_v25, %v463_v17 }
 0x169   : > { %v2845_v50 = vpop.f32.mrf.mxu0 }
 0x16a   : > { %v2846_v61 = vadd.f32 %v2845_v50, %v7956_v30  ;;  %v3134_v35 = vpop.f32.mrf.mxu1 }
 0x16b   : > { %v2847_v47 = vpop.f32.mrf.mxu0  ;;  %4397 = vperm.xlu1 %6581, %v4159_v9  }
 0x16c   : > { %v8050_v10 = vadd.f32 %v3134_v35, %v2846_v61  ;;  %v3136_v24 = vpop.f32.mrf.mxu1  ;;  %4302 = vperm.xlu0 %6580, %v4140_v48   ;;  %v466_v61 = vld [vmem:[%s9677_s1 + $0x110] sm:$0xff]  ;;  %v6054_v48 = vcombine.low %v458_v11, %v462_v5 }
 0x16d   : > { %v2850_v33 = vpop.f32.mrf.mxu0  ;;  %3363 = vmatmul.mubr.bf16.gmra.mxu0 %v6046_v39  ;;  %v6056_v24 = vcombine.low %v459_v25, %v463_v17  ;;  %v4173_v25 = vld [vmem:[%s9680_s4 + $0x1c8] sm:$0xff]  ;;  %v4156_v17 = vld [vmem:[%s9680_s4 + $0x140] sm:$0xff] }
 0x16e   : > { %v2851_v30 = vadd.f32 %v2850_v33, %v7886_v32  ;;  %v3139_v62 = vpop.f32.mrf.mxu1  ;;  %3652 = vmatmul.mubr.bf16.gmra.mxu1 %v6048_v49  ;;  %3370 = vmatprep.mubr.bf16.mxu0 %v6055_v4  ;;  %v470_v32 = vld [vmem:[%s9677_s1 + $0x130] sm:$0xff]  ;;  %v467_v49 = vld [vmem:[%s9677_s1 + $0x118] sm:$0xff] }
 0x16f   : > { %v2852_v50 = vpop.f32.mrf.mxu0  ;;  %3659 = vmatprep.mubr.bf16.mxu1 %v6057_v41  ;;  %4307 = vperm.xlu1 %6581, %v4141_v58   ;;  %v471_v4 = vld [vmem:[%s9677_s1 + $0x138] sm:$0xff]  ;;  %v6063_v33 = vcombine.high %v466_v61, %v470_v32 }
 0x170   : > { %v8065_v39 = vadd.f32 %v3139_v62, %v2851_v30  ;;  %v3141_v35 = vpop.f32.mrf.mxu1  ;;  %4222 = vperm.xlu0 %6580, %v4124_v31   ;;  %v4125_v30 = vld [vmem:[%s9680_s4 + $0x48] sm:$0xff]  ;;  %v4172_v62 = vld [vmem:[%s9680_s4 + $0x1c0] sm:$0xff]  ;;  %v6065_v50 = vcombine.high %v467_v49, %v471_v4 }
 0x171   : > { %v2853_v9 = vpop.f32.mrf.mxu0 }
 0x172   : > { %v2854_v47 = vadd.f32 %v2853_v9, %v7897_v15  ;;  %v3142_v41 = vpop.f32.mrf.mxu1 }
 0x173   : > { %v2855_v58 = vpop.f32.mrf.mxu0  ;;  %4227 = vperm.xlu1 %6581, %v4125_v30  }
 0x174   : > { %v8080_v35 = vadd.f32 %v3142_v41, %v2854_v47  ;;  %v3144_v31 = vpop.f32.mrf.mxu1  ;;  %4462 = vperm.xlu0 %6580, %v4172_v62   ;;  %v474_v47 = vld [vmem:[%s9677_s1 + $0x150] sm:$0xff]  ;;  %v6062_v62 = vcombine.low %v466_v61, %v470_v32 }
 0x175   : > { %v2858_v11 = vpop.f32.mrf.mxu0  ;;  %3371 = vmatmul.mubr.bf16.gmra.mxu0 %v6054_v48  ;;  %v6064_v31 = vcombine.low %v467_v49, %v471_v4  ;;  %v4139_v49 = vld [vmem:[%s9680_s4 + $0xb8] sm:$0xff]  ;;  %v4122_v4 = vld [vmem:[%s9680_s4 + $0x30] sm:$0xff] }
 0x176   : > { %v2859_v15 = vadd.f32 %v2858_v11, %v7836_v8  ;;  %v3147_v5 = vpop.f32.mrf.mxu1  ;;  %3660 = vmatmul.mubr.bf16.gmra.mxu1 %v6056_v24  ;;  %3378 = vmatprep.mubr.bf16.mxu0 %v6063_v33  ;;  %v478_v8 = vld [vmem:[%s9677_s1 + $0x170] sm:$0xff]  ;;  %v475_v24 = vld [vmem:[%s9677_s1 + $0x158] sm:$0xff] }
 0x177   : > { %v2860_v9 = vpop.f32.mrf.mxu0  ;;  %3667 = vmatprep.mubr.bf16.mxu1 %v6065_v50  ;;  %4467 = vperm.xlu1 %6581, %v4173_v25   ;;  %v479_v33 = vld [vmem:[%s9677_s1 + $0x178] sm:$0xff]  ;;  %v6071_v11 = vcombine.high %v474_v47, %v478_v8 }
 0x178   : > { %v8095_v48 = vadd.f32 %v3147_v5, %v2859_v15  ;;  %v3149_v41 = vpop.f32.mrf.mxu1  ;;  %4382 = vperm.xlu0 %6580, %v4156_v17   ;;  %v4157_v15 = vld [vmem:[%s9680_s4 + $0x148] sm:$0xff]  ;;  %v4138_v5 = vld [vmem:[%s9680_s4 + $0xb0] sm:$0xff]  ;;  %v6073_v9 = vcombine.high %v475_v24, %v479_v33 }
 0x179   : > { %v2861_v30 = vpop.f32.mrf.mxu0 }
 0x17a   : > { %v2862_v58 = vadd.f32 %v2861_v30, %v7850_v29  ;;  %v3150_v50 = vpop.f32.mrf.mxu1 }
 0x17b   : > { %v2863_v25 = vpop.f32.mrf.mxu0  ;;  %4387 = vperm.xlu1 %6581, %v4157_v15  }
 0x17c   : > { %v8110_v41 = vadd.f32 %v3150_v50, %v2862_v58  ;;  %v3152_v17 = vpop.f32.mrf.mxu1  ;;  %4292 = vperm.xlu0 %6580, %v4138_v5   ;;  %v482_v58 = vld [vmem:[%s9677_s1 + $0x190] sm:$0xff]  ;;  %v6070_v5 = vcombine.low %v474_v47, %v478_v8 }
 0x17d   : > { %v2866_v61 = vpop.f32.mrf.mxu0  ;;  %3379 = vmatmul.mubr.bf16.gmra.mxu0 %v6062_v62  ;;  %v6072_v17 = vcombine.low %v475_v24, %v479_v33  ;;  %v4171_v24 = vld [vmem:[%s9680_s4 + $0x1b8] sm:$0xff]  ;;  %v4154_v33 = vld [vmem:[%s9680_s4 + $0x130] sm:$0xff] }
 0x17e   : > { %v2867_v29 = vadd.f32 %v2866_v61, %v7801_v13  ;;  %v3155_v32 = vpop.f32.mrf.mxu1  ;;  %3668 = vmatmul.mubr.bf16.gmra.mxu1 %v6064_v31  ;;  %3386 = vmatprep.mubr.bf16.mxu0 %v6071_v11  ;;  %v486_v13 = vld [vmem:[%s9677_s1 + $0x1b0] sm:$0xff]  ;;  %v483_v31 = vld [vmem:[%s9677_s1 + $0x198] sm:$0xff] }
 0x17f   : > { %v2868_v30 = vpop.f32.mrf.mxu0  ;;  %3675 = vmatprep.mubr.bf16.mxu1 %v6073_v9  ;;  %4297 = vperm.xlu1 %6581, %v4139_v49   ;;  %v487_v11 = vld [vmem:[%s9677_s1 + $0x1b8] sm:$0xff]  ;;  %v6079_v61 = vcombine.high %v482_v58, %v486_v13 }
 0x180   : > { %v8125_v62 = vadd.f32 %v3155_v32, %v2867_v29  ;;  %v3157_v50 = vpop.f32.mrf.mxu1  ;;  %4212 = vperm.xlu0 %6580, %v4122_v4   ;;  %v4123_v29 = vld [vmem:[%s9680_s4 + $0x38] sm:$0xff]  ;;  %v4170_v32 = vld [vmem:[%s9680_s4 + $0x1b0] sm:$0xff]  ;;  %v6081_v30 = vcombine.high %v483_v31, %v487_v11 }
 0x181   : > { %v2869_v15 = vpop.f32.mrf.mxu0 }
 0x182   : > { %v2870_v25 = vadd.f32 %v2869_v15, %v7812_v43  ;;  %v3158_v9 = vpop.f32.mrf.mxu1 }
 0x183   : > { %v2871_v49 = vpop.f32.mrf.mxu0  ;;  %4217 = vperm.xlu1 %6581, %v4123_v29  }
 0x184   : > { %v8140_v50 = vadd.f32 %v3158_v9, %v2870_v25  ;;  %v3160_v4 = vpop.f32.mrf.mxu1  ;;  %4452 = vperm.xlu0 %6580, %v4170_v32   ;;  %v490_v25 = vld [vmem:[%s9677_s1 + $0x1d0] sm:$0xff]  ;;  %v6078_v32 = vcombine.low %v482_v58, %v486_v13 }
 0x185   : > { %v2874_v47 = vpop.f32.mrf.mxu0  ;;  %3387 = vmatmul.mubr.bf16.gmra.mxu0 %v6070_v5  ;;  %v6080_v4 = vcombine.low %v483_v31, %v487_v11  ;;  %v4137_v31 = vld [vmem:[%s9680_s4 + $0xa8] sm:$0xff]  ;;  %v4120_v11 = vld [vmem:[%s9680_s4 + $0x20] sm:$0xff] }
 0x186   : > { %v2875_v43 = vadd.f32 %v2874_v47, %v7766_v7  ;;  %v3163_v8 = vpop.f32.mrf.mxu1  ;;  %3676 = vmatmul.mubr.bf16.gmra.mxu1 %v6072_v17  ;;  %3394 = vmatprep.mubr.bf16.mxu0 %v6079_v61  ;;  %v494_v7 = vld [vmem:[%s9677_s1 + $0x1f0] sm:$0xff]  ;;  %v491_v17 = vld [vmem:[%s9677_s1 + $0x1d8] sm:$0xff] }
 0x187   : > { %v2876_v15 = vpop.f32.mrf.mxu0  ;;  %3683 = vmatprep.mubr.bf16.mxu1 %v6081_v30  ;;  %4457 = vperm.xlu1 %6581, %v4171_v24   ;;  %v495_v61 = vld [vmem:[%s9677_s1 + $0x1f8] sm:$0xff]  ;;  %v6087_v47 = vcombine.high %v490_v25, %v494_v7 }
 0x188   : > { %v8155_v5 = vadd.f32 %v3163_v8, %v2875_v43  ;;  %v3165_v9 = vpop.f32.mrf.mxu1  ;;  %4372 = vperm.xlu0 %6580, %v4154_v33   ;;  %v4155_v43 = vld [vmem:[%s9680_s4 + $0x138] sm:$0xff]  ;;  %v4136_v8 = vld [vmem:[%s9680_s4 + $0xa0] sm:$0xff]  ;;  %v6089_v15 = vcombine.high %v491_v17, %v495_v61 }
 0x189   : > { %v2877_v29 = vpop.f32.mrf.mxu0 }
 0x18a   : > { %v2878_v49 = vadd.f32 %v2877_v29, %v7777_v59  ;;  %v3166_v30 = vpop.f32.mrf.mxu1 }
 0x18b   : > { %v2879_v24 = vpop.f32.mrf.mxu0  ;;  %4377 = vperm.xlu1 %6581, %v4155_v43  }
 0x18c   : > { %v8170_v9 = vadd.f32 %v3166_v30, %v2878_v49  ;;  %v3168_v33 = vpop.f32.mrf.mxu1  ;;  %4282 = vperm.xlu0 %6580, %v4136_v8   ;;  %v498_v49 = vld [vmem:[%s9677_s1 + $0x210] sm:$0xff]  ;;  %v6086_v8 = vcombine.low %v490_v25, %v494_v7 }
 0x18d   : > { %v2882_v58 = vpop.f32.mrf.mxu0  ;;  %3395 = vmatmul.mubr.bf16.gmra.mxu0 %v6078_v32  ;;  %v6088_v33 = vcombine.low %v491_v17, %v495_v61  ;;  %v4169_v17 = vld [vmem:[%s9680_s4 + $0x1a8] sm:$0xff]  ;;  %v4152_v61 = vld [vmem:[%s9680_s4 + $0x120] sm:$0xff] }
 0x18e   : > { %v2883_v59 = vadd.f32 %v2882_v58, %v7740_v38  ;;  %v3171_v13 = vpop.f32.mrf.mxu1  ;;  %3684 = vmatmul.mubr.bf16.gmra.mxu1 %v6080_v4  ;;  %3402 = vmatprep.mubr.bf16.mxu0 %v6087_v47  ;;  %v502_v38 = vld [vmem:[%s9677_s1 + $0x230] sm:$0xff]  ;;  %v499_v4 = vld [vmem:[%s9677_s1 + $0x218] sm:$0xff] }
 0x18f   : > { %v2884_v29 = vpop.f32.mrf.mxu0  ;;  %3691 = vmatprep.mubr.bf16.mxu1 %v6089_v15  ;;  %4287 = vperm.xlu1 %6581, %v4137_v31   ;;  %v503_v47 = vld [vmem:[%s9677_s1 + $0x238] sm:$0xff]  ;;  %v6095_v58 = vcombine.high %v498_v49, %v502_v38 }
 0x190   : > { %v8185_v32 = vadd.f32 %v3171_v13, %v2883_v59  ;;  %v3173_v30 = vpop.f32.mrf.mxu1  ;;  %4202 = vperm.xlu0 %6580, %v4120_v11   ;;  %v4121_v59 = vld [vmem:[%s9680_s4 + $0x28] sm:$0xff]  ;;  %v4168_v13 = vld [vmem:[%s9680_s4 + $0x1a0] sm:$0xff]  ;;  %v6097_v29 = vcombine.high %v499_v4, %v503_v47 }
 0x191   : > { %v2885_v43 = vpop.f32.mrf.mxu0 }
 0x192   : > { %v2886_v24 = vadd.f32 %v2885_v43, %v7748_v46  ;;  %v3174_v15 = vpop.f32.mrf.mxu1 }
 0x193   : > { %v2887_v31 = vpop.f32.mrf.mxu0  ;;  %4207 = vperm.xlu1 %6581, %v4121_v59  }
 0x194   : > { %v8200_v30 = vadd.f32 %v3174_v15, %v2886_v24  ;;  %v3176_v11 = vpop.f32.mrf.mxu1  ;;  %4442 = vperm.xlu0 %6580, %v4168_v13   ;;  %v506_v24 = vld [vmem:[%s9677_s1 + $0x250] sm:$0xff]  ;;  %v6094_v13 = vcombine.low %v498_v49, %v502_v38 }
 0x195   : > { %v2890_v25 = vpop.f32.mrf.mxu0  ;;  %3403 = vmatmul.mubr.bf16.gmra.mxu0 %v6086_v8  ;;  %v6096_v11 = vcombine.low %v499_v4, %v503_v47  ;;  %v4135_v4 = vld [vmem:[%s9680_s4 + $0x98] sm:$0xff]  ;;  %v4118_v47 = vld [vmem:[%s9680_s4 + $0x10] sm:$0xff] }
 0x196   : > { %v2891_v46 = vadd.f32 %v2890_v25, %v7714_v6  ;;  %v3179_v7 = vpop.f32.mrf.mxu1  ;;  %3692 = vmatmul.mubr.bf16.gmra.mxu1 %v6088_v33  ;;  %3410 = vmatprep.mubr.bf16.mxu0 %v6095_v58  ;;  %v510_v6 = vld [vmem:[%s9677_s1 + $0x270] sm:$0xff]  ;;  %v507_v33 = vld [vmem:[%s9677_s1 + $0x258] sm:$0xff] }
 0x197   : > { %v2892_v43 = vpop.f32.mrf.mxu0  ;;  %3699 = vmatprep.mubr.bf16.mxu1 %v6097_v29  ;;  %4447 = vperm.xlu1 %6581, %v4169_v17   ;;  %v511_v58 = vld [vmem:[%s9677_s1 + $0x278] sm:$0xff]  ;;  %v6103_v25 = vcombine.high %v506_v24, %v510_v6 }
 0x198   : > { %v8215_v8 = vadd.f32 %v3179_v7, %v2891_v46  ;;  %v3181_v15 = vpop.f32.mrf.mxu1  ;;  %4362 = vperm.xlu0 %6580, %v4152_v61   ;;  %v4153_v46 = vld [vmem:[%s9680_s4 + $0x128] sm:$0xff]  ;;  %v4134_v7 = vld [vmem:[%s9680_s4 + $0x90] sm:$0xff]  ;;  %v6105_v43 = vcombine.high %v507_v33, %v511_v58 }
 0x199   : > { %v2893_v59 = vpop.f32.mrf.mxu0 }
 0x19a   : > { %v2894_v31 = vadd.f32 %v2893_v59, %v7722_v16  ;;  %v3182_v29 = vpop.f32.mrf.mxu1 }
 0x19b   : > { %v2895_v17 = vpop.f32.mrf.mxu0  ;;  %4367 = vperm.xlu1 %6581, %v4153_v46  }
 0x19c   : > { %v8230_v15 = vadd.f32 %v3182_v29, %v2894_v31  ;;  %v3184_v61 = vpop.f32.mrf.mxu1  ;;  %4272 = vperm.xlu0 %6580, %v4134_v7   ;;  %v514_v31 = vld [vmem:[%s9677_s1 + $0x290] sm:$0xff]  ;;  %v6102_v7 = vcombine.low %v506_v24, %v510_v6 }
 0x19d   : > { %v2898_v49 = vpop.f32.mrf.mxu0  ;;  %3411 = vmatmul.mubr.bf16.gmra.mxu0 %v6094_v13  ;;  %v6104_v61 = vcombine.low %v507_v33, %v511_v58  ;;  %v4167_v33 = vld [vmem:[%s9680_s4 + $0x198] sm:$0xff]  ;;  %v4150_v58 = vld [vmem:[%s9680_s4 + $0x110] sm:$0xff] }
 0x19e   : > { %v2899_v16 = vadd.f32 %v2898_v49, %v7704_v54  ;;  %v3187_v38 = vpop.f32.mrf.mxu1  ;;  %3700 = vmatmul.mubr.bf16.gmra.mxu1 %v6096_v11  ;;  %3418 = vmatprep.mubr.bf16.mxu0 %v6103_v25  ;;  %v518_v54 = vld [vmem:[%s9677_s1 + $0x2b0] sm:$0xff]  ;;  %v515_v11 = vld [vmem:[%s9677_s1 + $0x298] sm:$0xff] }
 0x19f   : > { %v2900_v59 = vpop.f32.mrf.mxu0  ;;  %3707 = vmatprep.mubr.bf16.mxu1 %v6105_v43  ;;  %4277 = vperm.xlu1 %6581, %v4135_v4   ;;  %v519_v25 = vld [vmem:[%s9677_s1 + $0x2b8] sm:$0xff]  ;;  %v6111_v49 = vcombine.high %v514_v31, %v518_v54 }
 0x1a0   : > { %v8245_v13 = vadd.f32 %v3187_v38, %v2899_v16  ;;  %v3189_v29 = vpop.f32.mrf.mxu1  ;;  %4192 = vperm.xlu0 %6580, %v4118_v47   ;;  %v4119_v16 = vld [vmem:[%s9680_s4 + $0x18] sm:$0xff]  ;;  %v4166_v38 = vld [vmem:[%s9680_s4 + $0x190] sm:$0xff]  ;;  %v6113_v59 = vcombine.high %v515_v11, %v519_v25 }
 0x1a1   : > { %v2901_v46 = vpop.f32.mrf.mxu0 }
 0x1a2   : > { %v2902_v17 = vadd.f32 %v2901_v46, %v7706_v60  ;;  %v3190_v43 = vpop.f32.mrf.mxu1 }
 0x1a3   : > { %v2903_v4 = vpop.f32.mrf.mxu0  ;;  %4197 = vperm.xlu1 %6581, %v4119_v16  }
 0x1a4   : > { %v8260_v29 = vadd.f32 %v3190_v43, %v2902_v17  ;;  %v3192_v47 = vpop.f32.mrf.mxu1  ;;  %4432 = vperm.xlu0 %6580, %v4166_v38   ;;  %v522_v17 = vld [vmem:[%s9677_s1 + $0x2d0] sm:$0xff]  ;;  %v6110_v38 = vcombine.low %v514_v31, %v518_v54 }
 0x1a5   : > { %v2906_v24 = vpop.f32.mrf.mxu0  ;;  %3419 = vmatmul.mubr.bf16.gmra.mxu0 %v6102_v7  ;;  %v6112_v47 = vcombine.low %v515_v11, %v519_v25  ;;  %v4133_v11 = vld [vmem:[%s9680_s4 + $0x88] sm:$0xff]  ;;  %v4116_v25 = vld [vmem:[%s9680_s4] sm:$0xff] }
 0x1a6   : > { %v2907_v60 = vadd.f32 %v2906_v24, %v7674_v28  ;;  %v3195_v6 = vpop.f32.mrf.mxu1  ;;  %3708 = vmatmul.mubr.bf16.gmra.mxu1 %v6104_v61  ;;  %3426 = vmatprep.mubr.bf16.mxu0 %v6111_v49  ;;  %v526_v28 = vld [vmem:[%s9677_s1 + $0x2f0] sm:$0xff]  ;;  %v523_v61 = vld [vmem:[%s9677_s1 + $0x2d8] sm:$0xff] }
 0x1a7   : > { %v2908_v46 = vpop.f32.mrf.mxu0  ;;  %3715 = vmatprep.mubr.bf16.mxu1 %v6113_v59  ;;  %4437 = vperm.xlu1 %6581, %v4167_v33   ;;  %v527_v49 = vld [vmem:[%s9677_s1 + $0x2f8] sm:$0xff]  ;;  %v6119_v24 = vcombine.high %v522_v17, %v526_v28 }
 0x1a8   : > { %v8275_v7 = vadd.f32 %v3195_v6, %v2907_v60  ;;  %v3197_v43 = vpop.f32.mrf.mxu1  ;;  %4352 = vperm.xlu0 %6580, %v4150_v58   ;;  %v4151_v60 = vld [vmem:[%s9680_s4 + $0x118] sm:$0xff]  ;;  %v4132_v6 = vld [vmem:[%s9680_s4 + $0x80] sm:$0xff]  ;;  %v6121_v46 = vcombine.high %v523_v61, %v527_v49 }
 0x1a9   : > { %v2909_v16 = vpop.f32.mrf.mxu0 }
 0x1aa   : > { %v2910_v4 = vadd.f32 %v2909_v16, %v7688_v36  ;;  %v3198_v59 = vpop.f32.mrf.mxu1 }
 0x1ab   : > { %v2911_v33 = vpop.f32.mrf.mxu0  ;;  %4357 = vperm.xlu1 %6581, %v4151_v60  }
 0x1ac   : > { %v8290_v43 = vadd.f32 %v3198_v59, %v2910_v4  ;;  %v3200_v58 = vpop.f32.mrf.mxu1  ;;  %4262 = vperm.xlu0 %6580, %v4132_v6   ;;  %v530_v4 = vld [vmem:[%s9677_s1 + $0x310] sm:$0xff]  ;;  %v6118_v6 = vcombine.low %v522_v17, %v526_v28 }
 0x1ad   : > { %v2914_v31 = vpop.f32.mrf.mxu0  ;;  %3427 = vmatmul.mubr.bf16.gmra.mxu0 %v6110_v38  ;;  %v6120_v58 = vcombine.low %v523_v61, %v527_v49  ;;  %v4165_v61 = vld [vmem:[%s9680_s4 + $0x188] sm:$0xff]  ;;  %v4148_v49 = vld [vmem:[%s9680_s4 + $0x100] sm:$0xff] }
 0x1ae   : > { %v2915_v36 = vadd.f32 %v2914_v31, %v7654_v12  ;;  %v3203_v54 = vpop.f32.mrf.mxu1  ;;  %3716 = vmatmul.mubr.bf16.gmra.mxu1 %v6112_v47  ;;  %3434 = vmatprep.mubr.bf16.mxu0 %v6119_v24  ;;  %v534_v12 = vld [vmem:[%s9677_s1 + $0x330] sm:$0xff]  ;;  %v531_v47 = vld [vmem:[%s9677_s1 + $0x318] sm:$0xff] }
 0x1af   : > { %v2916_v16 = vpop.f32.mrf.mxu0  ;;  %3723 = vmatprep.mubr.bf16.mxu1 %v6121_v46  ;;  %4267 = vperm.xlu1 %6581, %v4133_v11   ;;  %v535_v24 = vld [vmem:[%s9677_s1 + $0x338] sm:$0xff]  ;;  %v6127_v31 = vcombine.high %v530_v4, %v534_v12 }
 0x1b0   : > { %v8305_v38 = vadd.f32 %v3203_v54, %v2915_v36  ;;  %v3205_v59 = vpop.f32.mrf.mxu1  ;;  %4182 = vperm.xlu0 %6580, %v4116_v25   ;;  %v4117_v36 = vld [vmem:[%s9680_s4 + $0x8] sm:$0xff]  ;;  %v4164_v54 = vld [vmem:[%s9680_s4 + $0x180] sm:$0xff]  ;;  %v6129_v16 = vcombine.high %v531_v47, %v535_v24 }
 0x1b1   : > { %v2917_v60 = vpop.f32.mrf.mxu0 }
 0x1b2   : > { %v2918_v33 = vadd.f32 %v2917_v60, %v7656_v1  ;;  %v3206_v46 = vpop.f32.mrf.mxu1 }
 0x1b3   : > { %v2919_v11 = vpop.f32.mrf.mxu0  ;;  %4187 = vperm.xlu1 %6581, %v4117_v36  }
 0x1b4   : > { %v8320_v59 = vadd.f32 %v3206_v46, %v2918_v33  ;;  %v3208_v25 = vpop.f32.mrf.mxu1  ;;  %4422 = vperm.xlu0 %6580, %v4164_v54   ;;  %v538_v33 = vld [vmem:[%s9677_s1 + $0x350] sm:$0xff]  ;;  %v6126_v54 = vcombine.low %v530_v4, %v534_v12 }
 0x1b5   : > { %v2922_v17 = vpop.f32.mrf.mxu0  ;;  %3435 = vmatmul.mubr.bf16.gmra.mxu0 %v6118_v6  ;;  %v6128_v25 = vcombine.low %v531_v47, %v535_v24  ;;  %v546_v47 = vld [vmem:[%s9677_s1 + $0x390] sm:$0xff] }
 0x1b6   : > { %v2923_v1 = vadd.f32 %v2922_v17, %v7612_v45  ;;  %v3211_v28 = vpop.f32.mrf.mxu1  ;;  %3724 = vmatmul.mubr.bf16.gmra.mxu1 %v6120_v58  ;;  %3442 = vmatprep.mubr.bf16.mxu0 %v6127_v31  ;;  %v542_v45 = vld [vmem:[%s9677_s1 + $0x370] sm:$0xff]  ;;  %v539_v58 = vld [vmem:[%s9677_s1 + $0x358] sm:$0xff] }
 0x1b7   : > { %v2924_v60 = vpop.f32.mrf.mxu0  ;;  %3731 = vmatprep.mubr.bf16.mxu1 %v6129_v16  ;;  %4427 = vperm.xlu1 %6581, %v4165_v61   ;;  %v543_v31 = vld [vmem:[%s9677_s1 + $0x378] sm:$0xff]  ;;  %v6135_v17 = vcombine.high %v538_v33, %v542_v45  ;;  %v550_v24 = vld [vmem:[%s9677_s1 + $0x3b0] sm:$0xff] }
 0x1b8   : > { %v8335_v6 = vadd.f32 %v3211_v28, %v2923_v1  ;;  %v3213_v46 = vpop.f32.mrf.mxu1  ;;  %4342 = vperm.xlu0 %6580, %v4148_v49   ;;  %v4149_v1 = vld [vmem:[%s9680_s4 + $0x108] sm:$0xff]  ;;  %v5815_v28 = vld [vmem:[#allocation2] sm:$0x1]  ;;  %v6137_v60 = vcombine.high %v539_v58, %v543_v31 }
 0x1b9   : > { %v2925_v36 = vpop.f32.mrf.mxu0 }
 0x1ba   : > { %9707 = vst [vmem:[#allocation24_spill] sm:$0xff] %v8335_v6  ;;  %v2926_v11 = vadd.f32 %v2925_v36, %v7628_v51  ;;  %v3214_v16 = vpop.f32.mrf.mxu1 }
 0x1bb   : > { %v2927_v61 = vpop.f32.mrf.mxu0  ;;  %4347 = vperm.xlu1 %6581, %v4149_v1   ;;  %v6136_v1 = vcombine.low %v539_v58, %v543_v31  ;;  %v559_v31 = vld [vmem:[%s9677_s1 + $0x3f8] sm:$0xff] }
 0x1bc   : > { %v8347_v46 = vadd.f32 %v3214_v16, %v2926_v11  ;;  %v3216_v6 = vpop.f32.mrf.mxu1  ;;  %5818 = vperm.xlu0 %6580, %v5815_v28   ;;  %v6134_v16 = vcombine.low %v538_v33, %v542_v45  ;;  %v6143_v28 = vcombine.high %v546_v47, %v550_v24  ;;  %v558_v33 = vld [vmem:[%s9677_s1 + $0x3f0] sm:$0xff] }
 0x1bd   : > { %v2930_v49 = vpop.f32.mrf.mxu0  ;;  %3443 = vmatmul.mubr.bf16.gmra.mxu0 %v6126_v54  ;;  %v551_v54 = vld [vmem:[%s9677_s1 + $0x3b8] sm:$0xff] }
 0x1be   : > { %v2931_v4 = vadd.f32 %v2930_v49, %v7580_v18  ;;  %v3219_v51 = vpop.f32.mrf.mxu1  ;;  %3732 = vmatmul.mubr.bf16.gmra.mxu1 %v6128_v25  ;;  %3450 = vmatprep.mubr.bf16.mxu0 %v6135_v17  ;;  %v547_v18 = vld [vmem:[%s9677_s1 + $0x398] sm:$0xff] }
 0x1bf   : > { %v2932_v12 = vpop.f32.mrf.mxu0  ;;  %3739 = vmatprep.mubr.bf16.mxu1 %v6137_v60  ;;  %v6145_v60 = vcombine.high %v547_v18, %v551_v54 }
 0x1c0   : > { %v8356_v36 = vadd.f32 %v3219_v51, %v2931_v4  ;;  %v3221_v6 = vpop.f32.mrf.mxu1 }
 0x1c1   : > { %v2933_v11 = vpop.f32.mrf.mxu0 }
 0x1c2   : > { %9708 = vst [vmem:[#allocation25_spill] sm:$0xff] %v8356_v36  ;;  %v2934_v25 = vadd.f32 %v2933_v11, %v7586_v26  ;;  %v3222_v17 = vpop.f32.mrf.mxu1  ;;  %v554_v26 = vld [vmem:[%s9677_s1 + $0x3d0] sm:$0xff]  ;;  %v6142_v11 = vcombine.low %v546_v47, %v550_v24 }
 0x1c3   : > { %v2935_v61 = vpop.f32.mrf.mxu0  ;;  %v566_v47 = vld [vmem:[%s9677_s1 + $0x430] sm:$0xff] }
 0x1c4   : > { %v8365_v49 = vadd.f32 %v3222_v17, %v2934_v25  ;;  %v3224_v4 = vpop.f32.mrf.mxu1  ;;  %v6144_v17 = vcombine.low %v547_v18, %v551_v54  ;;  %v567_v54 = vld [vmem:[%s9677_s1 + $0x438] sm:$0xff] }
 0x1c5   : > { %v2938_v51 = vpop.f32.mrf.mxu0  ;;  %3451 = vmatmul.mubr.bf16.gmra.mxu0 %v6134_v16 }
 0x1c6   : > { %v2939_v12 = vadd.f32 %v2938_v51, %v7536_v55  ;;  %v3227_v6 = vpop.f32.mrf.mxu1  ;;  %3740 = vmatmul.mubr.bf16.gmra.mxu1 %v6136_v1  ;;  %3458 = vmatprep.mubr.bf16.mxu0 %v6143_v28  ;;  %v555_v55 = vld [vmem:[%s9677_s1 + $0x3d8] sm:$0xff]  ;;  %v6151_v1 = vcombine.high %v554_v26, %v558_v33 }
 0x1c7   : > { %v2940_v36 = vpop.f32.mrf.mxu0  ;;  %3747 = vmatprep.mubr.bf16.mxu1 %v6145_v60  ;;  %v6153_v61 = vcombine.high %v555_v55, %v559_v31 }
 0x1c8   : > { %v8374_v45 = vadd.f32 %v3227_v6, %v2939_v12  ;;  %v3229_v58 = vpop.f32.mrf.mxu1 }
 0x1c9   : > { %v2941_v36 = vpop.f32.mrf.mxu0 }
 0x1ca   : > { %v2942_v16 = vadd.f32 %v2941_v36, %v7554_v63  ;;  %v3230_v25 = vpop.f32.mrf.mxu1  ;;  %v562_v63 = vld [vmem:[%s9677_s1 + $0x410] sm:$0xff] }
 0x1cb   : > { %v2943_v28 = vpop.f32.mrf.mxu0 }
 0x1cc   : > { %v8383_v60 = vadd.f32 %v3230_v25, %v2942_v16  ;;  %v3232_v4 = vpop.f32.mrf.mxu1 }
 0x1cd   : > { %v2946_v51 = vpop.f32.mrf.mxu0  ;;  %3459 = vmatmul.mubr.bf16.gmra.mxu0 %v6142_v11  ;;  %v6150_v11 = vcombine.low %v554_v26, %v558_v33  ;;  %v574_v26 = vld [vmem:[%s9677_s1 + $0x470] sm:$0xff] }
 0x1ce   : > { %v2947_v12 = vadd.f32 %v2946_v51, %v7506_v37  ;;  %v3235_v6 = vpop.f32.mrf.mxu1  ;;  %3748 = vmatmul.mubr.bf16.gmra.mxu1 %v6144_v17  ;;  %3466 = vmatprep.mubr.bf16.mxu0 %v6151_v1  ;;  %v563_v37 = vld [vmem:[%s9677_s1 + $0x418] sm:$0xff]  ;;  %v6152_v17 = vcombine.low %v555_v55, %v559_v31  ;;  %v6159_v1 = vcombine.high %v562_v63, %v566_v47 }
 0x1cf   : > { %v2948_v58 = vpop.f32.mrf.mxu0  ;;  %3755 = vmatprep.mubr.bf16.mxu1 %v6153_v61  ;;  %v6161_v61 = vcombine.high %v563_v37, %v567_v54  ;;  %v575_v31 = vld [vmem:[%s9677_s1 + $0x478] sm:$0xff] }
 0x1d0   : > { %v8392_v24 = vadd.f32 %v3235_v6, %v2947_v12  ;;  %v3237_v18 = vpop.f32.mrf.mxu1 }
 0x1d1   : > { %v2949_v36 = vpop.f32.mrf.mxu0 }
 0x1d2   : > { %v2950_v16 = vadd.f32 %v2949_v36, %v7510_v40  ;;  %v3238_v25 = vpop.f32.mrf.mxu1  ;;  %v570_v40 = vld [vmem:[%s9677_s1 + $0x450] sm:$0xff] }
 0x1d3   : > { %v2951_v28 = vpop.f32.mrf.mxu0 }
 0x1d4   : > { %v8401_v4 = vadd.f32 %v3238_v25, %v2950_v16  ;;  %v3240_v51 = vpop.f32.mrf.mxu1 }
 0x1d5   : > { %v2954_v12 = vpop.f32.mrf.mxu0  ;;  %3467 = vmatmul.mubr.bf16.gmra.mxu0 %v6150_v11  ;;  %v6158_v11 = vcombine.low %v562_v63, %v566_v47  ;;  %v582_v63 = vld [vmem:[%s9677_s1 + $0x4b0] sm:$0xff] }
 0x1d6   : > { %9709 = vst [vmem:[#allocation26_spill] sm:$0xff] %v8401_v4  ;;  %v2955_v6 = vadd.f32 %v2954_v12, %v7466_v3  ;;  %v3243_v58 = vpop.f32.mrf.mxu1  ;;  %3756 = vmatmul.mubr.bf16.gmra.mxu1 %v6152_v17  ;;  %3474 = vmatprep.mubr.bf16.mxu0 %v6159_v1  ;;  %v571_v3 = vld [vmem:[%s9677_s1 + $0x458] sm:$0xff]  ;;  %v6160_v17 = vcombine.low %v563_v37, %v567_v54  ;;  %v1000_v4 = vpop.permute.xlu1 %999 }
 0x1d7   : > { %v2956_v18 = vpop.f32.mrf.mxu0  ;;  %3763 = vmatprep.mubr.bf16.mxu1 %v6161_v61  ;;  %v6167_v1 = vcombine.high %v570_v40, %v574_v26  ;;  %v995_v61 = vpop.permute.xlu0 %994  ;;  %v6169_v51 = vcombine.high %v571_v3, %v575_v31  ;;  %v579_v54 = vld [vmem:[%s9677_s1 + $0x498] sm:$0xff] }
 0x1d8   : > { %v8410_v33 = vadd.f32 %v3243_v58, %v2955_v6  ;;  %v3245_v55 = vpop.f32.mrf.mxu1 }
 0x1d9   : > { %v2957_v36 = vpop.f32.mrf.mxu0 }
 0x1da   : > { %9710 = vst [vmem:[#allocation27_spill] sm:$0xff] %v8410_v33  ;;  %v2958_v16 = vadd.f32 %v2957_v36, %v7480_v22  ;;  %v3246_v25 = vpop.f32.mrf.mxu1  ;;  %v578_v22 = vld [vmem:[%s9677_s1 + $0x490] sm:$0xff] }
 0x1db   : > { %v2959_v28 = vpop.f32.mrf.mxu0 }
 0x1dc   : > { %v8419_v12 = vadd.f32 %v3246_v25, %v2958_v16  ;;  %v3248_v6 = vpop.f32.mrf.mxu1 }
 0x1dd   : > { %v2962_v58 = vpop.f32.mrf.mxu0  ;;  %3475 = vmatmul.mubr.bf16.gmra.mxu0 %v6158_v11  ;;  %v6166_v11 = vcombine.low %v570_v40, %v574_v26  ;;  %v590_v40 = vld [vmem:[%s9677_s1 + $0x4f0] sm:$0xff] }
 0x1de   : > { %v2963_v18 = vadd.f32 %v2962_v58, %v995_v61  ;;  %v3251_v55 = vpop.f32.mrf.mxu1  ;;  %3764 = vmatmul.mubr.bf16.gmra.mxu1 %v6160_v17  ;;  %3482 = vmatprep.mubr.bf16.mxu0 %v6167_v1  ;;  %v6168_v17 = vcombine.low %v571_v3, %v575_v31  ;;  %v6175_v1 = vcombine.high %v578_v22, %v582_v63  ;;  %v591_v31 = vld [vmem:[%s9677_s1 + $0x4f8] sm:$0xff] }
 0x1df   : > { %v2964_v33 = vpop.f32.mrf.mxu0  ;;  %3771 = vmatprep.mubr.bf16.mxu1 %v6169_v51 }
 0x1e0   : > { %v8427_v47 = vadd.f32 %v3251_v55, %v2963_v18  ;;  %v3253_v37 = vpop.f32.mrf.mxu1  ;;  %v583_v33 = vld [vmem:[%s9677_s1 + $0x4b8] sm:$0xff] }
 0x1e1   : > { %v2965_v36 = vpop.f32.mrf.mxu0  ;;  %v6177_v61 = vcombine.high %v579_v54, %v583_v33 }
 0x1e2   : > { %v2966_v16 = vadd.f32 %v2965_v36, %v1000_v4  ;;  %v3254_v25 = vpop.f32.mrf.mxu1  ;;  %v586_v4 = vld [vmem:[%s9677_s1 + $0x4d0] sm:$0xff] }
 0x1e3   : > { %v2967_v28 = vpop.f32.mrf.mxu0 }
 0x1e4   : > { %v8435_v51 = vadd.f32 %v3254_v25, %v2966_v16  ;;  %v3256_v6 = vpop.f32.mrf.mxu1 }
 0x1e5   : > { %v2970_v58 = vpop.f32.mrf.mxu0  ;;  %3483 = vmatmul.mubr.bf16.gmra.mxu0 %v6166_v11  ;;  %v6174_v11 = vcombine.low %v578_v22, %v582_v63  ;;  %v598_v22 = vld [vmem:[%s9677_s1 + $0x530] sm:$0xff] }
 0x1e6   : > { %v2971_v18 = vadd.f32 %v2970_v58, %v7960_v44  ;;  %v3259_v55 = vpop.f32.mrf.mxu1  ;;  %3772 = vmatmul.mubr.bf16.gmra.mxu1 %v6168_v17  ;;  %3490 = vmatprep.mubr.bf16.mxu0 %v6175_v1  ;;  %v587_v44 = vld [vmem:[%s9677_s1 + $0x4d8] sm:$0xff]  ;;  %v6176_v17 = vcombine.low %v579_v54, %v583_v33  ;;  %v6183_v1 = vcombine.high %v586_v4, %v590_v40 }
 0x1e7   : > { %v2972_v37 = vpop.f32.mrf.mxu0  ;;  %3779 = vmatprep.mubr.bf16.mxu1 %v6177_v61  ;;  %v6185_v61 = vcombine.high %v587_v44, %v591_v31  ;;  %v599_v33 = vld [vmem:[%s9677_s1 + $0x538] sm:$0xff] }
 0x1e8   : > { %v8444_v26 = vadd.f32 %v3259_v55, %v2971_v18  ;;  %v3261_v3 = vpop.f32.mrf.mxu1 }
 0x1e9   : > { %v2973_v36 = vpop.f32.mrf.mxu0 }
 0x1ea   : > { %v2974_v16 = vadd.f32 %v2973_v36, %v7983_v20  ;;  %v3262_v25 = vpop.f32.mrf.mxu1  ;;  %v594_v20 = vld [vmem:[%s9677_s1 + $0x510] sm:$0xff] }
 0x1eb   : > { %v2975_v28 = vpop.f32.mrf.mxu0 }
 0x1ec   : > { %v8453_v6 = vadd.f32 %v3262_v25, %v2974_v16  ;;  %v3264_v58 = vpop.f32.mrf.mxu1 }
 0x1ed   : > { %v2978_v18 = vpop.f32.mrf.mxu0  ;;  %3491 = vmatmul.mubr.bf16.gmra.mxu0 %v6174_v11  ;;  %v6182_v11 = vcombine.low %v586_v4, %v590_v40  ;;  %v606_v4 = vld [vmem:[%s9677_s1 + $0x570] sm:$0xff] }
 0x1ee   : > { %v2979_v55 = vadd.f32 %v2978_v18, %v7913_v2  ;;  %v3267_v37 = vpop.f32.mrf.mxu1  ;;  %3780 = vmatmul.mubr.bf16.gmra.mxu1 %v6176_v17  ;;  %3498 = vmatprep.mubr.bf16.mxu0 %v6183_v1  ;;  %v595_v2 = vld [vmem:[%s9677_s1 + $0x518] sm:$0xff]  ;;  %v6184_v17 = vcombine.low %v587_v44, %v591_v31  ;;  %v6191_v1 = vcombine.high %v594_v20, %v598_v22 }
 0x1ef   : > { %v2980_v3 = vpop.f32.mrf.mxu0  ;;  %3787 = vmatprep.mubr.bf16.mxu1 %v6185_v61  ;;  %v6193_v61 = vcombine.high %v595_v2, %v599_v33  ;;  %v607_v31 = vld [vmem:[%s9677_s1 + $0x578] sm:$0xff] }
 0x1f0   : > { %v8462_v63 = vadd.f32 %v3267_v37, %v2979_v55  ;;  %v3269_v54 = vpop.f32.mrf.mxu1 }
 0x1f1   : > { %v2981_v36 = vpop.f32.mrf.mxu0 }
 0x1f2   : > { %9711 = vst [vmem:[#allocation28_spill] sm:$0xff] %v8462_v63  ;;  %v2982_v16 = vadd.f32 %v2981_v36, %v7924_v52  ;;  %v3270_v25 = vpop.f32.mrf.mxu1  ;;  %v602_v52 = vld [vmem:[%s9677_s1 + $0x550] sm:$0xff] }
 0x1f3   : > { %v2983_v28 = vpop.f32.mrf.mxu0 }
 0x1f4   : > { %v8471_v58 = vadd.f32 %v3270_v25, %v2982_v16  ;;  %v3272_v18 = vpop.f32.mrf.mxu1 }
 0x1f5   : > { %v2986_v55 = vpop.f32.mrf.mxu0  ;;  %3499 = vmatmul.mubr.bf16.gmra.mxu0 %v6182_v11  ;;  %v6190_v11 = vcombine.low %v594_v20, %v598_v22  ;;  %v614_v20 = vld [vmem:[%s9677_s1 + $0x5b0] sm:$0xff] }
 0x1f6   : > { %9712 = vst [vmem:[#allocation29_spill] sm:$0xff] %v8471_v58  ;;  %v2987_v37 = vadd.f32 %v2986_v55, %v7854_v27  ;;  %v3275_v3 = vpop.f32.mrf.mxu1  ;;  %3788 = vmatmul.mubr.bf16.gmra.mxu1 %v6184_v17  ;;  %3506 = vmatprep.mubr.bf16.mxu0 %v6191_v1  ;;  %v603_v27 = vld [vmem:[%s9677_s1 + $0x558] sm:$0xff]  ;;  %v6192_v17 = vcombine.low %v595_v2, %v599_v33 }
 0x1f7   : > { %v2988_v54 = vpop.f32.mrf.mxu0  ;;  %3795 = vmatprep.mubr.bf16.mxu1 %v6193_v61  ;;  %v6199_v1 = vcombine.high %v602_v52, %v606_v4  ;;  %v6201_v61 = vcombine.high %v603_v27, %v607_v31  ;;  %v615_v33 = vld [vmem:[%s9677_s1 + $0x5b8] sm:$0xff] }
 0x1f8   : > { %v8480_v40 = vadd.f32 %v3275_v3, %v2987_v37  ;;  %v3277_v44 = vpop.f32.mrf.mxu1 }
 0x1f9   : > { %v2989_v36 = vpop.f32.mrf.mxu0 }
 0x1fa   : > { %9713 = vst [vmem:[#allocation30_spill] sm:$0xff] %v8480_v40  ;;  %v2990_v16 = vadd.f32 %v2989_v36, %v7877_v21  ;;  %v3278_v25 = vpop.f32.mrf.mxu1  ;;  %v610_v21 = vld [vmem:[%s9677_s1 + $0x590] sm:$0xff] }
 0x1fb   : > { %v2991_v28 = vpop.f32.mrf.mxu0 }
 0x1fc   : > { %v8489_v18 = vadd.f32 %v3278_v25, %v2990_v16  ;;  %v3280_v55 = vpop.f32.mrf.mxu1 }
 0x1fd   : > { %v2994_v37 = vpop.f32.mrf.mxu0  ;;  %3507 = vmatmul.mubr.bf16.gmra.mxu0 %v6190_v11  ;;  %v6198_v11 = vcombine.low %v602_v52, %v606_v4  ;;  %v622_v52 = vld [vmem:[%s9677_s1 + $0x5f0] sm:$0xff] }
 0x1fe   : > { %9714 = vst [vmem:[#allocation31_spill] sm:$0xff] %v8489_v18  ;;  %v2995_v3 = vadd.f32 %v2994_v37, %v7822_v56  ;;  %v3283_v54 = vpop.f32.mrf.mxu1  ;;  %3796 = vmatmul.mubr.bf16.gmra.mxu1 %v6192_v17  ;;  %3514 = vmatprep.mubr.bf16.mxu0 %v6199_v1  ;;  %v611_v56 = vld [vmem:[%s9677_s1 + $0x598] sm:$0xff]  ;;  %v6200_v17 = vcombine.low %v603_v27, %v607_v31 }
 0x1ff   : > { %v2996_v44 = vpop.f32.mrf.mxu0  ;;  %3803 = vmatprep.mubr.bf16.mxu1 %v6201_v61  ;;  %v6207_v1 = vcombine.high %v610_v21, %v614_v20  ;;  %v6209_v61 = vcombine.high %v611_v56, %v615_v33  ;;  %v623_v31 = vld [vmem:[%s9677_s1 + $0x5f8] sm:$0xff] }
 0x200   : > { %v8498_v22 = vadd.f32 %v3283_v54, %v2995_v3  ;;  %v3285_v2 = vpop.f32.mrf.mxu1 }
 0x201   : > { %v2997_v36 = vpop.f32.mrf.mxu0 }
 0x202   : > { %9715 = vst [vmem:[#allocation32_spill] sm:$0xff] %v8498_v22  ;;  %v2998_v16 = vadd.f32 %v2997_v36, %v7827_v23  ;;  %v3286_v25 = vpop.f32.mrf.mxu1  ;;  %v618_v23 = vld [vmem:[%s9677_s1 + $0x5d0] sm:$0xff] }
 0x203   : > { %v2999_v28 = vpop.f32.mrf.mxu0 }
 0x204   : > { %v8507_v55 = vadd.f32 %v3286_v25, %v2998_v16  ;;  %v3288_v37 = vpop.f32.mrf.mxu1 }
 0x205   : > { %v3002_v3 = vpop.f32.mrf.mxu0  ;;  %3515 = vmatmul.mubr.bf16.gmra.mxu0 %v6198_v11  ;;  %v6206_v11 = vcombine.low %v610_v21, %v614_v20  ;;  %v630_v21 = vld [vmem:[%s9677_s1 + $0x630] sm:$0xff] }
 0x206   : > { %9716 = vst [vmem:[#allocation33_spill] sm:$0xff] %v8507_v55  ;;  %v3003_v54 = vadd.f32 %v3002_v3, %v7781_v14  ;;  %v3291_v44 = vpop.f32.mrf.mxu1  ;;  %3804 = vmatmul.mubr.bf16.gmra.mxu1 %v6200_v17  ;;  %3522 = vmatprep.mubr.bf16.mxu0 %v6207_v1  ;;  %v619_v14 = vld [vmem:[%s9677_s1 + $0x5d8] sm:$0xff]  ;;  %v6208_v17 = vcombine.low %v611_v56, %v615_v33 }
 0x207   : > { %v3004_v2 = vpop.f32.mrf.mxu0  ;;  %3811 = vmatprep.mubr.bf16.mxu1 %v6209_v61  ;;  %v6215_v1 = vcombine.high %v618_v23, %v622_v52  ;;  %v6217_v61 = vcombine.high %v619_v14, %v623_v31  ;;  %v631_v33 = vld [vmem:[%s9677_s1 + $0x638] sm:$0xff] }
 0x208   : > { %v8516_v4 = vadd.f32 %v3291_v44, %v3003_v54  ;;  %v3293_v27 = vpop.f32.mrf.mxu1 }
 0x209   : > { %v3005_v36 = vpop.f32.mrf.mxu0 }
 0x20a   : > { %9717 = vst [vmem:[#allocation34_spill] sm:$0xff] %v8516_v4  ;;  %v3006_v16 = vadd.f32 %v3005_v36, %v7798_v34  ;;  %v3294_v25 = vpop.f32.mrf.mxu1  ;;  %v626_v34 = vld [vmem:[%s9677_s1 + $0x610] sm:$0xff] }
 0x20b   : > { %v3007_v28 = vpop.f32.mrf.mxu0 }
 0x20c   : > { %v8525_v37 = vadd.f32 %v3294_v25, %v3006_v16  ;;  %v3296_v3 = vpop.f32.mrf.mxu1 }
 0x20d   : > { %v3010_v54 = vpop.f32.mrf.mxu0  ;;  %3523 = vmatmul.mubr.bf16.gmra.mxu0 %v6206_v11  ;;  %v6214_v11 = vcombine.low %v618_v23, %v622_v52  ;;  %v638_v23 = vld [vmem:[%s9677_s1 + $0x670] sm:$0xff] }
 0x20e   : > { %9718 = vst [vmem:[#allocation35_spill] sm:$0xff] %v8525_v37  ;;  %v3011_v44 = vadd.f32 %v3010_v54, %v7756_v53  ;;  %v3299_v2 = vpop.f32.mrf.mxu1  ;;  %3812 = vmatmul.mubr.bf16.gmra.mxu1 %v6208_v17  ;;  %3530 = vmatprep.mubr.bf16.mxu0 %v6215_v1  ;;  %v627_v53 = vld [vmem:[%s9677_s1 + $0x618] sm:$0xff]  ;;  %v6216_v17 = vcombine.low %v619_v14, %v623_v31 }
 0x20f   : > { %v3012_v27 = vpop.f32.mrf.mxu0  ;;  %3819 = vmatprep.mubr.bf16.mxu1 %v6217_v61  ;;  %v6223_v1 = vcombine.high %v626_v34, %v630_v21  ;;  %v6225_v61 = vcombine.high %v627_v53, %v631_v33  ;;  %v639_v31 = vld [vmem:[%s9677_s1 + $0x678] sm:$0xff] }
 0x210   : > { %v8534_v20 = vadd.f32 %v3299_v2, %v3011_v44  ;;  %v3301_v56 = vpop.f32.mrf.mxu1 }
 0x211   : > { %v3013_v36 = vpop.f32.mrf.mxu0 }
 0x212   : > { %9719 = vst [vmem:[#allocation36_spill] sm:$0xff] %v8534_v20  ;;  %v3014_v16 = vadd.f32 %v3013_v36, %v7758_v0  ;;  %v3302_v25 = vpop.f32.mrf.mxu1  ;;  %v634_v0 = vld [vmem:[%s9677_s1 + $0x650] sm:$0xff] }
 0x213   : > { %v3015_v28 = vpop.f32.mrf.mxu0 }
 0x214   : > { %v8543_v3 = vadd.f32 %v3302_v25, %v3014_v16  ;;  %v3304_v54 = vpop.f32.mrf.mxu1  ;;  %v9722_v16 = vld [vmem:[#allocation6_spill] sm:$0xff]  ;;  %v6231_v28 = vcombine.high %v634_v0, %v638_v23 }
 0x215   : > { %v3018_v44 = vpop.f32.mrf.mxu0  ;;  %3531 = vmatmul.mubr.bf16.gmra.mxu0 %v6214_v11  ;;  %v6222_v11 = vcombine.low %v626_v34, %v630_v21  ;;  %v642_v34 = vld [vmem:[%s9677_s1 + $0x690] sm:$0xff] }
 0x216   : > { %9720 = vst [vmem:[#allocation37_spill] sm:$0xff] %v8543_v3  ;;  %v3019_v2 = vadd.f32 %v3018_v44, %v7724_v19  ;;  %v3307_v27 = vpop.f32.mrf.mxu1  ;;  %3820 = vmatmul.mubr.bf16.gmra.mxu1 %v6216_v17  ;;  %3538 = vmatprep.mubr.bf16.mxu0 %v6223_v1  ;;  %v635_v19 = vld [vmem:[%s9677_s1 + $0x658] sm:$0xff]  ;;  %v6224_v1 = vcombine.low %v627_v53, %v631_v33  ;;  %v646_v21 = vld [vmem:[%s9677_s1 + $0x6b0] sm:$0xff] }
 0x217   : > { %v3020_v56 = vpop.f32.mrf.mxu0  ;;  %3827 = vmatprep.mubr.bf16.mxu1 %v6225_v61  ;;  %v6233_v54 = vcombine.high %v635_v19, %v639_v31 }
 0x218   : > { %v8552_v52 = vadd.f32 %v3307_v27, %v3019_v2  ;;  %v3309_v14 = vpop.f32.mrf.mxu1  ;;  %v9724_v56 = vld [vmem:[#allocation7_spill] sm:$0xff] }
 0x219   : > { %v3021_v36 = vpop.f32.mrf.mxu0 }
 0x21a   : > { %9721 = vst [vmem:[#allocation38_spill] sm:$0xff] %v8552_v52  ;;  %v3022_v25 = vadd.f32 %v3021_v36, %v9722_v16  ;;  %v3310_v17 = vpop.f32.mrf.mxu1  ;;  %v643_v36 = vld [vmem:[%s9677_s1 + $0x698] sm:$0xff]  ;;  %v6230_v16 = vcombine.low %v634_v0, %v638_v23  ;;  %v650_v0 = vld [vmem:[%s9677_s1 + $0x6d0] sm:$0xff] }
 0x21b   : > { %v3023_v61 = vpop.f32.mrf.mxu0  ;;  %v654_v23 = vld [vmem:[%s9677_s1 + $0x6f0] sm:$0xff] }
 0x21c   : > { %v8561_v44 = vadd.f32 %v3310_v17, %v3022_v25  ;;  %v3312_v2 = vpop.f32.mrf.mxu1  ;;  %v9725_v25 = vld [vmem:[#allocation8_spill] sm:$0xff]  ;;  %v6239_v61 = vcombine.high %v642_v34, %v646_v21 }
 0x21d   : > { %v3348_v27 = vpop.f32.mrf.mxu0  ;;  %3539 = vmatmul.mubr.bf16.gmra.mxu0 %v6222_v11  ;;  %v647_v11 = vld [vmem:[%s9677_s1 + $0x6b8] sm:$0xff] }
 0x21e   : > { %9723 = vst [vmem:[#allocation6_spill] sm:$0xff] %v8561_v44  ;;  %v3349_v14 = vadd.f32 %v3348_v27, %v9724_v56  ;;  %v3637_v52 = vpop.f32.mrf.mxu1  ;;  %3828 = vmatmul.mubr.bf16.gmra.mxu1 %v6224_v1  ;;  %3546 = vmatprep.mubr.bf16.mxu0 %v6231_v28  ;;  %v6232_v28 = vcombine.low %v635_v19, %v639_v31  ;;  %v9726_v44 = vld [vmem:[#allocation9_spill] sm:$0xff] }
 0x21f   : > { %v3350_v3 = vpop.f32.mrf.mxu0  ;;  %3835 = vmatprep.mubr.bf16.mxu1 %v6233_v54  ;;  %v6241_v2 = vcombine.high %v643_v36, %v647_v11 }
 0x220   : > { %v3638_v53 = vadd.f32 %v3637_v52, %v3349_v14  ;;  %v3639_v33 = vpop.f32.mrf.mxu1 }
 0x221   : > { %v3351_v3 = vpop.f32.mrf.mxu0 }
 0x222   : > { %v3352_v17 = vadd.f32 %v3351_v3, %v9725_v25  ;;  %v3640_v1 = vpop.f32.mrf.mxu1  ;;  %v3892_v14 = vmax.f32 %v3638_v53, 0.0  ;;  %v9727_v25 = vld [vmem:[#allocation10_spill] sm:$0xff] }
 0x223   : > { %v3353_v54 = vpop.f32.mrf.mxu0 }
 0x224   : > { %v3641_v27 = vadd.f32 %v3640_v1, %v3352_v17  ;;  %v3642_v52 = vpop.f32.mrf.mxu1 }
 0x225   : > { %v3356_v56 = vpop.f32.mrf.mxu0  ;;  %3547 = vmatmul.mubr.bf16.gmra.mxu0 %v6230_v16  ;;  %v6238_v16 = vcombine.low %v642_v34, %v646_v21  ;;  %v658_v34 = vld [vmem:[%s9677_s1 + $0x710] sm:$0xff] }
 0x226   : > { %v3893_v33 = vmax.f32 %v3641_v27, 0.0  ;;  %v3357_v20 = vadd.f32 %v3356_v56, %v9726_v44  ;;  %v3645_v37 = vpop.f32.mrf.mxu1  ;;  %3836 = vmatmul.mubr.bf16.gmra.mxu1 %v6232_v28  ;;  %3554 = vmatprep.mubr.bf16.mxu0 %v6239_v61  ;;  %v651_v44 = vld [vmem:[%s9677_s1 + $0x6d8] sm:$0xff]  ;;  %v6240_v28 = vcombine.low %v643_v36, %v647_v11  ;;  %v6247_v61 = vcombine.high %v650_v0, %v654_v23  ;;  %v662_v21 = vld [vmem:[%s9677_s1 + $0x730] sm:$0xff] }
 0x227   : > { %v3358_v4 = vpop.f32.mrf.mxu0  ;;  %3843 = vmatprep.mubr.bf16.mxu1 %v6241_v2 }
 0x228   : > { %v8584_v19 = vpack.c.bf16 %v3893_v33, %v3892_v14  ;;  %v3646_v31 = vadd.f32 %v3645_v37, %v3357_v20  ;;  %v3647_v53 = vpop.f32.mrf.mxu1  ;;  %v655_v4 = vld [vmem:[%s9677_s1 + $0x6f8] sm:$0xff]  ;;  %v9728_v14 = vld [vmem:[#allocation11_spill] sm:$0xff] }
 0x229   : > { %v3359_v3 = vpop.f32.mrf.mxu0  ;;  %v6249_v2 = vcombine.high %v651_v44, %v655_v4 }
 0x22a   : > { %v3360_v17 = vadd.f32 %v3359_v3, %v9727_v25  ;;  %v3648_v1 = vpop.f32.mrf.mxu1  ;;  %v3894_v52 = vmax.f32 %v3646_v31, 0.0  ;;  %v659_v3 = vld [vmem:[%s9677_s1 + $0x718] sm:$0xff]  ;;  %v6246_v25 = vcombine.low %v650_v0, %v654_v23  ;;  %v666_v0 = vld [vmem:[%s9677_s1 + $0x750] sm:$0xff] }
 0x22b   : > { %v3361_v54 = vpop.f32.mrf.mxu0  ;;  %v670_v23 = vld [vmem:[%s9677_s1 + $0x770] sm:$0xff] }
 0x22c   : > { %v3649_v27 = vadd.f32 %v3648_v1, %v3360_v17  ;;  %v3650_v37 = vpop.f32.mrf.mxu1  ;;  %v9729_v17 = vld [vmem:[#allocation12_spill] sm:$0xff]  ;;  %v6255_v54 = vcombine.high %v658_v34, %v662_v21 }
 0x22d   : > { %v3364_v20 = vpop.f32.mrf.mxu0  ;;  %3555 = vmatmul.mubr.bf16.gmra.mxu0 %v6238_v16 }
 0x22e   : > { %v3895_v56 = vmax.f32 %v3649_v27, 0.0  ;;  %v3365_v33 = vadd.f32 %v3364_v20, %v9728_v14  ;;  %v3653_v53 = vpop.f32.mrf.mxu1  ;;  %3844 = vmatmul.mubr.bf16.gmra.mxu1 %v6240_v28  ;;  %3562 = vmatprep.mubr.bf16.mxu0 %v6247_v61  ;;  %v6248_v61 = vcombine.low %v651_v44, %v655_v4 }
 0x22f   : > { %v3366_v55 = vpop.f32.mrf.mxu0  ;;  %3851 = vmatprep.mubr.bf16.mxu1 %v6249_v2 }
 0x230   : > { %v8600_v36 = vpack.c.bf16 %v3895_v56, %v3894_v52  ;;  %v3654_v11 = vadd.f32 %v3653_v53, %v3365_v33  ;;  %v3655_v31 = vpop.f32.mrf.mxu1  ;;  %v663_v55 = vld [vmem:[%s9677_s1 + $0x738] sm:$0xff] }
 0x231   : > { %v3367_v16 = vpop.f32.mrf.mxu0  ;;  %v6257_v27 = vcombine.high %v659_v3, %v663_v55  ;;  %v9730_v33 = vld [vmem:[#allocation13_spill] sm:$0xff] }
 0x232   : > { %v3368_v1 = vadd.f32 %v3367_v16, %v9729_v17  ;;  %v3656_v28 = vpop.f32.mrf.mxu1  ;;  %v3896_v56 = vmax.f32 %v3654_v11, 0.0  ;;  %v667_v11 = vld [vmem:[%s9677_s1 + $0x758] sm:$0xff] }
 0x233   : > { %v3369_v2 = vpop.f32.mrf.mxu0 }
 0x234   : > { %v3657_v37 = vadd.f32 %v3656_v28, %v3368_v1  ;;  %v3658_v20 = vpop.f32.mrf.mxu1  ;;  %v9731_v1 = vld [vmem:[#allocation14_spill] sm:$0xff]  ;;  %v6263_v2 = vcombine.high %v666_v0, %v670_v23 }
 0x235   : > { %v3372_v52 = vpop.f32.mrf.mxu0  ;;  %3563 = vmatmul.mubr.bf16.gmra.mxu0 %v6246_v25  ;;  %v6254_v25 = vcombine.low %v658_v34, %v662_v21  ;;  %v674_v21 = vld [vmem:[%s9677_s1 + $0x790] sm:$0xff] }
 0x236   : > { %v3897_v14 = vmax.f32 %v3657_v37, 0.0  ;;  %v3373_v53 = vadd.f32 %v3372_v52, %v9730_v33  ;;  %v3661_v31 = vpop.f32.mrf.mxu1  ;;  %3852 = vmatmul.mubr.bf16.gmra.mxu1 %v6248_v61  ;;  %3570 = vmatprep.mubr.bf16.mxu0 %v6255_v54  ;;  %v6256_v54 = vcombine.low %v659_v3, %v663_v55  ;;  %v678_v3 = vld [vmem:[%s9677_s1 + $0x7b0] sm:$0xff] }
 0x237   : > { %v3374_v22 = vpop.f32.mrf.mxu0  ;;  %3859 = vmatprep.mubr.bf16.mxu1 %v6257_v27 }
 0x238   : > { %v8616_v44 = vpack.c.bf16 %v3897_v14, %v3896_v56  ;;  %v3663_v4 = vpop.f32.mrf.mxu1  ;;  %v671_v22 = vld [vmem:[%s9677_s1 + $0x778] sm:$0xff]  ;;  %v3662_v17 = vadd.f32 %v3661_v31, %v3373_v53 }
 0x239   : > { %v3375_v16 = vpop.f32.mrf.mxu0  ;;  %v6265_v37 = vcombine.high %v667_v11, %v671_v22  ;;  %v9732_v4 = vld [vmem:[#allocation15_spill] sm:$0xff]  ;;  %v675_v31 = vld [vmem:[%s9677_s1 + $0x798] sm:$0xff] }
 0x23a   : > { %v3376_v28 = vadd.f32 %v3375_v16, %v9731_v1  ;;  %v3664_v61 = vpop.f32.mrf.mxu1  ;;  %v3898_v14 = vmax.f32 %v3662_v17, 0.0  ;;  %v679_v16 = vld [vmem:[%s9677_s1 + $0x7b8] sm:$0xff]  ;;  %v6262_v17 = vcombine.low %v666_v0, %v670_v23 }
 0x23b   : > { %v3377_v27 = vpop.f32.mrf.mxu0 }
 0x23c   : > { %v3665_v20 = vadd.f32 %v3664_v61, %v3376_v28  ;;  %v3666_v52 = vpop.f32.mrf.mxu1  ;;  %v9733_v28 = vld [vmem:[#allocation16_spill] sm:$0xff]  ;;  %v6271_v27 = vcombine.high %v674_v21, %v678_v3 }
 0x23d   : > { %v3380_v56 = vpop.f32.mrf.mxu0  ;;  %3571 = vmatmul.mubr.bf16.gmra.mxu0 %v6254_v25 }
 0x23e   : > { %v3899_v33 = vmax.f32 %v3665_v20, 0.0  ;;  %v3381_v18 = vadd.f32 %v3380_v56, %v9732_v4  ;;  %v3669_v40 = vpop.f32.mrf.mxu1  ;;  %3860 = vmatmul.mubr.bf16.gmra.mxu1 %v6256_v54  ;;  %3578 = vmatprep.mubr.bf16.mxu0 %v6263_v2  ;;  %v6264_v2 = vcombine.low %v667_v11, %v671_v22  ;;  %v6273_v20 = vcombine.high %v675_v31, %v679_v16  ;;  %v683_v22 = vld [vmem:[%s9677_s1 + $0x7d8] sm:$0xff] }
 0x23f   : > { %v3382_v34 = vpop.f32.mrf.mxu0  ;;  %3867 = vmatprep.mubr.bf16.mxu1 %v6265_v37 }
 0x240   : > { %v8632_v55 = vpack.c.bf16 %v3899_v33, %v3898_v14  ;;  %v3671_v53 = vpop.f32.mrf.mxu1  ;;  %v3670_v1 = vadd.f32 %v3669_v40, %v3381_v18  ;;  %v9734_v34 = vld [vmem:[#allocation17_spill] sm:$0xff]  ;;  %v682_v40 = vld [vmem:[%s9677_s1 + $0x7d0] sm:$0xff] }
 0x241   : > { %v3383_v25 = vpop.f32.mrf.mxu0  ;;  %v686_v18 = vld [vmem:[%s9677_s1 + $0x7f0] sm:$0xff] }
 0x242   : > { %v3384_v61 = vadd.f32 %v3383_v25, %v9733_v28  ;;  %v3672_v54 = vpop.f32.mrf.mxu1  ;;  %v3900_v33 = vmax.f32 %v3670_v1, 0.0  ;;  %v687_v25 = vld [vmem:[%s9677_s1 + $0x7f8] sm:$0xff]  ;;  %v6270_v1 = vcombine.low %v674_v21, %v678_v3 }
 0x243   : > { %v3385_v37 = vpop.f32.mrf.mxu0 }
 0x244   : > { %v3673_v52 = vadd.f32 %v3672_v54, %v3384_v61  ;;  %v3674_v56 = vpop.f32.mrf.mxu1  ;;  %v9735_v61 = vld [vmem:[#allocation18_spill] sm:$0xff]  ;;  %v6279_v37 = vcombine.high %v682_v40, %v686_v18 }
 0x245   : > { %v3388_v14 = vpop.f32.mrf.mxu0  ;;  %3579 = vmatmul.mubr.bf16.gmra.mxu0 %v6262_v17 }
 0x246   : > { %v3901_v4 = vmax.f32 %v3673_v52, 0.0  ;;  %v3389_v53 = vadd.f32 %v3388_v14, %v9734_v34  ;;  %v3677_v58 = vpop.f32.mrf.mxu1  ;;  %3868 = vmatmul.mubr.bf16.gmra.mxu1 %v6264_v2  ;;  %3586 = vmatprep.mubr.bf16.mxu0 %v6271_v27  ;;  %v6272_v27 = vcombine.low %v675_v31, %v679_v16  ;;  %v6281_v52 = vcombine.high %v683_v22, %v687_v25 }
 0x247   : > { %v3390_v0 = vpop.f32.mrf.mxu0  ;;  %3875 = vmatprep.mubr.bf16.mxu1 %v6273_v20  ;;  %v6278_v31 = vcombine.low %v682_v40, %v686_v18 }
 0x248   : > { %v8648_v23 = vpack.c.bf16 %v3901_v4, %v3900_v33  ;;  %v3679_v11 = vpop.f32.mrf.mxu1  ;;  %v3678_v28 = vadd.f32 %v3677_v58, %v3389_v53  ;;  %v9736_v0 = vld [vmem:[#allocation19_spill] sm:$0xff] }
 0x249   : > { %v3391_v17 = vpop.f32.mrf.mxu0 }
 0x24a   : > { %v3392_v54 = vadd.f32 %v3391_v17, %v9735_v61  ;;  %v3680_v2 = vpop.f32.mrf.mxu1  ;;  %v3902_v4 = vmax.f32 %v3678_v28, 0.0  ;;  %v9737_v17 = vld [vmem:[#allocation20_spill] sm:$0xff] }
 0x24b   : > { %v3393_v20 = vpop.f32.mrf.mxu0 }
 0x24c   : > { %v3681_v56 = vadd.f32 %v3680_v2, %v3392_v54  ;;  %v3682_v14 = vpop.f32.mrf.mxu1  ;;  %v6280_v2 = vcombine.low %v683_v22, %v687_v25 }
 0x24d   : > { %v3396_v33 = vpop.f32.mrf.mxu0  ;;  %3587 = vmatmul.mubr.bf16.gmra.mxu0 %v6270_v1  ;;  %v6648_v1 = vld [vmem:[%s9679_s3 + $0x4] ss:$16 sps:$4 sm:$0xff]   ;;  %v9738_v14 = vld [vmem:[#allocation21_spill] sm:$0xff] }
 0x24e   : > { %v3903_v34 = vmax.f32 %v3681_v56, 0.0  ;;  %v3397_v11 = vadd.f32 %v3396_v33, %v9736_v0  ;;  %v3685_v63 = vpop.f32.mrf.mxu1  ;;  %3876 = vmatmul.mubr.bf16.gmra.mxu1 %v6272_v27  ;;  %3594 = vmatprep.mubr.bf16.mxu0 %v6279_v37 }
 0x24f   : > { %v3398_v21 = vpop.f32.mrf.mxu0  ;;  %3883 = vmatprep.mubr.bf16.mxu1 %v6281_v52 }
 0x250   : > { %v3961_v58 = vpack.c.bf16 %v3903_v34, %v3902_v4  ;;  %v3687_v3 = vpop.f32.mrf.mxu1  ;;  %v3686_v16 = vadd.f32 %v3685_v63, %v3397_v11  ;;  %v9739_v34 = vld [vmem:[#allocation22_spill] sm:$0xff] }
 0x251   : > { %v3399_v53 = vpop.f32.mrf.mxu0 }
 0x252   : > { %v3400_v61 = vadd.f32 %v3399_v53, %v9737_v17  ;;  %v3688_v54 = vpop.f32.mrf.mxu1  ;;  %v3904_v37 = vmax.f32 %v3686_v16, 0.0 }
 0x253   : > { %v3401_v28 = vpop.f32.mrf.mxu0 }
 0x254   : > { %v3689_v20 = vadd.f32 %v3688_v54, %v3400_v61  ;;  %v3690_v56 = vpop.f32.mrf.mxu1  ;;  %v9740_v61 = vld [vmem:[#allocation23_spill] sm:$0xff] }
 0x255   : > { %v3404_v27 = vpop.f32.mrf.mxu0  ;;  %3595 = vmatmul.mubr.bf16.gmra.mxu0 %v6278_v31 }
 0x256   : > { %v3905_v52 = vmax.f32 %v3689_v20, 0.0  ;;  %v3405_v33 = vadd.f32 %v3404_v27, %v9738_v14  ;;  %v3693_v4 = vpop.f32.mrf.mxu1  ;;  %3884 = vmatmul.mubr.bf16.gmra.mxu1 %v6280_v2  ;;  %5172 = vmatprep.mubr.bf16.mxu0 %v6648_v1 }
 0x257   : > { %v3406_v63 = vpop.f32.mrf.mxu0 }
 0x258   : > { %v3962_v40 = vpack.c.bf16 %v3905_v52, %v3904_v37  ;;  %v3695_v18 = vpop.f32.mrf.mxu1  ;;  %v3694_v25 = vadd.f32 %v3693_v4, %v3405_v33  ;;  %v9741_v33 = vmov 0  }
 0x259   : > { %v3407_v22 = vpop.f32.mrf.mxu0 }
 0x25a   : > { %v3408_v0 = vadd.f32 %v3407_v22, %v9739_v34  ;;  %v3696_v11 = vpop.f32.mrf.mxu1  ;;  %v3906_v31 = vmax.f32 %v3694_v25, 0.0 }
 0x25b   : > { %v3409_v21 = vpop.f32.mrf.mxu0 }
 0x25c   : > { %v3697_v3 = vadd.f32 %v3696_v11, %v3408_v0  ;;  %v3698_v53 = vpop.f32.mrf.mxu1 }
 0x25d   : > { %v3412_v17 = vpop.f32.mrf.mxu0 }
 0x25e   : > { %v3907_v16 = vmax.f32 %v3697_v3, 0.0  ;;  %v3413_v54 = vadd.f32 %v3412_v17, %v9740_v61  ;;  %v3701_v28 = vpop.f32.mrf.mxu1 }
 0x25f   : > { %v3414_v20 = vpop.f32.mrf.mxu0 }
 0x260   : > { %v3963_v2 = vpack.c.bf16 %v3907_v16, %v3906_v31  ;;  %v3702_v1 = vadd.f32 %v3701_v28, %v3413_v54  ;;  %v3703_v56 = vpop.f32.mrf.mxu1 }
 0x261   : > { %v3415_v27 = vpop.f32.mrf.mxu0 }
 0x262   : > { %v3416_v37 = vadd.f32 %v3415_v27, %v8020_v57  ;;  %v3704_v52 = vpop.f32.mrf.mxu1  ;;  %5141 = vmatpush1.bf16.msra.mxu0 %v3963_v2  ;;  %v3908_v22 = vmax.f32 %v3702_v1, 0.0 }
 0x263   : > { %v3417_v14 = vpop.f32.mrf.mxu0  ;;  %5142 = vmatprep.subr.bf16.mxu0 %v9741_v33 }
 0x264   : > { %v3705_v4 = vadd.f32 %v3704_v52, %v3416_v37  ;;  %v3706_v63 = vpop.f32.mrf.mxu1 }
 0x265   : > { %v3420_v18 = vpop.f32.mrf.mxu0 }
 0x266   : > { %v3909_v25 = vmax.f32 %v3705_v4, 0.0  ;;  %v3421_v34 = vadd.f32 %v3420_v18, %v8035_v42  ;;  %v3709_v0 = vpop.f32.mrf.mxu1  ;;  %5143 = vmatpush1.bf16.msra.mxu0 %v3962_v40 }
 0x267   : > { %v3422_v11 = vpop.f32.mrf.mxu0  ;;  %5144 = vmatprep.subr.bf16.mxu0 %v9741_v33 }
 0x268   : > { %v8669_v21 = vpack.c.bf16 %v3909_v25, %v3908_v22  ;;  %v3710_v57 = vadd.f32 %v3709_v0, %v3421_v34  ;;  %v3711_v3 = vpop.f32.mrf.mxu1 }
 0x269   : > { %v3423_v53 = vpop.f32.mrf.mxu0 }
 0x26a   : > { %v3424_v17 = vadd.f32 %v3423_v53, %v8050_v10  ;;  %v3712_v31 = vpop.f32.mrf.mxu1  ;;  %5145 = vmatpush1.bf16.msra.mxu0 %v3961_v58  ;;  %v3910_v28 = vmax.f32 %v3710_v57, 0.0 }
 0x26b   : > { %v3425_v16 = vpop.f32.mrf.mxu0  ;;  %5146 = vmatprep.subr.bf16.mxu0 %v9741_v33 }
 0x26c   : > { %v3713_v61 = vadd.f32 %v3712_v31, %v3424_v17  ;;  %v3714_v54 = vpop.f32.mrf.mxu1 }
 0x26d   : > { %v3428_v42 = vpop.f32.mrf.mxu0 }
 0x26e   : > { %v3911_v40 = vmax.f32 %v3713_v61, 0.0  ;;  %v3429_v20 = vadd.f32 %v3428_v42, %v8065_v39  ;;  %v3717_v2 = vpop.f32.mrf.mxu1  ;;  %5147 = vmatpush1.bf16.msra.mxu0 %v8648_v23 }
 0x26f   : > { %v3430_v1 = vpop.f32.mrf.mxu0  ;;  %5148 = vmatprep.subr.bf16.mxu0 %v9741_v33 }
 0x270   : > { %v8676_v56 = vpack.c.bf16 %v3911_v40, %v3910_v28  ;;  %v3718_v10 = vadd.f32 %v3717_v2, %v3429_v20  ;;  %v3719_v58 = vpop.f32.mrf.mxu1 }
 0x271   : > { %v3431_v27 = vpop.f32.mrf.mxu0 }
 0x272   : > { %v3432_v37 = vadd.f32 %v3431_v27, %v8080_v35  ;;  %v3720_v52 = vpop.f32.mrf.mxu1  ;;  %5149 = vmatpush1.bf16.msra.mxu0 %v8632_v55  ;;  %v3912_v23 = vmax.f32 %v3718_v10, 0.0 }
 0x273   : > { %v3433_v14 = vpop.f32.mrf.mxu0  ;;  %5150 = vmatprep.subr.bf16.mxu0 %v9741_v33 }
 0x274   : > { %v3721_v39 = vadd.f32 %v3720_v52, %v3432_v37  ;;  %v3722_v4 = vpop.f32.mrf.mxu1 }
 0x275   : > { %v3436_v63 = vpop.f32.mrf.mxu0 }
 0x276   : > { %v3913_v18 = vmax.f32 %v3721_v39, 0.0  ;;  %v3437_v22 = vadd.f32 %v3436_v63, %v8095_v48  ;;  %v3725_v25 = vpop.f32.mrf.mxu1  ;;  %5151 = vmatpush1.bf16.msra.mxu0 %v8616_v44 }
 0x277   : > { %v3438_v34 = vpop.f32.mrf.mxu0  ;;  %5152 = vmatprep.subr.bf16.mxu0 %v9741_v33 }
 0x278   : > { %v8684_v35 = vpack.c.bf16 %v3913_v18, %v3912_v23  ;;  %v3727_v0 = vpop.f32.mrf.mxu1  ;;  %v3726_v11 = vadd.f32 %v3725_v25, %v3437_v22 }
 0x279   : > { %v3439_v55 = vpop.f32.mrf.mxu0 }
 0x27a   : > { %v3440_v57 = vadd.f32 %v3439_v55, %v8110_v41  ;;  %v3728_v3 = vpop.f32.mrf.mxu1  ;;  %5153 = vmatpush1.bf16.msra.mxu0 %v8600_v36  ;;  %v3914_v44 = vmax.f32 %v3726_v11, 0.0 }
 0x27b   : > { %v3441_v53 = vpop.f32.mrf.mxu0  ;;  %5154 = vmatprep.subr.bf16.mxu0 %v9741_v33 }
 0x27c   : > { %v3729_v48 = vadd.f32 %v3728_v3, %v3440_v57  ;;  %v3730_v17 = vpop.f32.mrf.mxu1 }
 0x27d   : > { %v3444_v31 = vpop.f32.mrf.mxu0 }
 0x27e   : > { %v3915_v16 = vmax.f32 %v3729_v48, 0.0  ;;  %v3445_v61 = vadd.f32 %v3444_v31, %v8125_v62  ;;  %v3733_v54 = vpop.f32.mrf.mxu1  ;;  %5155 = vmatpush1.bf16.msra.mxu0 %v8584_v19 }
 0x27f   : > { %v3446_v42 = vpop.f32.mrf.mxu0  ;;  %5156 = vmatprep.subr.bf16.mxu0 %v9741_v33 }
 0x280   : > { %v8692_v41 = vpack.c.bf16 %v3915_v16, %v3914_v44  ;;  %v3735_v28 = vpop.f32.mrf.mxu1  ;;  %v3734_v40 = vadd.f32 %v3733_v54, %v3445_v61 }
 0x281   : > { %v3447_v36 = vpop.f32.mrf.mxu0 }
 0x282   : > { %v3448_v20 = vadd.f32 %v3447_v36, %v8140_v50  ;;  %v3736_v2 = vpop.f32.mrf.mxu1  ;;  %v3916_v37 = vmax.f32 %v3734_v40, 0.0 }
 0x283   : > { %v3449_v1 = vpop.f32.mrf.mxu0 }
 0x284   : > { %v3737_v10 = vadd.f32 %v3736_v2, %v3448_v20  ;;  %v3738_v58 = vpop.f32.mrf.mxu1 }
 0x285   : > { %v3452_v27 = vpop.f32.mrf.mxu0 }
 0x286   : > { %v3917_v62 = vmax.f32 %v3737_v10, 0.0  ;;  %v3453_v52 = vadd.f32 %v3452_v27, %v8155_v5  ;;  %v3741_v19 = vpop.f32.mrf.mxu1 }
 0x287   : > { %v3454_v14 = vpop.f32.mrf.mxu0 }
 0x288   : > { %v8696_v39 = vpack.c.bf16 %v3917_v62, %v3916_v37  ;;  %v3743_v4 = vpop.f32.mrf.mxu1  ;;  %v3742_v23 = vadd.f32 %v3741_v19, %v3453_v52 }
 0x289   : > { %v3455_v63 = vpop.f32.mrf.mxu0 }
 0x28a   : > { %v3456_v18 = vadd.f32 %v3455_v63, %v8170_v9  ;;  %v3744_v22 = vpop.f32.mrf.mxu1  ;;  %v3918_v55 = vmax.f32 %v3742_v23, 0.0 }
 0x28b   : > { %v3457_v50 = vpop.f32.mrf.mxu0 }
 0x28c   : > { %v3745_v25 = vadd.f32 %v3744_v22, %v3456_v18  ;;  %v3746_v34 = vpop.f32.mrf.mxu1 }
 0x28d   : > { %v3460_v0 = vpop.f32.mrf.mxu0 }
 0x28e   : > { %v3919_v11 = vmax.f32 %v3745_v25, 0.0  ;;  %v3461_v57 = vadd.f32 %v3460_v0, %v8185_v32  ;;  %v3749_v3 = vpop.f32.mrf.mxu1 }
 0x28f   : > { %v3462_v5 = vpop.f32.mrf.mxu0 }
 0x290   : > { %v3969_v53 = vpack.c.bf16 %v3919_v11, %v3918_v55  ;;  %v3751_v48 = vpop.f32.mrf.mxu1  ;;  %v3750_v31 = vadd.f32 %v3749_v3, %v3461_v57 }
 0x291   : > { %v3463_v17 = vpop.f32.mrf.mxu0 }
 0x292   : > { %v3464_v44 = vadd.f32 %v3463_v17, %v8200_v30  ;;  %v3752_v16 = vpop.f32.mrf.mxu1  ;;  %v3920_v28 = vmax.f32 %v3750_v31, 0.0 }
 0x293   : > { %v3465_v61 = vpop.f32.mrf.mxu0 }
 0x294   : > { %v3753_v9 = vadd.f32 %v3752_v16, %v3464_v44  ;;  %v3754_v54 = vpop.f32.mrf.mxu1 }
 0x295   : > { %v3468_v42 = vpop.f32.mrf.mxu0 }
 0x296   : > { %v3921_v36 = vmax.f32 %v3753_v9, 0.0  ;;  %v3469_v40 = vadd.f32 %v3468_v42, %v8215_v8  ;;  %v3757_v20 = vpop.f32.mrf.mxu1 }
 0x297   : > { %v3470_v2 = vpop.f32.mrf.mxu0 }
 0x298   : > { %v3970_v32 = vpack.c.bf16 %v3921_v36, %v3920_v28  ;;  %v3759_v1 = vpop.f32.mrf.mxu1  ;;  %v3758_v58 = vadd.f32 %v3757_v20, %v3469_v40 }
 0x299   : > { %v3471_v10 = vpop.f32.mrf.mxu0 }
 0x29a   : > { %v3472_v27 = vadd.f32 %v3471_v10, %v8230_v15  ;;  %v3760_v37 = vpop.f32.mrf.mxu1  ;;  %v3922_v14 = vmax.f32 %v3758_v58, 0.0 }
 0x29b   : > { %v3473_v62 = vpop.f32.mrf.mxu0 }
 0x29c   : > { %v3761_v30 = vadd.f32 %v3760_v37, %v3472_v27  ;;  %v3762_v52 = vpop.f32.mrf.mxu1 }
 0x29d   : > { %v3476_v19 = vpop.f32.mrf.mxu0 }
 0x29e   : > { %v3923_v4 = vmax.f32 %v3761_v30, 0.0  ;;  %v3477_v63 = vadd.f32 %v3476_v19, %v8245_v13  ;;  %v3765_v23 = vpop.f32.mrf.mxu1  ;;  %v9742_v19 = vld [vmem:[#allocation24_spill] sm:$0xff] }
 0x29f   : > { %v3478_v18 = vpop.f32.mrf.mxu0 }
 0x2a0   : > { %v3971_v8 = vpack.c.bf16 %v3923_v4, %v3922_v14  ;;  %v3766_v22 = vadd.f32 %v3765_v23, %v3477_v63  ;;  %v3767_v50 = vpop.f32.mrf.mxu1 }
 0x2a1   : > { %v3479_v25 = vpop.f32.mrf.mxu0 }
 0x2a2   : > { %v3480_v34 = vadd.f32 %v3479_v25, %v8260_v29  ;;  %v3768_v0 = vpop.f32.mrf.mxu1  ;;  %5157 = vmatpush2.bf16.msra.mxu0 %v3971_v8  ;;  %v3924_v3 = vmax.f32 %v3766_v22, 0.0 }
 0x2a3   : > { %v3481_v15 = vpop.f32.mrf.mxu0  ;;  %5158 = vmatprep.subr.bf16.mxu0 %v9741_v33 }
 0x2a4   : > { %v3769_v55 = vadd.f32 %v3768_v0, %v3480_v34  ;;  %v3770_v11 = vpop.f32.mrf.mxu1 }
 0x2a5   : > { %v3484_v57 = vpop.f32.mrf.mxu0  ;;  %v9743_v11 = vld [vmem:[#allocation25_spill] sm:$0xff] }
 0x2a6   : > { %v3925_v5 = vmax.f32 %v3769_v55, 0.0  ;;  %v3485_v13 = vadd.f32 %v3484_v57, %v8275_v7  ;;  %v3773_v48 = vpop.f32.mrf.mxu1  ;;  %5159 = vmatpush2.bf16.msra.mxu0 %v3970_v32 }
 0x2a7   : > { %v3486_v17 = vpop.f32.mrf.mxu0  ;;  %5160 = vmatprep.subr.bf16.mxu0 %v9741_v33 }
 0x2a8   : > { %v8708_v31 = vpack.c.bf16 %v3925_v5, %v3924_v3  ;;  %v3774_v29 = vadd.f32 %v3773_v48, %v3485_v13  ;;  %v3775_v44 = vpop.f32.mrf.mxu1  ;;  %v6699_v5 = vld [vmem:[%s9679_s3 + $0xc] ss:$16 sps:$4 sm:$0xff]  }
 0x2a9   : > { %v3487_v16 = vpop.f32.mrf.mxu0  ;;  %5461 = vmatprep.mubr.bf16.mxu1 %v6699_v5 }
 0x2aa   : > { %v3488_v61 = vadd.f32 %v3487_v16, %v8290_v43  ;;  %v3776_v9 = vpop.f32.mrf.mxu1  ;;  %5161 = vmatpush2.bf16.msra.mxu0 %v3969_v53  ;;  %v3926_v36 = vmax.f32 %v3774_v29, 0.0 }
 0x2ab   : > { %v3489_v54 = vpop.f32.mrf.mxu0  ;;  %5162 = vmatprep.subr.bf16.mxu0 %v9741_v33 }
 0x2ac   : > { %v3777_v42 = vadd.f32 %v3776_v9, %v3488_v61  ;;  %v3778_v28 = vpop.f32.mrf.mxu1 }
 0x2ad   : > { %v3492_v7 = vpop.f32.mrf.mxu0 }
 0x2ae   : > { %v3927_v40 = vmax.f32 %v3777_v42, 0.0  ;;  %v3493_v20 = vadd.f32 %v3492_v7, %v8305_v38  ;;  %v3781_v2 = vpop.f32.mrf.mxu1  ;;  %5163 = vmatpush2.bf16.msra.mxu0 %v8696_v39  ;;  %v6649_v42 = vld [vmem:[%s9679_s3 + $0x20] ss:$16 sps:$4 sm:$0xff]  }
 0x2af   : > { %v3494_v32 = vpop.f32.mrf.mxu0  ;;  %5164 = vmatprep.subr.bf16.mxu0 %v9741_v33 }
 0x2b0   : > { %v8715_v1 = vpack.c.bf16 %v3927_v40, %v3926_v36  ;;  %v3782_v43 = vadd.f32 %v3781_v2, %v3493_v20  ;;  %v3783_v53 = vpop.f32.mrf.mxu1  ;;  %v6654_v20 = vld [vmem:[%s9679_s3 + $0x44] ss:$16 sps:$4 sm:$0xff]  }
 0x2b1   : > { %v3495_v10 = vpop.f32.mrf.mxu0 }
 0x2b2   : > { %v3496_v58 = vadd.f32 %v3495_v10, %v8320_v59  ;;  %v3784_v27 = vpop.f32.mrf.mxu1  ;;  %5165 = vmatpush2.bf16.msra.mxu0 %v8692_v41  ;;  %v3928_v39 = vmax.f32 %v3782_v43, 0.0 }
 0x2b3   : > { %v3497_v37 = vpop.f32.mrf.mxu0  ;;  %5166 = vmatprep.subr.bf16.mxu0 %v9741_v33 }
 0x2b4   : > { %v3785_v38 = vadd.f32 %v3784_v27, %v3496_v58  ;;  %v3786_v62 = vpop.f32.mrf.mxu1 }
 0x2b5   : > { %v3500_v30 = vpop.f32.mrf.mxu0  ;;  %v6652_v62 = vld [vmem:[%s9679_s3 + $0x40] ss:$16 sps:$4 sm:$0xff]  }
 0x2b6   : > { %v3929_v52 = vmax.f32 %v3785_v38, 0.0  ;;  %v3501_v14 = vadd.f32 %v3500_v30, %v9742_v19  ;;  %v3789_v4 = vpop.f32.mrf.mxu1  ;;  %5167 = vmatpush2.bf16.msra.mxu0 %v8684_v35  ;;  %v6646_v35 = vld [vmem:[%s9679_s3] ss:$16 sps:$4 sm:$0xff]  }
 0x2b7   : > { %v3502_v63 = vpop.f32.mrf.mxu0  ;;  %5168 = vmatprep.subr.bf16.mxu0 %v9741_v33 }
 0x2b8   : > { %v8723_v59 = vpack.c.bf16 %v3929_v52, %v3928_v39  ;;  %v3791_v23 = vpop.f32.mrf.mxu1  ;;  %v3790_v18 = vadd.f32 %v3789_v4, %v3501_v14  ;;  %v6657_v14 = vld [vmem:[%s9679_s3 + $0x64] ss:$16 sps:$4 sm:$0xff]  }
 0x2b9   : > { %v3503_v41 = vpop.f32.mrf.mxu0 }
 0x2ba   : > { %v3504_v8 = vadd.f32 %v3503_v41, %v8347_v46  ;;  %v3792_v22 = vpop.f32.mrf.mxu1  ;;  %5169 = vmatpush2.bf16.msra.mxu0 %v8676_v56  ;;  %v3930_v15 = vmax.f32 %v3790_v18, 0.0  ;;  %v6651_v46 = vld [vmem:[%s9679_s3 + $0x24] ss:$16 sps:$4 sm:$0xff]  }
 0x2bb   : > { %v3505_v50 = vpop.f32.mrf.mxu0  ;;  %5170 = vmatprep.subr.bf16.mxu0 %v9741_v33  ;;  %v9744_v18 = vld [vmem:[#allocation26_spill] sm:$0xff] }
 0x2bc   : > { %v3793_v25 = vadd.f32 %v3792_v22, %v3504_v8  ;;  %v3794_v34 = vpop.f32.mrf.mxu1 }
 0x2bd   : > { %v3508_v0 = vpop.f32.mrf.mxu0 }
 0x2be   : > { %v3931_v55 = vmax.f32 %v3793_v25, 0.0  ;;  %v3509_v57 = vadd.f32 %v3508_v0, %v9743_v11  ;;  %v3797_v3 = vpop.f32.mrf.mxu1  ;;  %5171 = vmatpush2.bf16.msra.mxu0 %v8669_v21  ;;  %v6655_v0 = vld [vmem:[%s9679_s3 + $0x60] ss:$16 sps:$4 sm:$0xff]  }
 0x2bf   : > { %v3510_v56 = vpop.f32.mrf.mxu0 }
 0x2c0   : > { %v8739_v13 = vpack.c.bf16 %v3931_v55, %v3930_v15  ;;  %v3799_v48 = vpop.f32.mrf.mxu1  ;;  %v3798_v29 = vadd.f32 %v3797_v3, %v3509_v57  ;;  %v9745_v55 = vld [vmem:[#allocation27_spill] sm:$0xff]  ;;  %v6660_v3 = vld [vmem:[%s9679_s3 + $0x84] ss:$16 sps:$4 sm:$0xff]  }
 0x2c1   : > { %v3511_v17 = vpop.f32.mrf.mxu0  ;;  %5173 = vmatmul.mubr.bf16.vlgmr.msra.gmra.mxu0 %v6646_v35 }
 0x2c2   : > { %v3512_v44 = vadd.f32 %v3511_v17, %v8365_v49  ;;  %v3800_v16 = vpop.f32.mrf.mxu1  ;;  %5180 = vmatprep.mubr.bf16.mxu0 %v6651_v46  ;;  %v3932_v28 = vmax.f32 %v3798_v29, 0.0 }
 0x2c3   : > { %v3513_v21 = vpop.f32.mrf.mxu0 }
 0x2c4   : > { %v3801_v61 = vadd.f32 %v3800_v16, %v3512_v44  ;;  %v3802_v9 = vpop.f32.mrf.mxu1 }
 0x2c5   : > { %v3516_v54 = vpop.f32.mrf.mxu0 }
 0x2c6   : > { %v3933_v7 = vmax.f32 %v3801_v61, 0.0  ;;  %v3517_v36 = vadd.f32 %v3516_v54, %v8374_v45  ;;  %v3805_v40 = vpop.f32.mrf.mxu1  ;;  %v6658_v54 = vld [vmem:[%s9679_s3 + $0x80] ss:$16 sps:$4 sm:$0xff]  }
 0x2c7   : > { %v3518_v49 = vpop.f32.mrf.mxu0 }
 0x2c8   : > { %v8749_v2 = vpack.c.bf16 %v3933_v7, %v3932_v28  ;;  %v3807_v32 = vpop.f32.mrf.mxu1  ;;  %v3806_v53 = vadd.f32 %v3805_v40, %v3517_v36  ;;  %v6663_v40 = vld [vmem:[%s9679_s3 + $0xa4] ss:$16 sps:$4 sm:$0xff]  }
 0x2c9   : > { %v3519_v43 = vpop.f32.mrf.mxu0  ;;  %5181 = vmatmul.mubr.bf16.gmra.mxu0 %v6649_v42 }
 0x2ca   : > { %v3520_v10 = vadd.f32 %v3519_v43, %v8383_v60  ;;  %v3808_v58 = vpop.f32.mrf.mxu1  ;;  %5188 = vmatprep.mubr.bf16.mxu0 %v6654_v20  ;;  %v3934_v30 = vmax.f32 %v3806_v53, 0.0 }
 0x2cb   : > { %v3521_v27 = vpop.f32.mrf.mxu0 }
 0x2cc   : > { %v3809_v37 = vadd.f32 %v3808_v58, %v3520_v10  ;;  %v3810_v38 = vpop.f32.mrf.mxu1 }
 0x2cd   : > { %v3524_v45 = vpop.f32.mrf.mxu0  ;;  %v6661_v38 = vld [vmem:[%s9679_s3 + $0xa0] ss:$16 sps:$4 sm:$0xff]  }
 0x2ce   : > { %v3935_v39 = vmax.f32 %v3809_v37, 0.0  ;;  %v3525_v52 = vadd.f32 %v3524_v45, %v8392_v24  ;;  %v3813_v19 = vpop.f32.mrf.mxu1 }
 0x2cf   : > { %v3526_v60 = vpop.f32.mrf.mxu0 }
 0x2d0   : > { %v8759_v4 = vpack.c.bf16 %v3935_v39, %v3934_v30  ;;  %v3815_v63 = vpop.f32.mrf.mxu1  ;;  %v3814_v41 = vadd.f32 %v3813_v19, %v3525_v52 }
 0x2d1   : > { %v3527_v23 = vpop.f32.mrf.mxu0  ;;  %5189 = vmatmul.mubr.bf16.gmra.mxu0 %v6652_v62 }
 0x2d2   : > { %v3528_v8 = vadd.f32 %v3527_v23, %v9744_v18  ;;  %v3816_v22 = vpop.f32.mrf.mxu1  ;;  %5196 = vmatprep.mubr.bf16.mxu0 %v6657_v14  ;;  %v3936_v35 = vmax.f32 %v3814_v41, 0.0 }
 0x2d3   : > { %v3529_v50 = vpop.f32.mrf.mxu0 }
 0x2d4   : > { %v3817_v25 = vadd.f32 %v3816_v22, %v3528_v8  ;;  %v3818_v34 = vpop.f32.mrf.mxu1  ;;  %v6664_v50 = vld [vmem:[%s9679_s3 + $0xc0] ss:$16 sps:$4 sm:$0xff]  }
 0x2d5   : > { %v3532_v24 = vpop.f32.mrf.mxu0 }
 0x2d6   : > { %v3937_v15 = vmax.f32 %v3817_v25, 0.0  ;;  %v3533_v11 = vadd.f32 %v3532_v24, %v9745_v55  ;;  %v3821_v57 = vpop.f32.mrf.mxu1  ;;  %v9746_v24 = vld [vmem:[#allocation28_spill] sm:$0xff] }
 0x2d7   : > { %v3534_v46 = vpop.f32.mrf.mxu0 }
 0x2d8   : > { %v3978_v56 = vpack.c.bf16 %v3937_v15, %v3936_v35  ;;  %v3823_v5 = vpop.f32.mrf.mxu1  ;;  %v3822_v17 = vadd.f32 %v3821_v57, %v3533_v11 }
 0x2d9   : > { %v3535_v48 = vpop.f32.mrf.mxu0  ;;  %5197 = vmatmul.mubr.bf16.gmra.mxu0 %v6655_v0 }
 0x2da   : > { %v3536_v29 = vadd.f32 %v3535_v48, %v8419_v12  ;;  %v3824_v44 = vpop.f32.mrf.mxu1  ;;  %5204 = vmatprep.mubr.bf16.mxu0 %v6660_v3  ;;  %v3938_v42 = vmax.f32 %v3822_v17, 0.0  ;;  %v9747_v3 = vld [vmem:[#allocation29_spill] sm:$0xff] }
 0x2db   : > { %v3537_v16 = vpop.f32.mrf.mxu0 }
 0x2dc   : > { %v3825_v21 = vadd.f32 %v3824_v44, %v3536_v29  ;;  %v3826_v61 = vpop.f32.mrf.mxu1  ;;  %v6667_v29 = vld [vmem:[%s9679_s3 + $0xe0] ss:$16 sps:$4 sm:$0xff]  }
 0x2dd   : > { %v3540_v9 = vpop.f32.mrf.mxu0 }
 0x2de   : > { %v3939_v28 = vmax.f32 %v3825_v21, 0.0  ;;  %v3541_v7 = vadd.f32 %v3540_v9, %v8427_v47  ;;  %v3829_v36 = vpop.f32.mrf.mxu1  ;;  %v9748_v21 = vld [vmem:[#allocation30_spill] sm:$0xff] }
 0x2df   : > { %v3542_v12 = vpop.f32.mrf.mxu0 }
 0x2e0   : > { %v3979_v20 = vpack.c.bf16 %v3939_v28, %v3938_v42  ;;  %v3830_v49 = vadd.f32 %v3829_v36, %v3541_v7  ;;  %v3831_v32 = vpop.f32.mrf.mxu1 }
 0x2e1   : > { %v3543_v43 = vpop.f32.mrf.mxu0  ;;  %5205 = vmatmul.mubr.bf16.gmra.mxu0 %v6658_v54 }
 0x2e2   : > { %v3544_v53 = vadd.f32 %v3543_v43, %v8435_v51  ;;  %v3832_v10 = vpop.f32.mrf.mxu1  ;;  %5430 = vmatpush1.bf16.msra.mxu1 %v3979_v20  ;;  %5212 = vmatprep.mubr.bf16.mxu0 %v6663_v40  ;;  %v3940_v45 = vmax.f32 %v3830_v49, 0.0  ;;  %v6666_v51 = vld [vmem:[%s9679_s3 + $0xc4] ss:$16 sps:$4 sm:$0xff]   ;;  %v9749_v40 = vld [vmem:[#allocation31_spill] sm:$0xff] }
 0x2e3   : > { %v3545_v58 = vpop.f32.mrf.mxu0  ;;  %5431 = vmatprep.subr.bf16.mxu1 %v9741_v33 }
 0x2e4   : > { %v3833_v47 = vadd.f32 %v3832_v10, %v3544_v53  ;;  %v3834_v27 = vpop.f32.mrf.mxu1  ;;  %v6670_v53 = vld [vmem:[%s9679_s3 + $0x100] ss:$16 sps:$4 sm:$0xff]  }
 0x2e5   : > { %v3548_v37 = vpop.f32.mrf.mxu0 }
 0x2e6   : > { %v3941_v62 = vmax.f32 %v3833_v47, 0.0  ;;  %v3549_v30 = vadd.f32 %v3548_v37, %v8444_v26  ;;  %v3837_v39 = vpop.f32.mrf.mxu1  ;;  %5432 = vmatpush1.bf16.msra.mxu1 %v3978_v56  ;;  %v9750_v47 = vld [vmem:[#allocation32_spill] sm:$0xff] }
 0x2e7   : > { %v3550_v52 = vpop.f32.mrf.mxu0  ;;  %5433 = vmatprep.subr.bf16.mxu1 %v9741_v33 }
 0x2e8   : > { %v8787_v19 = vpack.c.bf16 %v3941_v62, %v3940_v45  ;;  %v3838_v14 = vadd.f32 %v3837_v39, %v3549_v30  ;;  %v3839_v60 = vpop.f32.mrf.mxu1 }
 0x2e9   : > { %v3551_v63 = vpop.f32.mrf.mxu0  ;;  %5213 = vmatmul.mubr.bf16.gmra.mxu0 %v6661_v38 }
 0x2ea   : > { %v3552_v23 = vadd.f32 %v3551_v63, %v8453_v6  ;;  %v3840_v41 = vpop.f32.mrf.mxu1  ;;  %5434 = vmatpush1.bf16.msra.mxu1 %v8759_v4  ;;  %5220 = vmatprep.mubr.bf16.mxu0 %v6666_v51  ;;  %v3942_v25 = vmax.f32 %v3838_v14, 0.0  ;;  %v6669_v6 = vld [vmem:[%s9679_s3 + $0xe4] ss:$16 sps:$4 sm:$0xff]   ;;  %v9751_v51 = vld [vmem:[#allocation33_spill] sm:$0xff] }
 0x2eb   : > { %v3553_v26 = vpop.f32.mrf.mxu0  ;;  %5435 = vmatprep.subr.bf16.mxu1 %v9741_v33 }
 0x2ec   : > { %v3841_v18 = vadd.f32 %v3840_v41, %v3552_v23  ;;  %v3842_v8 = vpop.f32.mrf.mxu1  ;;  %v6673_v41 = vld [vmem:[%s9679_s3 + $0x120] ss:$16 sps:$4 sm:$0xff]  }
 0x2ed   : > { %v3556_v22 = vpop.f32.mrf.mxu0  ;;  %v9752_v8 = vld [vmem:[#allocation34_spill] sm:$0xff] }
 0x2ee   : > { %v3943_v34 = vmax.f32 %v3841_v18, 0.0  ;;  %v3557_v0 = vadd.f32 %v3556_v22, %v9746_v24  ;;  %v3845_v35 = vpop.f32.mrf.mxu1  ;;  %5436 = vmatpush1.bf16.msra.mxu1 %v8749_v2 }
 0x2ef   : > { %v3558_v4 = vpop.f32.mrf.mxu0  ;;  %5437 = vmatprep.subr.bf16.mxu1 %v9741_v33 }
 0x2f0   : > { %v8801_v15 = vpack.c.bf16 %v3943_v34, %v3942_v25  ;;  %v3846_v55 = vadd.f32 %v3845_v35, %v3557_v0  ;;  %v3847_v11 = vpop.f32.mrf.mxu1  ;;  %v6678_v25 = vld [vmem:[%s9679_s3 + $0x144] ss:$16 sps:$4 sm:$0xff]   ;;  %v9753_v4 = vld [vmem:[#allocation35_spill] sm:$0xff] }
 0x2f1   : > { %v3559_v57 = vpop.f32.mrf.mxu0  ;;  %5221 = vmatmul.mubr.bf16.gmra.mxu0 %v6664_v50 }
 0x2f2   : > { %v3560_v46 = vadd.f32 %v3559_v57, %v9747_v3  ;;  %v3848_v56 = vpop.f32.mrf.mxu1  ;;  %5438 = vmatpush1.bf16.msra.mxu1 %v8739_v13  ;;  %5228 = vmatprep.mubr.bf16.mxu0 %v6669_v6  ;;  %v3944_v44 = vmax.f32 %v3846_v55, 0.0  ;;  %v6672_v13 = vld [vmem:[%s9679_s3 + $0x104] ss:$16 sps:$4 sm:$0xff]  }
 0x2f3   : > { %v3561_v2 = vpop.f32.mrf.mxu0  ;;  %5439 = vmatprep.subr.bf16.mxu1 %v9741_v33 }
 0x2f4   : > { %v3849_v5 = vadd.f32 %v3848_v56, %v3560_v46  ;;  %v3850_v48 = vpop.f32.mrf.mxu1  ;;  %v6676_v2 = vld [vmem:[%s9679_s3 + $0x140] ss:$16 sps:$4 sm:$0xff]  }
 0x2f5   : > { %v3564_v17 = vpop.f32.mrf.mxu0 }
 0x2f6   : > { %v3945_v16 = vmax.f32 %v3849_v5, 0.0  ;;  %v3565_v61 = vadd.f32 %v3564_v17, %v9748_v21  ;;  %v3853_v9 = vpop.f32.mrf.mxu1  ;;  %5440 = vmatpush1.bf16.msra.mxu1 %v8723_v59  ;;  %v9754_v17 = vld [vmem:[#allocation36_spill] sm:$0xff] }
 0x2f7   : > { %v3566_v54 = vpop.f32.mrf.mxu0  ;;  %5441 = vmatprep.subr.bf16.mxu1 %v9741_v33 }
 0x2f8   : > { %v8815_v42 = vpack.c.bf16 %v3945_v16, %v3944_v44  ;;  %v3855_v28 = vpop.f32.mrf.mxu1  ;;  %v3854_v36 = vadd.f32 %v3853_v9, %v3565_v61  ;;  %v6681_v16 = vld [vmem:[%s9679_s3 + $0x164] ss:$16 sps:$4 sm:$0xff]  }
 0x2f9   : > { %v3567_v7 = vpop.f32.mrf.mxu0  ;;  %5229 = vmatmul.mubr.bf16.gmra.mxu0 %v6667_v29  ;;  %v9755_v28 = vld [vmem:[#allocation37_spill] sm:$0xff] }
 0x2fa   : > { %v3568_v12 = vadd.f32 %v3567_v7, %v9749_v40  ;;  %v3856_v20 = vpop.f32.mrf.mxu1  ;;  %5442 = vmatpush1.bf16.msra.mxu1 %v8715_v1  ;;  %5236 = vmatprep.mubr.bf16.mxu0 %v6672_v13  ;;  %v3946_v10 = vmax.f32 %v3854_v36, 0.0  ;;  %v6675_v1 = vld [vmem:[%s9679_s3 + $0x124] ss:$16 sps:$4 sm:$0xff]  }
 0x2fb   : > { %v3569_v59 = vpop.f32.mrf.mxu0  ;;  %5443 = vmatprep.subr.bf16.mxu1 %v9741_v33 }
 0x2fc   : > { %v3857_v49 = vadd.f32 %v3856_v20, %v3568_v12  ;;  %v3858_v32 = vpop.f32.mrf.mxu1 }
 0x2fd   : > { %v3572_v43 = vpop.f32.mrf.mxu0 }
 0x2fe   : > { %v3947_v58 = vmax.f32 %v3857_v49, 0.0  ;;  %v3573_v27 = vadd.f32 %v3572_v43, %v9750_v47  ;;  %v3861_v37 = vpop.f32.mrf.mxu1  ;;  %5444 = vmatpush1.bf16.msra.mxu1 %v8708_v31  ;;  %v6679_v49 = vld [vmem:[%s9679_s3 + $0x160] ss:$16 sps:$4 sm:$0xff]   ;;  %v6684_v47 = vld [vmem:[%s9679_s3 + $0x184] ss:$16 sps:$4 sm:$0xff]  }
 0x2ff   : > { %v3574_v38 = vpop.f32.mrf.mxu0  ;;  %5445 = vmatprep.subr.bf16.mxu1 %v9741_v33 }
 0x300   : > { %v8829_v45 = vpack.c.bf16 %v3947_v58, %v3946_v10  ;;  %v3863_v62 = vpop.f32.mrf.mxu1  ;;  %v3862_v39 = vadd.f32 %v3861_v37, %v3573_v27 }
 0x301   : > { %v3575_v30 = vpop.f32.mrf.mxu0  ;;  %5237 = vmatmul.mubr.bf16.gmra.mxu0 %v6670_v53  ;;  %v9756_v53 = vld [vmem:[#allocation38_spill] sm:$0xff] }
 0x302   : > { %v3576_v52 = vadd.f32 %v3575_v30, %v9751_v51  ;;  %v3864_v14 = vpop.f32.mrf.mxu1  ;;  %5244 = vmatprep.mubr.bf16.mxu0 %v6675_v1  ;;  %v3948_v26 = vmax.f32 %v3862_v39, 0.0  ;;  %v9757_v30 = vld [vmem:[#allocation6_spill] sm:$0xff] }
 0x303   : > { %v3577_v60 = vpop.f32.mrf.mxu0 }
 0x304   : > { %v3865_v63 = vadd.f32 %v3864_v14, %v3576_v52  ;;  %v3866_v31 = vpop.f32.mrf.mxu1 }
 0x305   : > { %v3580_v23 = vpop.f32.mrf.mxu0 }
 0x306   : > { %v3949_v18 = vmax.f32 %v3865_v63, 0.0  ;;  %v3581_v22 = vadd.f32 %v3580_v23, %v9752_v8  ;;  %v3869_v50 = vpop.f32.mrf.mxu1  ;;  %v6682_v63 = vld [vmem:[%s9679_s3 + $0x180] ss:$16 sps:$4 sm:$0xff]   ;;  %v6690_v8 = vld [vmem:[%s9679_s3 + $0x1c4] ss:$16 sps:$4 sm:$0xff]  }
 0x307   : > { %v3582_v34 = vpop.f32.mrf.mxu0 }
 0x308   : > { %v8839_v24 = vpack.c.bf16 %v3949_v18, %v3948_v26  ;;  %v3871_v0 = vpop.f32.mrf.mxu1  ;;  %v3870_v6 = vadd.f32 %v3869_v50, %v3581_v22  ;;  %v6685_v18 = vld [vmem:[%s9679_s3 + $0x1a0] ss:$16 sps:$4 sm:$0xff]   ;;  %v6693_v50 = vld [vmem:[%s9679_s3 + $0x1e4] ss:$16 sps:$4 sm:$0xff]  }
 0x309   : > { %v3583_v35 = vpop.f32.mrf.mxu0  ;;  %5245 = vmatmul.mubr.bf16.gmra.mxu0 %v6673_v41  ;;  %v6687_v41 = vld [vmem:[%s9679_s3 + $0x1a4] ss:$16 sps:$4 sm:$0xff]   ;;  %v6688_v22 = vld [vmem:[%s9679_s3 + $0x1c0] ss:$16 sps:$4 sm:$0xff]  }
 0x30a   : > { %v3584_v55 = vadd.f32 %v3583_v35, %v9753_v4  ;;  %v3872_v11 = vpop.f32.mrf.mxu1  ;;  %5252 = vmatprep.mubr.bf16.mxu0 %v6678_v25  ;;  %v3950_v5 = vmax.f32 %v3870_v6, 0.0  ;;  %v6691_v25 = vld [vmem:[%s9679_s3 + $0x1e0] ss:$16 sps:$4 sm:$0xff]   ;;  %v6696_v34 = vld [vmem:[%s9679_s3 + $0x204] ss:$16 sps:$4 sm:$0xff]  }
 0x30b   : > { %v3585_v57 = vpop.f32.mrf.mxu0  ;;  %v6708_v0 = vld [vmem:[%s9679_s3 + $0x244] ss:$16 sps:$4 sm:$0xff]   ;;  %v6711_v35 = vld [vmem:[%s9679_s3 + $0x4c] ss:$16 sps:$4 sm:$0xff]   ;;  %v6706_v6 = vld [vmem:[%s9679_s3 + $0x240] ss:$16 sps:$4 sm:$0xff]  }
 0x30c   : > { %v3873_v3 = vadd.f32 %v3872_v11, %v3584_v55  ;;  %v3874_v46 = vpop.f32.mrf.mxu1  ;;  %v6709_v4 = vld [vmem:[%s9679_s3 + $0x48] ss:$16 sps:$4 sm:$0xff]   ;;  %v6714_v55 = vld [vmem:[%s9679_s3 + $0x264] ss:$16 sps:$4 sm:$0xff]   ;;  %v6717_v11 = vld [vmem:[%s9679_s3 + $0x6c] ss:$16 sps:$4 sm:$0xff]   ;;  %v8930_v57 = vpop.permute.xlu0 %4332 }
 0x30d   : > { %v3588_v56 = vpop.f32.mrf.mxu0  ;;  %9758 = vst [vmem:[#allocation7_spill] sm:$0xff] %v8930_v57  ;;  %v6712_v46 = vld [vmem:[%s9679_s3 + $0x260] ss:$16 sps:$4 sm:$0xff]  }
 0x30e   : > { %v3951_v48 = vmax.f32 %v3873_v3, 0.0  ;;  %v3589_v29 = vadd.f32 %v3588_v56, %v9754_v17  ;;  %v3877_v44 = vpop.f32.mrf.mxu1  ;;  %v8932_v3 = vpop.permute.xlu1 %4337  ;;  %v6715_v56 = vld [vmem:[%s9679_s3 + $0x68] ss:$16 sps:$4 sm:$0xff]  }
 0x30f   : > { %v3590_v21 = vpop.f32.mrf.mxu0  ;;  %9759 = vst [vmem:[#allocation8_spill] sm:$0xff] %v8932_v3 }
 0x310   : > { %v3985_v61 = vpack.c.bf16 %v3951_v48, %v3950_v5  ;;  %v3879_v9 = vpop.f32.mrf.mxu1  ;;  %v3878_v54 = vadd.f32 %v3877_v44, %v3589_v29  ;;  %v6723_v5 = vld [vmem:[%s9679_s3 + $0x8c] ss:$16 sps:$4 sm:$0xff]   ;;  %v8946_v48 = vpop.permute.xlu0 %4252  ;;  %v6718_v44 = vld [vmem:[%s9679_s3 + $0x280] ss:$16 sps:$4 sm:$0xff]   ;;  %v6726_v21 = vld [vmem:[%s9679_s3 + $0x2a4] ss:$16 sps:$4 sm:$0xff]  }
 0x311   : > { %v3591_v13 = vpop.f32.mrf.mxu0  ;;  %5253 = vmatmul.mubr.bf16.gmra.mxu0 %v6676_v2  ;;  %v6720_v2 = vld [vmem:[%s9679_s3 + $0x284] ss:$16 sps:$4 sm:$0xff]  }
 0x312   : > { %v3592_v7 = vadd.f32 %v3591_v13, %v9755_v28  ;;  %v3880_v36 = vpop.f32.mrf.mxu1  ;;  %5260 = vmatprep.mubr.bf16.mxu0 %v6681_v16  ;;  %v3952_v32 = vmax.f32 %v3878_v54, 0.0  ;;  %v8948_v17 = vpop.permute.xlu1 %4257  ;;  %v6721_v16 = vld [vmem:[%s9679_s3 + $0x88] ss:$16 sps:$4 sm:$0xff]   ;;  %v6724_v54 = vld [vmem:[%s9679_s3 + $0x2a0] ss:$16 sps:$4 sm:$0xff]  }
 0x313   : > { %v3593_v40 = vpop.f32.mrf.mxu0  ;;  %v6727_v28 = vld [vmem:[%s9679_s3 + $0xa8] ss:$16 sps:$4 sm:$0xff]  }
 0x314   : > { %v3881_v12 = vadd.f32 %v3880_v36, %v3592_v7  ;;  %v3882_v20 = vpop.f32.mrf.mxu1  ;;  %v8950_v29 = vpop.permute.xlu0 %4492  ;;  %v6732_v36 = vld [vmem:[%s9679_s3 + $0x2c4] ss:$16 sps:$4 sm:$0xff]   ;;  %v6735_v40 = vld [vmem:[%s9679_s3 + $0xcc] ss:$16 sps:$4 sm:$0xff]  }
 0x315   : > { %v3596_v59 = vpop.f32.mrf.mxu0  ;;  %9760 = vst [vmem:[#allocation9_spill] sm:$0xff] %v8950_v29 }
 0x316   : > { %v3953_v43 = vmax.f32 %v3881_v12, 0.0  ;;  %v3597_v10 = vadd.f32 %v3596_v59, %v9756_v53  ;;  %v3885_v58 = vpop.f32.mrf.mxu1  ;;  %v8964_v9 = vpop.permute.xlu1 %4497  ;;  %v6730_v59 = vld [vmem:[%s9679_s3 + $0x2c0] ss:$16 sps:$4 sm:$0xff]  }
 0x317   : > { %v3598_v27 = vpop.f32.mrf.mxu0  ;;  %9761 = vst [vmem:[#allocation10_spill] sm:$0xff] %v8964_v9 }
 0x318   : > { %v3986_v37 = vpack.c.bf16 %v3953_v43, %v3952_v32  ;;  %v3887_v1 = vpop.f32.mrf.mxu1  ;;  %v3886_v62 = vadd.f32 %v3885_v58, %v3597_v10  ;;  %v8966_v13 = vpop.permute.xlu0 %4412  ;;  %v6738_v32 = vld [vmem:[%s9679_s3 + $0x2e4] ss:$16 sps:$4 sm:$0xff]   ;;  %v6741_v43 = vld [vmem:[%s9679_s3 + $0xec] ss:$16 sps:$4 sm:$0xff]   ;;  %v6739_v27 = vld [vmem:[%s9679_s3 + $0xe8] ss:$16 sps:$4 sm:$0xff]  }
 0x319   : > { %v3599_v38 = vpop.f32.mrf.mxu0  ;;  %5261 = vmatmul.mubr.bf16.gmra.mxu0 %v6679_v49  ;;  %9762 = vst [vmem:[#allocation11_spill] sm:$0xff] %v8966_v13  ;;  %v6733_v49 = vld [vmem:[%s9679_s3 + $0xc8] ss:$16 sps:$4 sm:$0xff]   ;;  %v6747_v1 = vld [vmem:[%s9679_s3 + $0x10c] ss:$16 sps:$4 sm:$0xff]  }
 0x31a   : > { %v3600_v39 = vadd.f32 %v3599_v38, %v9757_v30  ;;  %v3888_v51 = vpop.f32.mrf.mxu1  ;;  %5268 = vmatprep.mubr.bf16.mxu0 %v6684_v47  ;;  %v3954_v31 = vmax.f32 %v3886_v62, 0.0  ;;  %v8974_v7 = vpop.permute.xlu1 %4417  ;;  %v6736_v47 = vld [vmem:[%s9679_s3 + $0x2e0] ss:$16 sps:$4 sm:$0xff]  }
 0x31b   : > { %v3601_v52 = vpop.f32.mrf.mxu0  ;;  %9763 = vst [vmem:[#allocation12_spill] sm:$0xff] %v8974_v7  ;;  %v6742_v30 = vld [vmem:[%s9679_s3 + $0x300] ss:$16 sps:$4 sm:$0xff]   ;;  %v6802_v7 = vld [vmem:[%s9679_s3 + $0x288] ss:$16 sps:$4 sm:$0xff]  }
 0x31c   : > { %v3889_v14 = vadd.f32 %v3888_v51, %v3600_v39  ;;  %v3890_v60 = vpop.f32.mrf.mxu1  ;;  %v8982_v12 = vpop.permute.xlu0 %4322  ;;  %v6745_v39 = vld [vmem:[%s9679_s3 + $0x108] ss:$16 sps:$4 sm:$0xff]   ;;  %v6750_v52 = vld [vmem:[%s9679_s3 + $0x324] ss:$16 sps:$4 sm:$0xff]  }
 0x31d   : > { %9764 = vst [vmem:[#allocation13_spill] sm:$0xff] %v8982_v12 }
 0x31e   : > { %v3955_v23 = vmax.f32 %v3889_v14, 0.0  ;;  %v8984_v20 = vpop.permute.xlu1 %4327  ;;  %v6753_v14 = vld [vmem:[%s9679_s3 + $0x12c] ss:$16 sps:$4 sm:$0xff]  }
 0x31f   : > { %9765 = vst [vmem:[#allocation14_spill] sm:$0xff] %v8984_v20 }
 0x320   : > { %v3987_v26 = vpack.c.bf16 %v3955_v23, %v3954_v31  ;;  %v8998_v53 = vpop.permute.xlu0 %4242 }
 0x321   : > { %5269 = vmatmul.mubr.bf16.gmra.mxu0 %v6682_v63 }
 0x322   : > { %5446 = vmatpush2.bf16.msra.mxu1 %v3987_v26  ;;  %5276 = vmatprep.mubr.bf16.mxu0 %v6687_v41  ;;  %v9000_v10 = vpop.permute.xlu1 %4247  ;;  %v6748_v26 = vld [vmem:[%s9679_s3 + $0x320] ss:$16 sps:$4 sm:$0xff]  }
 0x323   : > { %5447 = vmatprep.subr.bf16.mxu1 %v9741_v33 }
 0x324   : > { %v9002_v58 = vpop.permute.xlu0 %4482 }
 0x325   : > { %9766 = vst [vmem:[#allocation15_spill] sm:$0xff] %v9002_v58  ;;  %v6801_v58 = vld [vmem:[%s9679_s3 + $0x26c] ss:$16 sps:$4 sm:$0xff]  }
 0x326   : > { %5448 = vmatpush2.bf16.msra.mxu1 %v3986_v37  ;;  %v6744_v37 = vld [vmem:[%s9679_s3 + $0x304] ss:$16 sps:$4 sm:$0xff]   ;;  %v9016_v38 = vpop.permute.xlu1 %4487 }
 0x327   : > { %5449 = vmatprep.subr.bf16.mxu1 %v9741_v33  ;;  %9767 = vst [vmem:[#allocation16_spill] sm:$0xff] %v9016_v38  ;;  %v6796_v38 = vld [vmem:[%s9679_s3 + $0x248] ss:$16 sps:$4 sm:$0xff]  }
 0x328   : > { %v9018_v62 = vpop.permute.xlu0 %4402 }
 0x329   : > { %5277 = vmatmul.mubr.bf16.gmra.mxu0 %v6685_v18  ;;  %9768 = vst [vmem:[#allocation17_spill] sm:$0xff] %v9018_v62  ;;  %v6751_v18 = vld [vmem:[%s9679_s3 + $0x128] ss:$16 sps:$4 sm:$0xff]  }
 0x32a   : > { %5450 = vmatpush2.bf16.msra.mxu1 %v3985_v61  ;;  %5284 = vmatprep.mubr.bf16.mxu0 %v6690_v8  ;;  %v6729_v61 = vld [vmem:[%s9679_s3 + $0xac] ss:$16 sps:$4 sm:$0xff]   ;;  %v9026_v51 = vpop.permute.xlu1 %4407  ;;  %v6756_v8 = vld [vmem:[%s9679_s3 + $0x344] ss:$16 sps:$4 sm:$0xff]  }
 0x32b   : > { %5451 = vmatprep.subr.bf16.mxu1 %v9741_v33  ;;  %9769 = vst [vmem:[#allocation18_spill] sm:$0xff] %v9026_v51 }
 0x32c   : > { %v9034_v60 = vpop.permute.xlu0 %4312 }
 0x32d   : > { %9770 = vst [vmem:[#allocation19_spill] sm:$0xff] %v9034_v60 }
 0x32e   : > { %5452 = vmatpush2.bf16.msra.mxu1 %v8839_v24  ;;  %v6702_v24 = vld [vmem:[%s9679_s3 + $0x224] ss:$16 sps:$4 sm:$0xff]   ;;  %v9038_v23 = vpop.permute.xlu1 %4317 }
 0x32f   : > { %5453 = vmatprep.subr.bf16.mxu1 %v9741_v33  ;;  %9771 = vst [vmem:[#allocation20_spill] sm:$0xff] %v9038_v23 }
 0x331   : > { %5285 = vmatmul.mubr.bf16.gmra.mxu0 %v6688_v22  ;;  %v6759_v22 = vld [vmem:[%s9679_s3 + $0x14c] ss:$16 sps:$4 sm:$0xff]  }
 0x332   : > { %5454 = vmatpush2.bf16.msra.mxu1 %v8829_v45  ;;  %5292 = vmatprep.mubr.bf16.mxu0 %v6693_v50  ;;  %v6694_v45 = vld [vmem:[%s9679_s3 + $0x200] ss:$16 sps:$4 sm:$0xff]   ;;  %v9054_v50 = vpop.permute.xlu0 %4232 }
 0x333   : > { %5455 = vmatprep.subr.bf16.mxu1 %v9741_v33 }
 0x336   : > { %5456 = vmatpush2.bf16.msra.mxu1 %v8815_v42  ;;  %v6697_v42 = vld [vmem:[%s9679_s3 + $0x8] ss:$16 sps:$4 sm:$0xff]  }
 0x337   : > { %5457 = vmatprep.subr.bf16.mxu1 %v9741_v33 }
 0x339   : > { %5293 = vmatmul.mubr.bf16.gmra.mxu0 %v6691_v25 }
 0x33a   : > { %5458 = vmatpush2.bf16.msra.mxu1 %v8801_v15  ;;  %5300 = vmatprep.mubr.bf16.mxu0 %v6696_v34  ;;  %v6705_v15 = vld [vmem:[%s9679_s3 + $0x2c] ss:$16 sps:$4 sm:$0xff]  }
 0x33b   : > { %5459 = vmatprep.subr.bf16.mxu1 %v9741_v33  ;;  %v6700_v33 = vld [vmem:[%s9679_s3 + $0x220] ss:$16 sps:$4 sm:$0xff]  }
 0x33e   : > { %5460 = vmatpush2.bf16.msra.mxu1 %v8787_v19  ;;  %v6703_v19 = vld [vmem:[%s9679_s3 + $0x28] ss:$16 sps:$4 sm:$0xff]  }
 0x341   : > { %5301 = vmatmul.mubr.bf16.gmra.mxu0 %v6694_v45  ;;  %5462 = vmatmul.mubr.bf16.vlgmr.msra.gmra.mxu1 %v6697_v42  ;;  %v9058_v45 = vpop.permute.xlu1 %4237 }
 0x342   : > { %5308 = vmatprep.mubr.bf16.mxu0 %v6702_v24  ;;  %5469 = vmatprep.mubr.bf16.mxu1 %v6705_v15  ;;  %v9060_v24 = vpop.permute.xlu0 %4472 }
 0x343   : > { %9772 = vst [vmem:[#allocation21_spill] sm:$0xff] %v9060_v24 }
 0x349   : > { %5309 = vmatmul.mubr.bf16.gmra.mxu0 %v6700_v33  ;;  %5470 = vmatmul.mubr.bf16.gmra.mxu1 %v6703_v19  ;;  %v6754_v33 = vld [vmem:[%s9679_s3 + $0x340] ss:$16 sps:$4 sm:$0xff]   ;;  %v6757_v19 = vld [vmem:[%s9679_s3 + $0x148] ss:$16 sps:$4 sm:$0xff]  }
 0x34a   : > { %5316 = vmatprep.mubr.bf16.mxu0 %v6708_v0  ;;  %5477 = vmatprep.mubr.bf16.mxu1 %v6711_v35  ;;  %v6762_v0 = vld [vmem:[%s9679_s3 + $0x364] ss:$16 sps:$4 sm:$0xff]   ;;  %v6765_v35 = vld [vmem:[%s9679_s3 + $0x16c] ss:$16 sps:$4 sm:$0xff]  }
 0x351   : > { %5317 = vmatmul.mubr.bf16.gmra.mxu0 %v6706_v6  ;;  %5478 = vmatmul.mubr.bf16.gmra.mxu1 %v6709_v4  ;;  %v9076_v4 = vpop.permute.xlu1 %4477 }
 0x352   : > { %5324 = vmatprep.mubr.bf16.mxu0 %v6714_v55  ;;  %5485 = vmatprep.mubr.bf16.mxu1 %v6717_v11  ;;  %9773 = vst [vmem:[#allocation22_spill] sm:$0xff] %v9076_v4  ;;  %v9080_v11 = vpop.permute.xlu0 %4392 }
 0x353   : > { %9774 = vst [vmem:[#allocation23_spill] sm:$0xff] %v9080_v11  ;;  %v6810_v11 = vld [vmem:[%s9679_s3 + $0x2cc] ss:$16 sps:$4 sm:$0xff]  }
 0x359   : > { %5325 = vmatmul.mubr.bf16.gmra.mxu0 %v6712_v46  ;;  %5486 = vmatmul.mubr.bf16.gmra.mxu1 %v6715_v56 }
 0x35a   : > { %5332 = vmatprep.mubr.bf16.mxu0 %v6720_v2  ;;  %5493 = vmatprep.mubr.bf16.mxu1 %v6723_v5  ;;  %v6760_v2 = vld [vmem:[%s9679_s3 + $0x360] ss:$16 sps:$4 sm:$0xff]   ;;  %v6763_v5 = vld [vmem:[%s9679_s3 + $0x168] ss:$16 sps:$4 sm:$0xff]  }
 0x361   : > { %5333 = vmatmul.mubr.bf16.gmra.mxu0 %v6718_v44  ;;  %5494 = vmatmul.mubr.bf16.gmra.mxu1 %v6721_v16  ;;  %v9090_v44 = vpop.permute.xlu1 %4397  ;;  %v6768_v16 = vld [vmem:[%s9679_s3 + $0x384] ss:$16 sps:$4 sm:$0xff]  }
 0x362   : > { %5340 = vmatprep.mubr.bf16.mxu0 %v6726_v21  ;;  %5501 = vmatprep.mubr.bf16.mxu1 %v6729_v61  ;;  %9775 = vst [vmem:[#allocation24_spill] sm:$0xff] %v9090_v44  ;;  %v6771_v21 = vld [vmem:[%s9679_s3 + $0x18c] ss:$16 sps:$4 sm:$0xff]   ;;  %v6805_v44 = vld [vmem:[%s9679_s3 + $0x2a8] ss:$16 sps:$4 sm:$0xff]  }
 0x369   : > { %5341 = vmatmul.mubr.bf16.gmra.mxu0 %v6724_v54  ;;  %5502 = vmatmul.mubr.bf16.gmra.mxu1 %v6727_v28  ;;  %v9098_v54 = vpop.permute.xlu0 %4302 }
 0x36a   : > { %5348 = vmatprep.mubr.bf16.mxu0 %v6732_v36  ;;  %5509 = vmatprep.mubr.bf16.mxu1 %v6735_v40  ;;  %v9102_v40 = vpop.permute.xlu1 %4307 }
 0x371   : > { %5349 = vmatmul.mubr.bf16.gmra.mxu0 %v6730_v59  ;;  %5510 = vmatmul.mubr.bf16.gmra.mxu1 %v6733_v49  ;;  %v6766_v49 = vld [vmem:[%s9679_s3 + $0x380] ss:$16 sps:$4 sm:$0xff]  }
 0x372   : > { %5356 = vmatprep.mubr.bf16.mxu0 %v6738_v32  ;;  %5517 = vmatprep.mubr.bf16.mxu1 %v6741_v43  ;;  %v6769_v32 = vld [vmem:[%s9679_s3 + $0x188] ss:$16 sps:$4 sm:$0xff]   ;;  %v6774_v43 = vld [vmem:[%s9679_s3 + $0x3a4] ss:$16 sps:$4 sm:$0xff]  }
 0x379   : > { %5357 = vmatmul.mubr.bf16.gmra.mxu0 %v6736_v47  ;;  %5518 = vmatmul.mubr.bf16.gmra.mxu1 %v6739_v27  ;;  %v6777_v47 = vld [vmem:[%s9679_s3 + $0x1ac] ss:$16 sps:$4 sm:$0xff]   ;;  %v9118_v27 = vpop.permute.xlu0 %4222 }
 0x37a   : > { %5364 = vmatprep.mubr.bf16.mxu0 %v6744_v37  ;;  %5525 = vmatprep.mubr.bf16.mxu1 %v6747_v1 }
 0x381   : > { %v9036_v63 = vpop.f32.mrf.mxu0  ;;  %5365 = vmatmul.mubr.bf16.gmra.mxu0 %v6742_v30  ;;  %5526 = vmatmul.mubr.bf16.gmra.mxu1 %v6745_v39  ;;  %v9122_v30 = vpop.permute.xlu1 %4227 }
 0x382   : > { %5372 = vmatprep.mubr.bf16.mxu0 %v6750_v52  ;;  %5533 = vmatprep.mubr.bf16.mxu1 %v6753_v14  ;;  %v9124_v52 = vpop.permute.xlu0 %4462 }
 0x383   : > { %v5176_v31 = vpop.f32.mrf.mxu0  ;;  %9776 = vst [vmem:[#allocation25_spill] sm:$0xff] %v9124_v52  ;;  %v6799_v52 = vld [vmem:[%s9679_s3 + $0x268] ss:$16 sps:$4 sm:$0xff]  }
 0x384   : > { %v6772_v31 = vld [vmem:[%s9679_s3 + $0x3a0] ss:$16 sps:$4 sm:$0xff]  }
 0x385   : > { %v9040_v41 = vpop.f32.mrf.mxu0 }
 0x387   : > { %v5179_v25 = vpop.f32.mrf.mxu0 }
 0x388   : > { %v9140_v25 = vpop.permute.xlu1 %4467 }
 0x389   : > { %v9056_v34 = vpop.f32.mrf.mxu0  ;;  %5373 = vmatmul.mubr.bf16.gmra.mxu0 %v6748_v26  ;;  %5534 = vmatmul.mubr.bf16.gmra.mxu1 %v6751_v18  ;;  %v6775_v26 = vld [vmem:[%s9679_s3 + $0x1a8] ss:$16 sps:$4 sm:$0xff]   ;;  %v6780_v18 = vld [vmem:[%s9679_s3 + $0x3c4] ss:$16 sps:$4 sm:$0xff]   ;;  %9777 = vst [vmem:[#allocation26_spill] sm:$0xff] %v9140_v25 }
 0x38a   : > { %5380 = vmatprep.mubr.bf16.mxu0 %v6756_v8  ;;  %5541 = vmatprep.mubr.bf16.mxu1 %v6759_v22  ;;  %v6783_v8 = vld [vmem:[%s9679_s3 + $0x1cc] ss:$16 sps:$4 sm:$0xff]  }
 0x38b   : > { %v5184_v42 = vpop.f32.mrf.mxu0 }
 0x38d   : > { %v9062_v15 = vpop.f32.mrf.mxu0 }
 0x38f   : > { %v5187_v6 = vpop.f32.mrf.mxu0 }
 0x390   : > { %v6781_v6 = vld [vmem:[%s9679_s3 + $0x1c8] ss:$16 sps:$4 sm:$0xff]  }
 0x391   : > { %v9078_v55 = vpop.f32.mrf.mxu0  ;;  %5381 = vmatmul.mubr.bf16.gmra.mxu0 %v6754_v33  ;;  %5542 = vmatmul.mubr.bf16.gmra.mxu1 %v6757_v19  ;;  %v9144_v33 = vpop.permute.xlu0 %4382 }
 0x392   : > { %5388 = vmatprep.mubr.bf16.mxu0 %v6762_v0  ;;  %5549 = vmatprep.mubr.bf16.mxu1 %v6765_v35  ;;  %9778 = vst [vmem:[#allocation27_spill] sm:$0xff] %v9144_v33  ;;  %v6778_v35 = vld [vmem:[%s9679_s3 + $0x3c0] ss:$16 sps:$4 sm:$0xff]  }
 0x393   : > { %v5192_v46 = vpop.f32.mrf.mxu0 }
 0x394   : > { %v9154_v46 = vpop.permute.xlu1 %4387 }
 0x395   : > { %v9082_v56 = vpop.f32.mrf.mxu0  ;;  %9779 = vst [vmem:[#allocation28_spill] sm:$0xff] %v9154_v46 }
 0x397   : > { %v5195_v61 = vpop.f32.mrf.mxu0 }
 0x399   : > { %v9100_v28 = vpop.f32.mrf.mxu0  ;;  %5389 = vmatmul.mubr.bf16.gmra.mxu0 %v6760_v2  ;;  %5550 = vmatmul.mubr.bf16.gmra.mxu1 %v6763_v5  ;;  %v6786_v2 = vld [vmem:[%s9679_s3 + $0x3e4] ss:$16 sps:$4 sm:$0xff]   ;;  %v6789_v5 = vld [vmem:[%s9679_s3 + $0x1ec] ss:$16 sps:$4 sm:$0xff]  }
 0x39a   : > { %5396 = vmatprep.mubr.bf16.mxu0 %v6768_v16  ;;  %5557 = vmatprep.mubr.bf16.mxu1 %v6771_v21  ;;  %v9162_v21 = vpop.permute.xlu0 %4292 }
 0x39b   : > { %v5200_v36 = vpop.f32.mrf.mxu0 }
 0x39d   : > { %v9104_v59 = vpop.f32.mrf.mxu0 }
 0x39f   : > { %v5203_v37 = vpop.f32.mrf.mxu0 }
 0x3a0   : > { %v6792_v37 = vld [vmem:[%s9679_s3 + $0x20c] ss:$16 sps:$4 sm:$0xff]  }
 0x3a1   : > { %v9120_v1 = vpop.f32.mrf.mxu0  ;;  %5397 = vmatmul.mubr.bf16.gmra.mxu0 %v6766_v49  ;;  %5558 = vmatmul.mubr.bf16.gmra.mxu1 %v6769_v32  ;;  %v9166_v49 = vpop.permute.xlu1 %4297 }
 0x3a2   : > { %5404 = vmatprep.mubr.bf16.mxu0 %v6774_v43  ;;  %5565 = vmatprep.mubr.bf16.mxu1 %v6777_v47  ;;  %v6784_v43 = vld [vmem:[%s9679_s3 + $0x3e0] ss:$16 sps:$4 sm:$0xff]   ;;  %v6787_v47 = vld [vmem:[%s9679_s3 + $0x1e8] ss:$16 sps:$4 sm:$0xff]  }
 0x3a3   : > { %v5208_v39 = vpop.f32.mrf.mxu0 }
 0x3a4   : > { %v9179_v39 = vpop.permute.xlu0 %4212 }
 0x3a5   : > { %v9126_v14 = vpop.f32.mrf.mxu0 }
 0x3a7   : > { %v5211_v22 = vpop.f32.mrf.mxu0 }
 0x3a8   : > { %v9185_v22 = vpop.permute.xlu0 %4452 }
 0x3a9   : > { %v9142_v42 = vpop.f32.mrf.mxu0  ;;  %5405 = vmatmul.mubr.bf16.gmra.mxu0 %v6772_v31  ;;  %5566 = vmatmul.mubr.bf16.gmra.mxu1 %v6775_v26  ;;  %9780 = vst [vmem:[#allocation29_spill] sm:$0xff] %v9185_v22 }
 0x3aa   : > { %5412 = vmatprep.mubr.bf16.mxu0 %v6780_v18  ;;  %5573 = vmatprep.mubr.bf16.mxu1 %v6783_v8  ;;  %v9183_v18 = vpop.permute.xlu1 %4217 }
 0x3ab   : > { %v5216_v19 = vpop.f32.mrf.mxu0 }
 0x3ad   : > { %v9146_v0 = vpop.f32.mrf.mxu0 }
 0x3af   : > { %v5219_v16 = vpop.f32.mrf.mxu0 }
 0x3b1   : > { %v9164_v61 = vpop.f32.mrf.mxu0  ;;  %5413 = vmatmul.mubr.bf16.gmra.mxu0 %v6778_v35  ;;  %5574 = vmatmul.mubr.bf16.gmra.mxu1 %v6781_v6  ;;  %v6790_v35 = vld [vmem:[%s9679_s3 + $0x208] ss:$16 sps:$4 sm:$0xff]   ;;  %v6795_v6 = vld [vmem:[%s9679_s3 + $0x22c] ss:$16 sps:$4 sm:$0xff]  }
 0x3b2   : > { %5420 = vmatprep.mubr.bf16.mxu0 %v6786_v2  ;;  %5581 = vmatprep.mubr.bf16.mxu1 %v6789_v5  ;;  %v9195_v5 = vpop.permute.xlu1 %4457 }
 0x3b3   : > { %v5224_v36 = vpop.f32.mrf.mxu0  ;;  %9781 = vst [vmem:[#allocation30_spill] sm:$0xff] %v9195_v5  ;;  %v6804_v5 = vld [vmem:[%s9679_s3 + $0x28c] ss:$16 sps:$4 sm:$0xff]  }
 0x3b4   : > { %v9199_v36 = vpop.permute.xlu0 %4372 }
 0x3b5   : > { %v9168_v32 = vpop.f32.mrf.mxu0  ;;  %9782 = vst [vmem:[#allocation31_spill] sm:$0xff] %v9199_v36  ;;  %v6808_v36 = vld [vmem:[%s9679_s3 + $0x2c8] ss:$16 sps:$4 sm:$0xff]  }
 0x3b7   : > { %v5227_v31 = vpop.f32.mrf.mxu0 }
 0x3b8   : > { %v9206_v31 = vpop.permute.xlu1 %4377  ;;  %v9211_v9 = vpop.permute.xlu0 %4282 }
 0x3b9   : > { %v9181_v26 = vpop.f32.mrf.mxu0  ;;  %5421 = vmatmul.mubr.bf16.gmra.mxu0 %v6784_v43  ;;  %5582 = vmatmul.mubr.bf16.gmra.mxu1 %v6787_v47  ;;  %9783 = vst [vmem:[#allocation32_spill] sm:$0xff] %v9206_v31 }
 0x3ba   : > { %5589 = vmatprep.mubr.bf16.mxu1 %v6792_v37  ;;  %v6793_v37 = vld [vmem:[%s9679_s3 + $0x228] ss:$16 sps:$4 sm:$0xff]  }
 0x3bb   : > { %v5232_v8 = vpop.f32.mrf.mxu0 }
 0x3bc   : > { %v6798_v8 = vld [vmem:[%s9679_s3 + $0x24c] ss:$16 sps:$4 sm:$0xff]  }
 0x3bd   : > { %v9187_v19 = vpop.f32.mrf.mxu0 }
 0x3bf   : > { %v5235_v2 = vpop.f32.mrf.mxu0 }
 0x3c1   : > { %v9197_v16 = vpop.f32.mrf.mxu0  ;;  %5590 = vmatmul.mubr.bf16.gmra.mxu1 %v6790_v35 }
 0x3c2   : > { %5597 = vmatprep.mubr.bf16.mxu1 %v6795_v6 }
 0x3c3   : > { %v5240_v43 = vpop.f32.mrf.mxu0 }
 0x3c4   : > { %v9215_v43 = vpop.permute.xlu1 %4287 }
 0x3c5   : > { %v9201_v47 = vpop.f32.mrf.mxu0 }
 0x3c7   : > { %v5243_v2 = vpop.f32.mrf.mxu0 }
 0x3c8   : > { %v9225_v2 = vpop.permute.xlu0 %4202 }
 0x3c9   : > { %v9213_v35 = vpop.f32.mrf.mxu0  ;;  %5598 = vmatmul.mubr.bf16.gmra.mxu1 %v6793_v37  ;;  %v9229_v37 = vpop.permute.xlu1 %4207 }
 0x3ca   : > { %5605 = vmatprep.mubr.bf16.mxu1 %v6798_v8 }
 0x3cb   : > { %v5248_v6 = vpop.f32.mrf.mxu0 }
 0x3cc   : > { %v9231_v6 = vpop.permute.xlu0 %4442 }
 0x3cd   : > { %v9217_v29 = vpop.f32.mrf.mxu0  ;;  %9784 = vst [vmem:[#allocation33_spill] sm:$0xff] %v9231_v6  ;;  %v9241_v22 = vpop.permute.xlu1 %4447 }
 0x3ce   : > { %9785 = vst [vmem:[#allocation34_spill] sm:$0xff] %v9241_v22 }
 0x3cf   : > { %v5251_v4 = vpop.f32.mrf.mxu0 }
 0x3d1   : > { %v9227_v24 = vpop.f32.mrf.mxu0  ;;  %5606 = vmatmul.mubr.bf16.gmra.mxu1 %v6796_v38  ;;  %v9252_v13 = vpop.permute.xlu1 %4367 }
 0x3d2   : > { %5613 = vmatprep.mubr.bf16.mxu1 %v6801_v58  ;;  %v9245_v58 = vpop.permute.xlu0 %4362  ;;  %9787 = vst [vmem:[#allocation36_spill] sm:$0xff] %v9252_v13  ;;  %v6813_v13 = vld [vmem:[%s9679_s3 + $0x2ec] ss:$16 sps:$4 sm:$0xff]  }
 0x3d3   : > { %v5256_v8 = vpop.f32.mrf.mxu0  ;;  %9786 = vst [vmem:[#allocation35_spill] sm:$0xff] %v9245_v58 }
 0x3d5   : > { %v9233_v25 = vpop.f32.mrf.mxu0 }
 0x3d6   : > { %v9257_v51 = vpop.permute.xlu0 %4272 }
 0x3d7   : > { %v5259_v4 = vpop.f32.mrf.mxu0 }
 0x3d8   : > { %v6807_v4 = vld [vmem:[%s9679_s3 + $0x2ac] ss:$16 sps:$4 sm:$0xff]  }
 0x3d9   : > { %v9243_v38 = vpop.f32.mrf.mxu0  ;;  %5614 = vmatmul.mubr.bf16.gmra.mxu1 %v6799_v52 }
 0x3da   : > { %5621 = vmatprep.mubr.bf16.mxu1 %v6804_v5 }
 0x3db   : > { %v5264_v8 = vpop.f32.mrf.mxu0 }
 0x3dc   : > { %v9261_v8 = vpop.permute.xlu1 %4277 }
 0x3dd   : > { %v9247_v6 = vpop.f32.mrf.mxu0 }
 0x3df   : > { %v5267_v22 = vpop.f32.mrf.mxu0 }
 0x3e0   : > { %v4193_v22 = vpop.permute.xlu0 %4192 }
 0x3e1   : > { %v9259_v52 = vpop.f32.mrf.mxu0  ;;  %5622 = vmatmul.mubr.bf16.gmra.mxu1 %v6802_v7  ;;  %v4198_v7 = vpop.permute.xlu1 %4197 }
 0x3e2   : > { %5629 = vmatprep.mubr.bf16.mxu1 %v6807_v4 }
 0x3e3   : > { %v5272_v5 = vpop.f32.mrf.mxu0 }
 0x3e4   : > { %v9273_v5 = vpop.permute.xlu0 %4432 }
 0x3e5   : > { %v9263_v62 = vpop.f32.mrf.mxu0  ;;  %9790 = vst [vmem:[#allocation6_spill] sm:$0xff] %v9273_v5  ;;  %v6811_v5 = vld [vmem:[%s9679_s3 + $0x2e8] ss:$16 sps:$4 sm:$0xff]  }
 0x3e6   : > { %9788 = vst [vmem:[#allocation37_spill] sm:$0xff] %v9263_v62 }
 0x3e7   : > { %v5275_v46 = vpop.f32.mrf.mxu0 }
 0x3e8   : > { %v9283_v46 = vpop.permute.xlu1 %4437 }
 0x3e9   : > { %v9271_v33 = vpop.f32.mrf.mxu0  ;;  %5630 = vmatmul.mubr.bf16.gmra.mxu1 %v6805_v44  ;;  %9792 = vst [vmem:[#allocation40_spill] sm:$0xff] %v9283_v46 }
 0x3ea   : > { %9789 = vst [vmem:[#allocation38_spill] sm:$0xff] %v9271_v33  ;;  %5637 = vmatprep.mubr.bf16.mxu1 %v6810_v11  ;;  %v9287_v11 = vpop.permute.xlu0 %4352 }
 0x3eb   : > { %v5280_v4 = vpop.f32.mrf.mxu0  ;;  %9794 = vst [vmem:[#allocation42_spill] sm:$0xff] %v9287_v11 }
 0x3ec   : > { %v9294_v57 = vpop.permute.xlu1 %4357 }
 0x3ed   : > { %v9275_v31 = vpop.f32.mrf.mxu0  ;;  %9796 = vst [vmem:[#allocation44_spill] sm:$0xff] %v9294_v57  ;;  %v6814_v57 = vld [vmem:[%s9679_s3 + $0x308] ss:$16 sps:$4 sm:$0xff]  }
 0x3ee   : > { %9791 = vst [vmem:[#allocation39_spill] sm:$0xff] %v9275_v31  ;;  %v9299_v20 = vpop.permute.xlu0 %4262 }
 0x3ef   : > { %v5283_v58 = vpop.f32.mrf.mxu0 }
 0x3f0   : > { %v6816_v58 = vld [vmem:[%s9679_s3 + $0x30c] ss:$16 sps:$4 sm:$0xff]  }
 0x3f1   : > { %v9285_v3 = vpop.f32.mrf.mxu0  ;;  %5638 = vmatmul.mubr.bf16.gmra.mxu1 %v6808_v36 }
 0x3f2   : > { %9793 = vst [vmem:[#allocation41_spill] sm:$0xff] %v9285_v3  ;;  %5645 = vmatprep.mubr.bf16.mxu1 %v6813_v13 }
 0x3f3   : > { %v5288_v44 = vpop.f32.mrf.mxu0 }
 0x3f4   : > { %v9303_v44 = vpop.permute.xlu1 %4267 }
 0x3f5   : > { %v9289_v4 = vpop.f32.mrf.mxu0 }
 0x3f6   : > { %9795 = vst [vmem:[#allocation43_spill] sm:$0xff] %v9289_v4  ;;  %v6819_v4 = vld [vmem:[%s9679_s3 + $0x32c] ss:$16 sps:$4 sm:$0xff]  }
 0x3f7   : > { %v5291_v46 = vpop.f32.mrf.mxu0 }
 0x3f8   : > { %v4183_v46 = vpop.permute.xlu0 %4182 }
 0x3f9   : > { %v9301_v36 = vpop.f32.mrf.mxu0  ;;  %5646 = vmatmul.mubr.bf16.gmra.mxu1 %v6811_v5  ;;  %v5175_v12 = vadd.f32 %v9036_v63, %v4183_v46  ;;  %v6822_v63 = vld [vmem:[%s9679_s3 + $0x34c] ss:$16 sps:$4 sm:$0xff]  }
 0x3fa   : > { %9797 = vst [vmem:[#allocation45_spill] sm:$0xff] %v9301_v36  ;;  %5653 = vmatprep.mubr.bf16.mxu1 %v6816_v58  ;;  %v4188_v58 = vpop.permute.xlu1 %4187 }
 0x3fb   : > { %v5296_v13 = vpop.f32.mrf.mxu0  ;;  %v5178_v23 = vadd.f32 %v9040_v41, %v4188_v58 }
 0x3fd   : > { %v9305_v11 = vpop.f32.mrf.mxu0 }
 0x3fe   : > { %9798 = vst [vmem:[#allocation46_spill] sm:$0xff] %v9305_v11 }
 0x3ff   : > { %v5299_v3 = vpop.f32.mrf.mxu0 }
 0x400   : > { %v6817_v3 = vld [vmem:[%s9679_s3 + $0x328] ss:$16 sps:$4 sm:$0xff]  }
 0x401   : > { %v9314_v36 = vpop.f32.mrf.mxu0  ;;  %v5463_v5 = vpop.f32.mrf.mxu1  ;;  %5654 = vmatmul.mubr.bf16.gmra.mxu1 %v6814_v57 }
 0x402   : > { %9799 = vst [vmem:[#allocation47_spill] sm:$0xff] %v9314_v36  ;;  %v5464_v13 = vadd.f32 %v5463_v5, %v5175_v12  ;;  %5661 = vmatprep.mubr.bf16.mxu1 %v6819_v4  ;;  %v5183_v12 = vadd.f32 %v9056_v34, %v4193_v22  ;;  %v6820_v34 = vld [vmem:[%s9679_s3 + $0x348] ss:$16 sps:$4 sm:$0xff]   ;;  %v6825_v22 = vld [vmem:[%s9679_s3 + $0x36c] ss:$16 sps:$4 sm:$0xff]  }
 0x403   : > { %v5304_v11 = vpop.f32.mrf.mxu0  ;;  %v5465_v31 = vpop.f32.mrf.mxu1 }
 0x404   : > { %v5718_v11 = vmax.f32 %v5464_v13, 0.0 }
 0x405   : > { %v9317_v33 = vpop.f32.mrf.mxu0  ;;  %v5466_v60 = vpop.f32.mrf.mxu1 }
 0x406   : > { %9800 = vst [vmem:[#allocation48_spill] sm:$0xff] %v9317_v33  ;;  %v5467_v62 = vadd.f32 %v5466_v60, %v5178_v23  ;;  %v5186_v23 = vadd.f32 %v9062_v15, %v4198_v7 }
 0x407   : > { %v5307_v57 = vpop.f32.mrf.mxu0  ;;  %v5468_v46 = vpop.f32.mrf.mxu1 }
 0x408   : > { %v5719_v31 = vmax.f32 %v5467_v62, 0.0 }
 0x409   : > { %v9326_v4 = vpop.f32.mrf.mxu0  ;;  %v5471_v41 = vpop.f32.mrf.mxu1  ;;  %5662 = vmatmul.mubr.bf16.gmra.mxu1 %v6817_v3 }
 0x40a   : > { %v9328_v5 = vpack.c.bf16 %v5719_v31, %v5718_v11  ;;  %v5472_v58 = vadd.f32 %v5471_v41, %v5183_v12  ;;  %5669 = vmatprep.mubr.bf16.mxu1 %v6822_v63 }
 0x40b   : > { %v5312_v33 = vpop.f32.mrf.mxu0  ;;  %v5473_v60 = vpop.f32.mrf.mxu1 }
 0x40c   : > { %v5191_v33 = vadd.f32 %v9078_v55, %v9225_v2  ;;  %v5720_v63 = vmax.f32 %v5472_v58, 0.0  ;;  %v5194_v60 = vadd.f32 %v9082_v56, %v9229_v37  ;;  %v6823_v55 = vld [vmem:[%s9679_s3 + $0x368] ss:$16 sps:$4 sm:$0xff]   ;;  %v6828_v58 = vld [vmem:[%s9679_s3 + $0x38c] ss:$16 sps:$4 sm:$0xff]  }
 0x40d   : > { %v9331_v36 = vpop.f32.mrf.mxu0  ;;  %v5474_v57 = vpop.f32.mrf.mxu1 }
 0x40e   : > { %v5475_v62 = vadd.f32 %v5474_v57, %v5186_v23 }
 0x40f   : > { %v5315_v13 = vpop.f32.mrf.mxu0  ;;  %v5476_v3 = vpop.f32.mrf.mxu1 }
 0x410   : > { %v5721_v46 = vmax.f32 %v5475_v62, 0.0 }
 0x411   : > { %v9341_v15 = vpop.f32.mrf.mxu0  ;;  %v5479_v7 = vpop.f32.mrf.mxu1  ;;  %5670 = vmatmul.mubr.bf16.gmra.mxu1 %v6820_v34 }
 0x412   : > { %v9343_v12 = vpack.c.bf16 %v5721_v46, %v5720_v63  ;;  %v5480_v11 = vadd.f32 %v5479_v7, %v5191_v33  ;;  %5677 = vmatprep.mubr.bf16.mxu1 %v6825_v22  ;;  %v5199_v22 = vadd.f32 %v9100_v28, %v9179_v39  ;;  %v5821_v33 = vlaneseq  ;;  %v6826_v39 = vld [vmem:[%s9679_s3 + $0x388] ss:$16 sps:$4 sm:$0xff]  }
 0x413   : > { %v5320_v31 = vpop.f32.mrf.mxu0  ;;  %v5481_v41 = vpop.f32.mrf.mxu1 }
 0x414   : > { %v5722_v13 = vmax.f32 %v5480_v11, 0.0  ;;  %v5202_v41 = vadd.f32 %v9104_v59, %v9183_v18  ;;  %v9368_v11 = vshrl.u32 %v5821_v33, 7  ;;  %v5207_v59 = vadd.f32 %v9120_v1, %v9118_v27 }
 0x415   : > { %v9347_v23 = vpop.f32.mrf.mxu0  ;;  %v5482_v57 = vpop.f32.mrf.mxu1 }
 0x416   : > { %v5483_v2 = vadd.f32 %v5482_v57, %v5194_v60  ;;  %v6917_v60 = vmov 1966171168   ;;  %9801 = vst [vmem:[#allocation49_spill] sm:$0xff] %v9368_v11 }
 0x417   : > { %v5323_v34 = vpop.f32.mrf.mxu0  ;;  %v5484_v62 = vpop.f32.mrf.mxu1  ;;  %v5835_v57 = vunpack.c.l.s4 %v6917_v60 }
 0x418   : > { %v5723_v3 = vmax.f32 %v5483_v2, 0.0  ;;  %v6831_v2 = vld [vmem:[%s9679_s3 + $0x3ac] ss:$16 sps:$4 sm:$0xff]  }
 0x419   : > { %v9357_v56 = vpop.f32.mrf.mxu0  ;;  %v5487_v37 = vpop.f32.mrf.mxu1  ;;  %5678 = vmatmul.mubr.bf16.gmra.mxu1 %v6823_v55 }
 0x41a   : > { %v9359_v63 = vpack.c.bf16 %v5723_v3, %v5722_v13  ;;  %v5488_v46 = vadd.f32 %v5487_v37, %v5199_v22  ;;  %5685 = vmatprep.mubr.bf16.mxu1 %v6828_v58  ;;  %v5836_v58 = vunpack.c.0.s8 %v5835_v57  ;;  %v6474_v22 = vld.sshfl [vmem:[%s9681_s5] sm:$0x33 pattern:$0x75316420] }
 0x41b   : > { %v5328_v7 = vpop.f32.mrf.mxu0  ;;  %v5489_v31 = vpop.f32.mrf.mxu1  ;;  %v5833_v37 = vcombine.high %v6474_v22, %v6474_v22 }
 0x41c   : > { %v5724_v13 = vmax.f32 %v5488_v46, 0.0  ;;  %v5839_v33 = vsub.s32 %v5836_v58, %v9368_v11  ;;  %v5210_v46 = vadd.f32 %v9126_v14, %v9122_v30 }
 0x41d   : > { %v9363_v34 = vpop.f32.mrf.mxu0  ;;  %v5490_v28 = vpop.f32.mrf.mxu1 }
 0x41e   : > { %v5491_v55 = vadd.f32 %v5490_v28, %v5202_v41  ;;  %v9383_v27 = vrot.slane %v5833_v37, %v5839_v33  ;;  %v9385_v28 = vrot.slane %v6474_v22, %v5839_v33  ;;  %v5215_v22 = vadd.f32 %v9142_v42, %v9054_v50  ;;  %v6832_v50 = vld [vmem:[%s9679_s3 + $0x3c8] ss:$16 sps:$4 sm:$0xff]  }
 0x41f   : > { %v5331_v18 = vpop.f32.mrf.mxu0  ;;  %v5492_v62 = vpop.f32.mrf.mxu1 }
 0x420   : > { %v5725_v3 = vmax.f32 %v5491_v55, 0.0  ;;  %5886 = vmatprep.mubr.bf16.mxu0 %v9383_v27 }
 0x421   : > { %v9379_v7 = vpop.f32.mrf.mxu0  ;;  %v5495_v31 = vpop.f32.mrf.mxu1  ;;  %5686 = vmatmul.mubr.bf16.gmra.mxu1 %v6826_v39  ;;  %v6829_v39 = vld [vmem:[%s9679_s3 + $0x3a8] ss:$16 sps:$4 sm:$0xff]  }
 0x422   : > { %v9381_v41 = vpack.c.bf16 %v5725_v3, %v5724_v13  ;;  %v5496_v60 = vadd.f32 %v5495_v31, %v5207_v59  ;;  %5693 = vmatprep.mubr.bf16.mxu1 %v6831_v2  ;;  %v6834_v2 = vld [vmem:[%s9679_s3 + $0x3cc] ss:$16 sps:$4 sm:$0xff]  }
 0x423   : > { %v5336_v1 = vpop.f32.mrf.mxu0  ;;  %v5497_v57 = vpop.f32.mrf.mxu1 }
 0x424   : > { %v5726_v30 = vmax.f32 %v5496_v60, 0.0  ;;  %v5218_v57 = vadd.f32 %v9146_v0, %v9058_v45  ;;  %v6837_v60 = vld [vmem:[%s9679_s3 + $0x3ec] ss:$16 sps:$4 sm:$0xff]  }
 0x425   : > { %v9390_v55 = vpop.f32.mrf.mxu0  ;;  %v5498_v58 = vpop.f32.mrf.mxu1 }
 0x426   : > { %v5499_v59 = vadd.f32 %v5498_v58, %v5210_v46 }
 0x427   : > { %v5339_v18 = vpop.f32.mrf.mxu0  ;;  %v5500_v62 = vpop.f32.mrf.mxu1 }
 0x428   : > { %v5727_v14 = vmax.f32 %v5499_v59, 0.0 }
 0x429   : > { %v9400_v13 = vpop.f32.mrf.mxu0  ;;  %v5503_v3 = vpop.f32.mrf.mxu1  ;;  %5694 = vmatmul.mubr.bf16.gmra.mxu1 %v6829_v39 }
 0x42a   : > { %v9402_v37 = vpack.c.bf16 %v5727_v14, %v5726_v30  ;;  %v5504_v33 = vadd.f32 %v5503_v3, %v5215_v22  ;;  %5701 = vmatprep.mubr.bf16.mxu1 %v6834_v2  ;;  %v5223_v2 = vadd.f32 %v9164_v61, %v8998_v53  ;;  %v6835_v53 = vld [vmem:[%s9679_s3 + $0x3e8] ss:$16 sps:$4 sm:$0xff]  }
 0x42b   : > { %v5344_v31 = vpop.f32.mrf.mxu0  ;;  %v5505_v1 = vpop.f32.mrf.mxu1 }
 0x42c   : > { %v5728_v18 = vmax.f32 %v5504_v33, 0.0  ;;  %v5226_v31 = vadd.f32 %v9168_v32, %v9000_v10 }
 0x42d   : > { %v9406_v46 = vpop.f32.mrf.mxu0  ;;  %v5506_v58 = vpop.f32.mrf.mxu1 }
 0x42e   : > { %v5507_v42 = vadd.f32 %v5506_v58, %v5218_v57 }
 0x42f   : > { %v5347_v39 = vpop.f32.mrf.mxu0  ;;  %v5508_v59 = vpop.f32.mrf.mxu1 }
 0x430   : > { %v5729_v62 = vmax.f32 %v5507_v42, 0.0 }
 0x431   : > { %v9416_v45 = vpop.f32.mrf.mxu0  ;;  %v5511_v0 = vpop.f32.mrf.mxu1  ;;  %5702 = vmatmul.mubr.bf16.gmra.mxu1 %v6832_v50  ;;  %v5231_v50 = vadd.f32 %v9181_v26, %v8946_v48  ;;  %v5239_v26 = vadd.f32 %v9197_v16, %v9299_v20  ;;  %v5247_v20 = vadd.f32 %v9213_v35, %v9257_v51 }
 0x432   : > { %v9418_v22 = vpack.c.bf16 %v5729_v62, %v5728_v18  ;;  %v5512_v30 = vadd.f32 %v5511_v0, %v5223_v2  ;;  %5709 = vmatprep.mubr.bf16.mxu1 %v6837_v60  ;;  %v5234_v62 = vadd.f32 %v9187_v19, %v8948_v17  ;;  %v5242_v17 = vadd.f32 %v9201_v47, %v9303_v44 }
 0x433   : > { %v5352_v14 = vpop.f32.mrf.mxu0  ;;  %v5513_v3 = vpop.f32.mrf.mxu1  ;;  %v5250_v47 = vadd.f32 %v9217_v29, %v9261_v8  ;;  %v5258_v29 = vadd.f32 %v9233_v25, %v9215_v43  ;;  %v5266_v25 = vadd.f32 %v9247_v6, %v9166_v49  ;;  %v9803_v49 = vld [vmem:[#allocation37_spill] sm:$0xff] }
 0x434   : > { %v5730_v42 = vmax.f32 %v5512_v30, 0.0  ;;  %v5274_v6 = vadd.f32 %v9803_v49, %v9102_v40  ;;  %v9808_v40 = vld [vmem:[#allocation20_spill] sm:$0xff] }
 0x435   : > { %v9422_v1 = vpop.f32.mrf.mxu0  ;;  %v5514_v57 = vpop.f32.mrf.mxu1 }
 0x436   : > { %v5515_v61 = vadd.f32 %v5514_v57, %v5226_v31 }
 0x437   : > { %v5355_v33 = vpop.f32.mrf.mxu0  ;;  %v5516_v58 = vpop.f32.mrf.mxu1 }
 0x438   : > { %v5731_v60 = vmax.f32 %v5515_v61, 0.0 }
 0x439   : > { %v9429_v39 = vpop.f32.mrf.mxu0  ;;  %v5519_v59 = vpop.f32.mrf.mxu1  ;;  %5710 = vmatmul.mubr.bf16.gmra.mxu1 %v6835_v53 }
 0x43a   : > { %v9431_v10 = vpack.c.bf16 %v5731_v60, %v5730_v42  ;;  %v5520_v32 = vadd.f32 %v5519_v59, %v5231_v50 }
 0x43b   : > { %v5360_v2 = vpop.f32.mrf.mxu0  ;;  %v5521_v18 = vpop.f32.mrf.mxu1 }
 0x43c   : > { %v5732_v30 = vmax.f32 %v5520_v32, 0.0 }
 0x43d   : > { %v9435_v0 = vpop.f32.mrf.mxu0  ;;  %v5522_v14 = vpop.f32.mrf.mxu1 }
 0x43e   : > { %v5523_v3 = vadd.f32 %v5522_v14, %v5234_v62 }
 0x43f   : > { %v5363_v31 = vpop.f32.mrf.mxu0  ;;  %v5524_v48 = vpop.f32.mrf.mxu1 }
 0x440   : > { %v5733_v57 = vmax.f32 %v5523_v3, 0.0 }
 0x441   : > { %v9439_v53 = vpop.f32.mrf.mxu0  ;;  %v5527_v61 = vpop.f32.mrf.mxu1 }
 0x442   : > { %v9441_v33 = vpack.c.bf16 %v5733_v57, %v5732_v30  ;;  %v5528_v58 = vadd.f32 %v5527_v61, %v5239_v26 }
 0x443   : > { %v5368_v50 = vpop.f32.mrf.mxu0  ;;  %v5529_v42 = vpop.f32.mrf.mxu1 }
 0x444   : > { %v5734_v16 = vmax.f32 %v5528_v58, 0.0 }
 0x445   : > { %v9445_v19 = vpop.f32.mrf.mxu0  ;;  %v5530_v60 = vpop.f32.mrf.mxu1 }
 0x446   : > { %v5531_v59 = vadd.f32 %v5530_v60, %v5242_v17  ;;  %v5255_v17 = vadd.f32 %v9227_v24, %v9211_v9  ;;  %v5263_v9 = vadd.f32 %v9243_v38, %v9162_v21  ;;  %v5271_v21 = vadd.f32 %v9259_v52, %v9098_v54  ;;  %v9806_v54 = vld [vmem:[#allocation19_spill] sm:$0xff]  ;;  %v9807_v52 = vld [vmem:[#allocation38_spill] sm:$0xff] }
 0x447   : > { %v5371_v2 = vpop.f32.mrf.mxu0  ;;  %v5532_v18 = vpop.f32.mrf.mxu1 }
 0x448   : > { %v5735_v32 = vmax.f32 %v5531_v59, 0.0 }
 0x449   : > { %v9449_v62 = vpop.f32.mrf.mxu0  ;;  %v5535_v14 = vpop.f32.mrf.mxu1 }
 0x44a   : > { %v9451_v3 = vpack.c.bf16 %v5735_v32, %v5734_v16  ;;  %v5536_v31 = vadd.f32 %v5535_v14, %v5247_v20 }
 0x44b   : > { %v5376_v48 = vpop.f32.mrf.mxu0  ;;  %v5537_v26 = vpop.f32.mrf.mxu1 }
 0x44c   : > { %v5736_v51 = vmax.f32 %v5536_v31, 0.0 }
 0x44d   : > { %v9455_v44 = vpop.f32.mrf.mxu0  ;;  %v5538_v30 = vpop.f32.mrf.mxu1 }
 0x44e   : > { %v5539_v57 = vadd.f32 %v5538_v30, %v5250_v47 }
 0x44f   : > { %v5379_v61 = vpop.f32.mrf.mxu0  ;;  %v5540_v50 = vpop.f32.mrf.mxu1 }
 0x450   : > { %v5737_v35 = vmax.f32 %v5539_v57, 0.0 }
 0x451   : > { %v9457_v58 = vpop.f32.mrf.mxu0  ;;  %v5543_v42 = vpop.f32.mrf.mxu1 }
 0x452   : > { %v9461_v60 = vpack.c.bf16 %v5737_v35, %v5736_v51  ;;  %v5544_v8 = vadd.f32 %v5543_v42, %v5255_v17 }
 0x453   : > { %v5384_v59 = vpop.f32.mrf.mxu0  ;;  %v5545_v2 = vpop.f32.mrf.mxu1 }
 0x454   : > { %v5738_v31 = vmax.f32 %v5544_v8, 0.0 }
 0x455   : > { %v9465_v18 = vpop.f32.mrf.mxu0  ;;  %v5546_v20 = vpop.f32.mrf.mxu1 }
 0x456   : > { %v5547_v16 = vadd.f32 %v5546_v20, %v5258_v29 }
 0x457   : > { %v5387_v32 = vpop.f32.mrf.mxu0  ;;  %v5548_v14 = vpop.f32.mrf.mxu1 }
 0x458   : > { %v5739_v48 = vmax.f32 %v5547_v16, 0.0 }
 0x459   : > { %v9467_v26 = vpop.f32.mrf.mxu0  ;;  %v5551_v47 = vpop.f32.mrf.mxu1 }
 0x45a   : > { %v9471_v24 = vpack.c.bf16 %v5739_v48, %v5738_v31  ;;  %v5552_v43 = vadd.f32 %v5551_v47, %v5263_v9 }
 0x45b   : > { %v5392_v30 = vpop.f32.mrf.mxu0  ;;  %v5553_v57 = vpop.f32.mrf.mxu1 }
 0x45c   : > { %v5740_v17 = vmax.f32 %v5552_v43, 0.0  ;;  %v5279_v43 = vadd.f32 %v9807_v52, %v9806_v54 }
 0x45d   : > { %v9475_v61 = vpop.f32.mrf.mxu0  ;;  %v5554_v50 = vpop.f32.mrf.mxu1 }
 0x45e   : > { %v5555_v51 = vadd.f32 %v5554_v50, %v5266_v25 }
 0x45f   : > { %v5395_v35 = vpop.f32.mrf.mxu0  ;;  %v5556_v42 = vpop.f32.mrf.mxu1 }
 0x460   : > { %v5741_v59 = vmax.f32 %v5555_v51, 0.0  ;;  %v9809_v42 = vld [vmem:[#allocation39_spill] sm:$0xff] }
 0x461   : > { %v9477_v2 = vpop.f32.mrf.mxu0  ;;  %v5559_v29 = vpop.f32.mrf.mxu1 }
 0x462   : > { %9802 = vst [vmem:[#allocation50_spill] sm:$0xff] %v9477_v2  ;;  %v9481_v38 = vpack.c.bf16 %v5741_v59, %v5740_v17  ;;  %v5560_v16 = vadd.f32 %v5559_v29, %v5271_v21  ;;  %v5282_v17 = vadd.f32 %v9809_v42, %v9808_v40 }
 0x463   : > { %v5400_v8 = vpop.f32.mrf.mxu0  ;;  %v5561_v20 = vpop.f32.mrf.mxu1 }
 0x464   : > { %v5742_v9 = vmax.f32 %v5560_v16, 0.0 }
 0x465   : > { %v9485_v32 = vpop.f32.mrf.mxu0  ;;  %v5562_v14 = vpop.f32.mrf.mxu1 }
 0x466   : > { %9804 = vst [vmem:[#allocation37_spill] sm:$0xff] %v9485_v32  ;;  %v5563_v31 = vadd.f32 %v5562_v14, %v5274_v6  ;;  %v9823_v32 = vld [vmem:[#allocation48_spill] sm:$0xff] }
 0x467   : > { %v5403_v48 = vpop.f32.mrf.mxu0  ;;  %v5564_v47 = vpop.f32.mrf.mxu1 }
 0x468   : > { %v5743_v30 = vmax.f32 %v5563_v31, 0.0  ;;  %v9812_v48 = vld [vmem:[#allocation13_spill] sm:$0xff] }
 0x469   : > { %v9487_v57 = vpop.f32.mrf.mxu0  ;;  %v5567_v25 = vpop.f32.mrf.mxu1  ;;  %v9813_v47 = vld [vmem:[#allocation41_spill] sm:$0xff] }
 0x46a   : > { %9805 = vst [vmem:[#allocation51_spill] sm:$0xff] %v9487_v57  ;;  %v9491_v50 = vpack.c.bf16 %v5743_v30, %v5742_v9  ;;  %v5568_v59 = vadd.f32 %v5567_v25, %v5279_v43  ;;  %v5287_v9 = vadd.f32 %v9813_v47, %v9812_v48 }
 0x46b   : > { %v5408_v51 = vpop.f32.mrf.mxu0  ;;  %v5569_v35 = vpop.f32.mrf.mxu1 }
 0x46c   : > { %v5744_v6 = vmax.f32 %v5568_v59, 0.0  ;;  %v9814_v51 = vld [vmem:[#allocation14_spill] sm:$0xff]  ;;  %v9815_v35 = vld [vmem:[#allocation43_spill] sm:$0xff] }
 0x46d   : > { %v9495_v29 = vpop.f32.mrf.mxu0  ;;  %v5570_v21 = vpop.f32.mrf.mxu1  ;;  %v5290_v25 = vadd.f32 %v9815_v35, %v9814_v51  ;;  %v9821_v35 = vld [vmem:[#allocation46_spill] sm:$0xff] }
 0x46e   : > { %9810 = vst [vmem:[#allocation19_spill] sm:$0xff] %v9495_v29  ;;  %v5571_v8 = vadd.f32 %v5570_v21, %v5282_v17 }
 0x46f   : > { %v5411_v20 = vpop.f32.mrf.mxu0  ;;  %v5572_v49 = vpop.f32.mrf.mxu1 }
 0x470   : > { %v5745_v16 = vmax.f32 %v5571_v8, 0.0  ;;  %v9505_v8 = vpop.permute.xlu0 %4422 }
 0x471   : > { %v9497_v14 = vpop.f32.mrf.mxu0  ;;  %v5575_v31 = vpop.f32.mrf.mxu1 }
 0x472   : > { %9811 = vst [vmem:[#allocation38_spill] sm:$0xff] %v9497_v14  ;;  %v5795_v30 = vpack.c.bf16 %v5745_v16, %v5744_v6  ;;  %v5576_v43 = vadd.f32 %v5575_v31, %v5287_v9  ;;  %v9818_v6 = vld [vmem:[#allocation7_spill] sm:$0xff]  ;;  %v9819_v16 = vld [vmem:[#allocation45_spill] sm:$0xff]  ;;  %v9511_v31 = vpop.permute.xlu1 %4427  ;;  %v9820_v9 = vld [vmem:[#allocation8_spill] sm:$0xff] }
 0x473   : > { %v5416_v54 = vpop.f32.mrf.mxu0  ;;  %v5577_v52 = vpop.f32.mrf.mxu1  ;;  %v5295_v47 = vadd.f32 %v9819_v16, %v9818_v6  ;;  %v9822_v14 = vld [vmem:[#allocation47_spill] sm:$0xff] }
 0x474   : > { %v5746_v20 = vmax.f32 %v5576_v43, 0.0  ;;  %v4343_v43 = vpop.permute.xlu0 %4342 }
 0x475   : > { %v9503_v40 = vpop.f32.mrf.mxu0  ;;  %v5578_v42 = vpop.f32.mrf.mxu1  ;;  %v5303_v29 = vadd.f32 %v9822_v14, %v4343_v43 }
 0x476   : > { %9816 = vst [vmem:[#allocation20_spill] sm:$0xff] %v9503_v40  ;;  %v5579_v17 = vadd.f32 %v5578_v42, %v5290_v25  ;;  %v5298_v25 = vadd.f32 %v9821_v35, %v9820_v9 }
 0x477   : > { %v5419_v21 = vpop.f32.mrf.mxu0  ;;  %v5580_v59 = vpop.f32.mrf.mxu1 }
 0x478   : > { %v5747_v49 = vmax.f32 %v5579_v17, 0.0 }
 0x479   : > { %v9507_v11 = vpop.f32.mrf.mxu0  ;;  %v5583_v48 = vpop.f32.mrf.mxu1 }
 0x47a   : > { %9817 = vst [vmem:[#allocation39_spill] sm:$0xff] %v9507_v11  ;;  %v5796_v54 = vpack.c.bf16 %v5747_v49, %v5746_v20  ;;  %v5584_v42 = vadd.f32 %v5583_v48, %v5295_v47 }
 0x47b   : > { %v5424_v52 = vpop.f32.mrf.mxu0  ;;  %v5585_v51 = vpop.f32.mrf.mxu1 }
 0x47c   : > { %v5748_v57 = vmax.f32 %v5584_v42, 0.0  ;;  %v4348_v52 = vpop.permute.xlu1 %4347  ;;  %v9825_v42 = vld [vmem:[#allocation44_spill] sm:$0xff] }
 0x47d   : > { %v9515_v21 = vpop.f32.mrf.mxu0  ;;  %v5586_v59 = vpop.f32.mrf.mxu1  ;;  %v5306_v2 = vadd.f32 %v9823_v32, %v4348_v52  ;;  %v9828_v52 = vld [vmem:[#allocation31_spill] sm:$0xff] }
 0x47e   : > { %v5587_v17 = vadd.f32 %v5586_v59, %v5298_v25  ;;  %v5314_v59 = vadd.f32 %v9331_v36, %v9825_v42 }
 0x47f   : > { %v5588_v40 = vpop.f32.mrf.mxu1  ;;  %v5427_v11 = vpop.f32.mrf.mxu0 }
 0x480   : > { %v5749_v6 = vmax.f32 %v5587_v17, 0.0  ;;  %v9824_v40 = vld [vmem:[#allocation42_spill] sm:$0xff] }
 0x481   : > { %v5591_v20 = vpop.f32.mrf.mxu1  ;;  %v5311_v11 = vadd.f32 %v9326_v4, %v9824_v40  ;;  %v9829_v40 = vld [vmem:[#allocation32_spill] sm:$0xff] }
 0x482   : > { %v5797_v49 = vpack.c.bf16 %v5749_v6, %v5748_v57  ;;  %v5592_v16 = vadd.f32 %v5591_v20, %v5303_v29 }
 0x483   : > { %v5593_v51 = vpop.f32.mrf.mxu1 }
 0x484   : > { %6479 = vmatprep.subr.bf16.mxu0 %v5797_v49  ;;  %v5750_v14 = vmax.f32 %v5592_v16, 0.0  ;;  %v9827_v49 = vld [vmem:[#allocation36_spill] sm:$0xff]  ;;  %v5327_v51 = vadd.f32 %v9357_v56, %v9828_v52 }
 0x485   : > { %v5594_v48 = vpop.f32.mrf.mxu1  ;;  %6480 = vmatpush3.bf16.msra.mxu0 %v9441_v33 }
 0x486   : > { %v5595_v47 = vadd.f32 %v5594_v48, %v5306_v2  ;;  %6481 = vmatprep.subr.bf16.mxu0 %v5796_v54  ;;  %v9826_v54 = vld [vmem:[#allocation35_spill] sm:$0xff] }
 0x487   : > { %v5596_v9 = vpop.f32.mrf.mxu1  ;;  %v5319_v43 = vadd.f32 %v9341_v15, %v9826_v54 }
 0x488   : > { %v5751_v35 = vmax.f32 %v5595_v47, 0.0 }
 0x489   : > { %v5599_v25 = vpop.f32.mrf.mxu1  ;;  %6482 = vmatpush3.bf16.msra.mxu0 %v9431_v10 }
 0x48a   : > { %v9523_v57 = vpack.c.bf16 %v5751_v35, %v5750_v14  ;;  %v5600_v29 = vadd.f32 %v5599_v25, %v5311_v11  ;;  %6483 = vmatprep.subr.bf16.mxu0 %v5795_v30  ;;  %v9830_v14 = vld [vmem:[#allocation27_spill] sm:$0xff] }
 0x48b   : > { %v5601_v32 = vpop.f32.mrf.mxu1  ;;  %v5335_v35 = vadd.f32 %v9379_v7, %v9830_v14 }
 0x48c   : > { %v5752_v17 = vmax.f32 %v5600_v29, 0.0 }
 0x48d   : > { %v5602_v33 = vpop.f32.mrf.mxu1  ;;  %6484 = vmatpush3.bf16.msra.mxu0 %v9418_v22  ;;  %v5322_v22 = vadd.f32 %v9347_v23, %v9827_v49 }
 0x48e   : > { %v5603_v2 = vadd.f32 %v5602_v33, %v5314_v59  ;;  %6485 = vmatprep.subr.bf16.mxu0 %v9491_v50 }
 0x48f   : > { %v5604_v4 = vpop.f32.mrf.mxu1 }
 0x490   : > { %v5753_v10 = vmax.f32 %v5603_v2, 0.0  ;;  %v9832_v2 = vld [vmem:[#allocation23_spill] sm:$0xff] }
 0x491   : > { %v5607_v6 = vpop.f32.mrf.mxu1  ;;  %6486 = vmatpush3.bf16.msra.mxu0 %v9402_v37  ;;  %v5343_v4 = vadd.f32 %v9400_v13, %v9832_v2 }
 0x492   : > { %v9532_v30 = vpack.c.bf16 %v5753_v10, %v5752_v17  ;;  %v5608_v20 = vadd.f32 %v5607_v6, %v5319_v43  ;;  %6487 = vmatprep.subr.bf16.mxu0 %v9481_v38  ;;  %v9833_v6 = vld [vmem:[#allocation24_spill] sm:$0xff] }
 0x493   : > { %v5609_v36 = vpop.f32.mrf.mxu1 }
 0x494   : > { %v5754_v37 = vmax.f32 %v5608_v20, 0.0  ;;  %v5346_v20 = vadd.f32 %v9406_v46, %v9833_v6  ;;  %v9836_v46 = vld [vmem:[#allocation11_spill] sm:$0xff] }
 0x495   : > { %v5610_v16 = vpop.f32.mrf.mxu1  ;;  %6488 = vmatpush3.bf16.msra.mxu0 %v9381_v41  ;;  %v5330_v41 = vadd.f32 %v9363_v34, %v9829_v40 }
 0x496   : > { %v5611_v50 = vadd.f32 %v5610_v16, %v5322_v22  ;;  %6489 = vmatprep.subr.bf16.mxu0 %v9471_v24  ;;  %v9834_v22 = vld [vmem:[#allocation17_spill] sm:$0xff] }
 0x497   : > { %v5612_v15 = vpop.f32.mrf.mxu1  ;;  %v5351_v16 = vadd.f32 %v9416_v45, %v9834_v22 }
 0x498   : > { %v5755_v48 = vmax.f32 %v5611_v50, 0.0 }
 0x499   : > { %v5615_v47 = vpop.f32.mrf.mxu1  ;;  %6490 = vmatpush3.bf16.msra.mxu0 %v9359_v63 }
 0x49a   : > { %v9542_v38 = vpack.c.bf16 %v5755_v48, %v5754_v37  ;;  %v5616_v9 = vadd.f32 %v5615_v47, %v5327_v51  ;;  %6491 = vmatprep.subr.bf16.mxu0 %v9461_v60  ;;  %v5849_v60 = vcombine.high %v9383_v27, %v9383_v27  ;;  %v9835_v48 = vld [vmem:[#allocation18_spill] sm:$0xff] }
 0x49b   : > { %v5617_v23 = vpop.f32.mrf.mxu1  ;;  %v5354_v47 = vadd.f32 %v9422_v1, %v9835_v48  ;;  %v5367_v1 = vadd.f32 %v9439_v53, %v9505_v8 }
 0x49c   : > { %v5756_v63 = vmax.f32 %v5616_v9, 0.0  ;;  %5926 = vmatprep.mubr.bf16.mxu1 %v5849_v60 }
 0x49d   : > { %v5618_v11 = vpop.f32.mrf.mxu1  ;;  %6492 = vmatpush3.bf16.msra.mxu0 %v9343_v12  ;;  %v9831_v12 = vld [vmem:[#allocation28_spill] sm:$0xff] }
 0x49e   : > { %v5619_v24 = vadd.f32 %v5618_v11, %v5330_v41  ;;  %6493 = vmatprep.subr.bf16.mxu0 %v9451_v3  ;;  %v5338_v3 = vadd.f32 %v9390_v55, %v9831_v12  ;;  %v5359_v41 = vadd.f32 %v9429_v39, %v9836_v46 }
 0x49f   : > { %v5620_v56 = vpop.f32.mrf.mxu1 }
 0x4a0   : > { %v5757_v25 = vmax.f32 %v5619_v24, 0.0 }
 0x4a1   : > { %v5623_v29 = vpop.f32.mrf.mxu1  ;;  %6494 = vmatpush3.bf16.msra.mxu0 %v9328_v5 }
 0x4a2   : > { %v9554_v32 = vpack.c.bf16 %v5757_v25, %v5756_v63  ;;  %v5624_v34 = vadd.f32 %v5623_v29, %v5335_v35  ;;  %v9837_v63 = vld [vmem:[#allocation12_spill] sm:$0xff] }
 0x4a3   : > { %v5625_v42 = vpop.f32.mrf.mxu1  ;;  %v5362_v25 = vadd.f32 %v9435_v0, %v9837_v63  ;;  %v9838_v0 = vld [vmem:[#allocation6_spill] sm:$0xff] }
 0x4a4   : > { %5887 = vmatmul.mubr.bf16.vlgmr.msra.gmra.mxu0 %v9385_v28  ;;  %v5758_v5 = vmax.f32 %v5624_v34, 0.0 }
 0x4a5   : > { %v5626_v59 = vpop.f32.mrf.mxu1 }
 0x4a6   : > { %v5627_v7 = vadd.f32 %v5626_v59, %v5338_v3 }
 0x4a7   : > { %v5628_v33 = vpop.f32.mrf.mxu1 }
 0x4a8   : > { %v5759_v54 = vmax.f32 %v5627_v7, 0.0  ;;  %v5370_v33 = vadd.f32 %v9445_v19, %v9511_v31 }
 0x4a9   : > { %v5631_v43 = vpop.f32.mrf.mxu1 }
 0x4aa   : > { %v9561_v27 = vpack.c.bf16 %v5759_v54, %v5758_v5  ;;  %v5632_v17 = vadd.f32 %v5631_v43, %v5343_v4  ;;  %v5375_v54 = vadd.f32 %v9449_v62, %v9838_v0 }
 0x4ab   : > { %v5633_v10 = vpop.f32.mrf.mxu1 }
 0x4ac   : > { %v5760_v50 = vmax.f32 %v5632_v17, 0.0 }
 0x4ad   : > { %v5634_v36 = vpop.f32.mrf.mxu1 }
 0x4ae   : > { %v5635_v55 = vadd.f32 %v5634_v36, %v5346_v20  ;;  %v9839_v20 = vld [vmem:[#allocation40_spill] sm:$0xff] }
 0x4af   : > { %v5636_v49 = vpop.f32.mrf.mxu1  ;;  %v5378_v36 = vadd.f32 %v9455_v44, %v9839_v20 }
 0x4b0   : > { %v5761_v15 = vmax.f32 %v5635_v55, 0.0 }
 0x4b1   : > { %v5639_v52 = vpop.f32.mrf.mxu1 }
 0x4b2   : > { %v9567_v13 = vpack.c.bf16 %v5761_v15, %v5760_v50  ;;  %v5640_v51 = vadd.f32 %v5639_v52, %v5351_v16  ;;  %v9840_v50 = vld [vmem:[#allocation33_spill] sm:$0xff] }
 0x4b3   : > { %v5641_v37 = vpop.f32.mrf.mxu1  ;;  %v5383_v15 = vadd.f32 %v9457_v58, %v9840_v50  ;;  %v9843_v58 = vld [vmem:[#allocation30_spill] sm:$0xff] }
 0x4b4   : > { %v5762_v11 = vmax.f32 %v5640_v51, 0.0  ;;  %v9841_v51 = vld [vmem:[#allocation34_spill] sm:$0xff] }
 0x4b5   : > { %v5642_v9 = vpop.f32.mrf.mxu1  ;;  %v5386_v37 = vadd.f32 %v9465_v18, %v9841_v51  ;;  %v9852_v51 = vld [vmem:[#allocation15_spill] sm:$0xff] }
 0x4b6   : > { %v5643_v23 = vadd.f32 %v5642_v9, %v5354_v47 }
 0x4b7   : > { %v5644_v40 = vpop.f32.mrf.mxu1 }
 0x4b8   : > { %v5763_v24 = vmax.f32 %v5643_v23, 0.0 }
 0x4b9   : > { %v5647_v56 = vpop.f32.mrf.mxu1 }
 0x4ba   : > { %v9573_v45 = vpack.c.bf16 %v5763_v24, %v5762_v11  ;;  %v5648_v14 = vadd.f32 %v5647_v56, %v5359_v41  ;;  %v9842_v41 = vld [vmem:[#allocation29_spill] sm:$0xff] }
 0x4bb   : > { %v5649_v35 = vpop.f32.mrf.mxu1  ;;  %v5391_v11 = vadd.f32 %v9467_v26, %v9842_v41  ;;  %v9847_v26 = vld [vmem:[#allocation37_spill] sm:$0xff] }
 0x4bc   : > { %v5764_v42 = vmax.f32 %v5648_v14, 0.0  ;;  %v5394_v14 = vadd.f32 %v9475_v61, %v9843_v58 }
 0x4bd   : > { %v5650_v29 = vpop.f32.mrf.mxu1 }
 0x4be   : > { %v5651_v60 = vadd.f32 %v5650_v29, %v5362_v25 }
 0x4bf   : > { %v5652_v34 = vpop.f32.mrf.mxu1 }
 0x4c0   : > { %v5765_v12 = vmax.f32 %v5651_v60, 0.0 }
 0x4c1   : > { %v5655_v3 = vpop.f32.mrf.mxu1 }
 0x4c2   : > { %v9579_v39 = vpack.c.bf16 %v5765_v12, %v5764_v42  ;;  %v5656_v59 = vadd.f32 %v5655_v3, %v5367_v1  ;;  %v9844_v1 = vld [vmem:[#allocation25_spill] sm:$0xff]  ;;  %v9845_v42 = vld [vmem:[#allocation50_spill] sm:$0xff] }
 0x4c3   : > { %v5657_v7 = vpop.f32.mrf.mxu1  ;;  %v5399_v12 = vadd.f32 %v9845_v42, %v9844_v1 }
 0x4c4   : > { %v5766_v43 = vmax.f32 %v5656_v59, 0.0  ;;  %v9846_v7 = vld [vmem:[#allocation26_spill] sm:$0xff] }
 0x4c5   : > { %v5658_v2 = vpop.f32.mrf.mxu1 }
 0x4c6   : > { %v5659_v4 = vadd.f32 %v5658_v2, %v5370_v33  ;;  %v5402_v33 = vadd.f32 %v9847_v26, %v9846_v7 }
 0x4c7   : > { %v5660_v5 = vpop.f32.mrf.mxu1 }
 0x4c8   : > { %v5767_v17 = vmax.f32 %v5659_v4, 0.0 }
 0x4c9   : > { %v5663_v10 = vpop.f32.mrf.mxu1 }
 0x4ca   : > { %v9585_v53 = vpack.c.bf16 %v5767_v17, %v5766_v43  ;;  %v5664_v8 = vadd.f32 %v5663_v10, %v5375_v54  ;;  %v9848_v17 = vld [vmem:[#allocation21_spill] sm:$0xff]  ;;  %v9849_v10 = vld [vmem:[#allocation51_spill] sm:$0xff] }
 0x4cb   : > { %v5665_v6 = vpop.f32.mrf.mxu1 }
 0x4cc   : > { %v5768_v19 = vmax.f32 %v5664_v8, 0.0  ;;  %v5407_v8 = vadd.f32 %v9849_v10, %v9848_v17 }
 0x4cd   : > { %v5666_v55 = vpop.f32.mrf.mxu1 }
 0x4ce   : > { %v5667_v49 = vadd.f32 %v5666_v55, %v5378_v36  ;;  %v9850_v36 = vld [vmem:[#allocation22_spill] sm:$0xff]  ;;  %v9851_v55 = vld [vmem:[#allocation19_spill] sm:$0xff] }
 0x4cf   : > { %v5668_v22 = vpop.f32.mrf.mxu1 }
 0x4d0   : > { %v5769_v31 = vmax.f32 %v5667_v49, 0.0  ;;  %v5410_v49 = vadd.f32 %v9851_v55, %v9850_v36 }
 0x4d1   : > { %v5671_v16 = vpop.f32.mrf.mxu1 }
 0x4d2   : > { %v9591_v62 = vpack.c.bf16 %v5769_v31, %v5768_v19  ;;  %v5672_v48 = vadd.f32 %v5671_v16, %v5383_v15 }
 0x4d3   : > { %v5673_v52 = vpop.f32.mrf.mxu1 }
 0x4d4   : > { %v5770_v44 = vmax.f32 %v5672_v48, 0.0 }
 0x4d5   : > { %v5674_v47 = vpop.f32.mrf.mxu1 }
 0x4d6   : > { %v5675_v9 = vadd.f32 %v5674_v47, %v5386_v37  ;;  %v9853_v37 = vld [vmem:[#allocation38_spill] sm:$0xff] }
 0x4d7   : > { %v5676_v23 = vpop.f32.mrf.mxu1  ;;  %v5415_v48 = vadd.f32 %v9853_v37, %v9852_v51 }
 0x4d8   : > { %v5771_v40 = vmax.f32 %v5675_v9, 0.0  ;;  %v9854_v23 = vld [vmem:[#allocation16_spill] sm:$0xff] }
 0x4d9   : > { %v5679_v46 = vpop.f32.mrf.mxu1 }
 0x4da   : > { %v9597_v24 = vpack.c.bf16 %v5771_v40, %v5770_v44  ;;  %v5680_v35 = vadd.f32 %v5679_v46, %v5391_v11  ;;  %v9855_v44 = vld [vmem:[#allocation20_spill] sm:$0xff] }
 0x4db   : > { %v5681_v56 = vpop.f32.mrf.mxu1  ;;  %v5418_v40 = vadd.f32 %v9855_v44, %v9854_v23 }
 0x4dc   : > { %v5772_v29 = vmax.f32 %v5680_v35, 0.0 }
 0x4dd   : > { %v5682_v63 = vpop.f32.mrf.mxu1 }
 0x4de   : > { %v5683_v25 = vadd.f32 %v5682_v63, %v5394_v14  ;;  %v9856_v63 = vld [vmem:[#allocation9_spill] sm:$0xff] }
 0x4df   : > { %v5684_v18 = vpop.f32.mrf.mxu1 }
 0x4e0   : > { %v5773_v60 = vmax.f32 %v5683_v25, 0.0  ;;  %v9857_v25 = vld [vmem:[#allocation39_spill] sm:$0xff] }
 0x4e1   : > { %v5687_v34 = vpop.f32.mrf.mxu1  ;;  %v5423_v18 = vadd.f32 %v9857_v25, %v9856_v63 }
 0x4e2   : > { %v5809_v3 = vpack.c.bf16 %v5773_v60, %v5772_v29  ;;  %v5688_v2 = vadd.f32 %v5687_v34, %v5399_v12  ;;  %v9858_v34 = vld [vmem:[#allocation10_spill] sm:$0xff] }
 0x4e3   : > { %v5689_v59 = vpop.f32.mrf.mxu1  ;;  %v5426_v1 = vadd.f32 %v9515_v21, %v9858_v34  ;;  %v5848_v21 = vcombine.high %v9385_v28, %v9385_v28 }
 0x4e4   : > { %v5774_v61 = vmax.f32 %v5688_v2, 0.0 }
 0x4e5   : > { %v5690_v4 = vpop.f32.mrf.mxu1 }
 0x4e6   : > { %v5691_v5 = vadd.f32 %v5690_v4, %v5402_v33 }
 0x4e7   : > { %v5692_v0 = vpop.f32.mrf.mxu1 }
 0x4e8   : > { %v5775_v54 = vmax.f32 %v5691_v5, 0.0 }
 0x4e9   : > { %v5695_v43 = vpop.f32.mrf.mxu1 }
 0x4ea   : > { %v5810_v6 = vpack.c.bf16 %v5775_v54, %v5774_v61  ;;  %v5696_v22 = vadd.f32 %v5695_v43, %v5407_v8 }
 0x4eb   : > { %v5697_v20 = vpop.f32.mrf.mxu1 }
 0x4ec   : > { %v5776_v50 = vmax.f32 %v5696_v22, 0.0 }
 0x4ed   : > { %v5698_v19 = vpop.f32.mrf.mxu1 }
 0x4ee   : > { %v5699_v31 = vadd.f32 %v5698_v19, %v5410_v49 }
 0x4ef   : > { %v5700_v16 = vpop.f32.mrf.mxu1 }
 0x4f0   : > { %v5777_v15 = vmax.f32 %v5699_v31, 0.0 }
 0x4f1   : > { %v5703_v52 = vpop.f32.mrf.mxu1 }
 0x4f2   : > { %v5811_v47 = vpack.c.bf16 %v5777_v15, %v5776_v50  ;;  %v5704_v46 = vadd.f32 %v5703_v52, %v5415_v48 }
 0x4f3   : > { %v5705_v9 = vpop.f32.mrf.mxu1 }
 0x4f4   : > { %v5778_v58 = vmax.f32 %v5704_v46, 0.0 }
 0x4f5   : > { %v5706_v41 = vpop.f32.mrf.mxu1 }
 0x4f6   : > { %v5707_v11 = vadd.f32 %v5706_v41, %v5418_v40 }
 0x4f7   : > { %v5708_v56 = vpop.f32.mrf.mxu1 }
 0x4f8   : > { %v5779_v14 = vmax.f32 %v5707_v11, 0.0 }
 0x4f9   : > { %v5711_v35 = vpop.f32.mrf.mxu1 }
 0x4fa   : > { %v5812_v29 = vpack.c.bf16 %v5779_v14, %v5778_v58  ;;  %v5712_v42 = vadd.f32 %v5711_v35, %v5423_v18 }
 0x4fb   : > { %v5713_v60 = vpop.f32.mrf.mxu1 }
 0x4fc   : > { %v5780_v26 = vmax.f32 %v5712_v42, 0.0 }
 0x4fd   : > { %v5714_v12 = vpop.f32.mrf.mxu1 }
 0x4fe   : > { %v5715_v59 = vadd.f32 %v5714_v12, %v5426_v1 }
 0x4ff   : > { %v5716_v7 = vpop.f32.mrf.mxu1 }
 0x500   : > { %v5781_v33 = vmax.f32 %v5715_v59, 0.0 }
 0x502   : > { %v5813_v2 = vpack.c.bf16 %v5781_v33, %v5780_v26 }
 0x504   : > { %6501 = vmatprep.subr.bf16.mxu1 %v5813_v2 }
 0x505   : > { %6502 = vmatpush3.bf16.msra.mxu1 %v9579_v39 }
 0x506   : > { %6503 = vmatprep.subr.bf16.mxu1 %v5812_v29 }
 0x509   : > { %6504 = vmatpush3.bf16.msra.mxu1 %v9573_v45 }
 0x50a   : > { %6505 = vmatprep.subr.bf16.mxu1 %v5811_v47 }
 0x50d   : > { %6506 = vmatpush3.bf16.msra.mxu1 %v9567_v13 }
 0x50e   : > { %6507 = vmatprep.subr.bf16.mxu1 %v5810_v6 }
 0x511   : > { %6508 = vmatpush3.bf16.msra.mxu1 %v9561_v27 }
 0x512   : > { %6509 = vmatprep.subr.bf16.mxu1 %v5809_v3 }
 0x515   : > { %6510 = vmatpush3.bf16.msra.mxu1 %v9554_v32 }
 0x516   : > { %6511 = vmatprep.subr.bf16.mxu1 %v9597_v24 }
 0x519   : > { %6512 = vmatpush3.bf16.msra.mxu1 %v9542_v38  ;;  %v9859_v38 = vld [vmem:[#allocation49_spill] sm:$0xff] }
 0x51a   : > { %6513 = vmatprep.subr.bf16.mxu1 %v9591_v62  ;;  %v5823_v24 = vsub.s32 0, %v9859_v38  ;;  %v5819_v62 = vpop.permute.xlu0 %5818 }
 0x51d   : > { %6514 = vmatpush3.bf16.msra.mxu1 %v9532_v30  ;;  %v5824_v30 = vrot.slane %v5819_v62, %v5823_v24 }
 0x51e   : > { %6515 = vmatprep.subr.bf16.mxu1 %v9585_v53 }
 0x521   : > { %6516 = vmatpush3.bf16.msra.mxu1 %v9523_v57 }
 0x524   : > { %5927 = vmatmul.mubr.bf16.vlgmr.msra.gmra.mxu1 %v5848_v21 }
 0x564   : > { %v6495_v27 = vpop.f32.mrf.mxu0 }
 0x566   : > { %v6496_v13 = vpop.f32.mrf.mxu0 }
 0x567   : > { %v6497_v32 = vadd.f32 %v6496_v13, %v6495_v27 }
 0x568   : > { %v6498_v45 = vpop.f32.mrf.mxu0 }
 0x569   : > { %v5889_v28 = vadd.f32 %v6497_v32, %v5824_v30 }
 0x56a   : > { %v6499_v39 = vpop.f32.mrf.mxu0 }
 0x5e4   : > { %v6517_v3 = vpop.f32.mrf.mxu1 }
 0x5e6   : > { %v6518_v4 = vpop.f32.mrf.mxu1 }
 0x5e7   : > { %v6519_v53 = vadd.f32 %v6518_v4, %v6517_v3 }
 0x5e8   : > { %v6520_v57 = vpop.f32.mrf.mxu1 }
 0x5e9   : > { %v5929_v5 = vadd.f32 %v6519_v53, %v5889_v28 }
 0x5ea   : > { %v6521_v0 = vpop.f32.mrf.mxu1 }
 0x5eb   : > { %5934 = vst [vmem:[%s294_s18] sm:$0x1] %v5929_v5 }
 0x5ec   : > { %6851 = shalt.err (!%p6848_p5)
}
 0x5ed   : > { %s6852_s9 = scalar_lea.hbm %s9636_s22, 16  ;;  %s6856_s16 = scalar_lea.hbm %s9683_s7, 32 }
 0x5ee   : > { %p6853_p6 = scmp.ne.s32.totalorder %s9636_s22, %s6852_s9  ;;  %p6857_p10 = scmp.lt.s32.totalorder %s9636_s22, %s9683_s7 }
 0x5ef   : > { %p6858_p11 = scmp.lt.s32.totalorder %s6856_s16, %s6852_s9 }
 0x5f0   : > { %p6854_p7 = pnand %p6853_p6, %p7002_p4 }
 0x5f1   : > { %p6859_p12 = por %p6858_p11, %p6857_p10 }
 0x5f2   : > { %p6855_p9 = pneg %p6854_p7 }
 0x5f4   : > { %p6860_p13 = pnand %p6859_p12, %p6855_p9 }
 0x5f6   : > { %6863 = shalt.err (!%p6860_p13)
}
 0x5f7   : > { %6523 = dma.vmem_to_hbm [thread:$0]  (%p7002_p4), %s5950_s20, 16, %s9636_s22, %s5936_s23  }
 0x5f8 PF: > { %p6529_p0 = scmp.ge.s32.totalorder %s6914_s8, 2  ;;  %s5961_s19 = sand.u32 1, %s6894_s26  }
 0x5f9   : > { %s5962_s21 = scalar_lea.sflag [#allocation4], %s5961_s19 }
 0x5fa   : > { %p6526_p1 = pnand %p6529_p0, %p7009_p8 }
 0x5fc   : > { %p6527_p2 = pneg %p6526_p1 }
 0x5fe   : > { %6889 = dma.done.wait (%p6527_p2), %s5962_s21, 16  }
 0x5ff   : > { %6891 = vsyncadd (%p6527_p2), %s5962_s21, 4294967280  ;;  %s22_s8 = sadd.s32 1, %s6914_s8   ;;  %s9860_s26 = smov %s6898_s27 }
 0x600   : > { %p19_p3 = scmp.ge.s32.totalorder %s22_s8, 4   ;;  %s9861_s27 = smov %s6902_s28 }
 0x601   : > { %s9862_s28 = smov %s7015_s15  ;;  %s9863_s29 = smov %s6910_s30 }
 0x602   : > { %s9864_s30 = smov %s9866_s10  ;;  %21 = sbr.rel (!%p19_p3) target bundleno = 7 (0x7), region = 83 }
 0x607   :  { %5966 = vsyncpa [#allocation4], 1 }
 0x608   :  { %5968 = vsyncpa [#allocation4 + $0x1], 1 }

</bundles_post_ra>
